<compile_context>
chip_gen: v7x
topology: tpu7x:2x2x1
jax: 0.10.0
libtpu: 0.0.40
codegen_flags: <defaults>
</compile_context>

<pallas_src>
import math

import jax
import jax.numpy as jnp
import numpy as np
from jax import lax
from jax.experimental import pallas as pl
from jax.experimental.pallas import tpu as pltpu


def _make_kernel(E, n_groups, P):
    def _kernel(ev_ref,   # VMEM [BB, 4]     int32  span indices
                x_ref,    # VMEM [BB, K]     f32    flattened sentence embeddings
                wf_ref,   # VMEM [K, M]      bf16   0.1 * full_knowledge.weight.T
                w1_ref,   # VMEM [P*128, M]  bf16   phase-tiled 0.9 * mlp.weight.T[:E]
                w2_ref,   # VMEM [P*128, M]  bf16   phase-tiled 0.9 * mlp.weight.T[E:]
                b_ref,    # VMEM [1, M]      f32    0.9*b_mlp + 0.1*b_fk
                o_ref):   # VMEM [BB, M]     f32
        BB = x_ref.shape[0]
        ev = ev_ref[...]                                   # [BB, 4] int32

        # ---- full-knowledge term: the single big MXU contraction ------------
        acc = jnp.dot(x_ref[...].astype(jnp.bfloat16), wf_ref[...],
                      preferred_element_type=jnp.float32)  # [BB, M] f32

        # ---- event-span sums: masked lane-aligned folds (VPU only; no extra
        #      full-K matmuls).  Flat column k of x is token k // E, so we
        #      compare k against E-scaled span bounds (no integer divide).
        lane = lax.broadcasted_iota(jnp.int32, (BB, 128), 1)
        lo1 = jnp.broadcast_to(ev[:, 0:1] * E, (BB, 128))  # hoisted broadcasts
        hi1 = jnp.broadcast_to(ev[:, 1:2] * E, (BB, 128))
        lo2 = jnp.broadcast_to(ev[:, 2:3] * E, (BB, 128))
        hi2 = jnp.broadcast_to(ev[:, 3:4] * E, (BB, 128))

        acc1 = [jnp.zeros((BB, 128), jnp.float32) for _ in range(P)]
        acc2 = [jnp.zeros((BB, 128), jnp.float32) for _ in range(P)]
        for g in range(n_groups):                          # unrolled, 128-lane-aligned
            xg = x_ref[:, g * 128:(g + 1) * 128]           # [BB, 128] f32
            col = lane + (g * 128)
            m1 = (col >= lo1) & (col < hi1)
            m2 = (col >= lo2) & (col < hi2)
            p = g % P
            acc1[p] = acc1[p] + jnp.where(m1, xg, 0.0)
            acc2[p] = acc2[p] + jnp.where(m2, xg, 0.0)
        s1 = acc1[0] if P == 1 else jnp.concatenate(acc1, axis=1)   # [BB, P*128]
        s2 = acc2[0] if P == 1 else jnp.concatenate(acc2, axis=1)

        # ---- tiny span->mlp matmuls; 1/span_len applied post-matmul ---------
        # NOTE: a degenerate real span (end == start) yields NaN here, matching
        # the reference's 0/0 behaviour on malformed inputs.
        inv1 = 1.0 / (ev[:, 1:2] - ev[:, 0:1]).astype(jnp.float32)  # [BB, 1]
        inv2 = 1.0 / (ev[:, 3:4] - ev[:, 2:3]).astype(jnp.float32)
        acc = acc + inv1 * jnp.dot(s1.astype(jnp.bfloat16), w1_ref[...],
                                   preferred_element_type=jnp.float32)
        acc = acc + inv2 * jnp.dot(s2.astype(jnp.bfloat16), w2_ref[...],
                                   preferred_element_type=jnp.float32)
        o_ref[...] = acc + b_ref[...]

    return _kernel


def modified_forward(sent_emb, batch_e, w_mlp, b_mlp, w_fk, b_fk, *, block_b=128):
    """sent_emb: [B, S, E] f32; batch_e: [B, 4] int32.
    w_mlp: [M, 2E], b_mlp: [M]; w_fk: [M, S*E], b_fk: [M] (PyTorch Linear layout).
    Returns prediction [B, M] float32."""
    B, S, E = sent_emb.shape
    M = w_mlp.shape[0]
    K = S * E
    if K % 128 != 0:
        raise ValueError(f"S*E = {K} must be a multiple of 128")
    n_groups = K // 128
    P = E // math.gcd(E, 128)       # lane-phase period of the flat [*, S*E] layout

    # --- batch block: large (amortize grid overhead / weight reuse), but keep
    #     >= 2 grid steps when possible so both v7x TensorCores get work.
    B8 = 8 * pl.cdiv(B, 8)
    BB = min(block_b, B8)
    if B8 >= 16 and pl.cdiv(B8, BB) < 2:
        BB = 8 * pl.cdiv(B8 // 2, 8)
    Bp = BB * pl.cdiv(B, BB)

    x = jnp.asarray(sent_emb, jnp.float32).reshape(B, K)   # row-major == torch cat
    ev = jnp.asarray(batch_e, jnp.int32)
    if Bp != B:
        x = jnp.concatenate([x, jnp.zeros((Bp - B, K), jnp.float32)], axis=0)
        # pad spans are [0, 1): length-1, so no division by zero on pad rows.
        ev = jnp.concatenate(
            [ev, jnp.tile(jnp.array([[0, 1, 0, 1]], jnp.int32), (Bp - B, 1))],
            axis=0)

    # --- fold the 0.9/0.1 blend and both biases into the weights (once per call)
    w_mlp = jnp.asarray(w_mlp, jnp.float32)                              # [M, 2E]
    wf = (0.1 * jnp.asarray(w_fk, jnp.float32).T).astype(jnp.bfloat16)   # [K, M]
    ridx = jnp.arange(P * 128) % E
    w1s = (0.9 * w_mlp[:, :E].T)[ridx].astype(jnp.bfloat16)              # [P*128, M]
    w2s = (0.9 * w_mlp[:, E:].T)[ridx].astype(jnp.bfloat16)              # [P*128, M]
    bias = (0.9 * jnp.asarray(b_mlp, jnp.float32)
            + 0.1 * jnp.asarray(b_fk, jnp.float32)).reshape(1, M)

    # Constant blocks (same block index every step): single-buffered so the
    # dead second pipeline buffer is reclaimed.
    def _const_spec(shape):
        try:
            return pl.BlockSpec(shape, lambda g: (0, 0),
                                pipeline_mode=pl.Buffered(1))
        except TypeError:   # older BlockSpec without pipeline_mode support
            return pl.BlockSpec(shape, lambda g: (0, 0))

    grid_spec = pltpu.PrefetchScalarGridSpec(
        num_scalar_prefetch=0,
        grid=(Bp // BB,),
        in_specs=[
            pl.BlockSpec((BB, 4), lambda g: (g, 0)),       # batch_e
            pl.BlockSpec((BB, K), lambda g: (g, 0)),       # x (flattened, once)
            _const_spec((K, M)),                           # wf
            _const_spec((P * 128, M)),                     # w1s
            _const_spec((P * 128, M)),                     # w2s
            _const_spec((1, M)),                           # bias
        ],
        out_specs=pl.BlockSpec((BB, M), lambda g: (g, 0)),
    )

    # VMEM budget: double-buffered x block + in-kernel temporaries + weights.
    x_block_bytes = BB * K * 4
    weight_bytes = K * M * 2 + 2 * P * 128 * M * 2 + 4 * M
    vmem_limit = int(min(56 << 20,
                         max(24 << 20,
                             6 * x_block_bytes + weight_bytes + (4 << 20))))

    out = pl.pallas_call(
        _make_kernel(E, n_groups, P),
        out_shape=jax.ShapeDtypeStruct((Bp, M), jnp.float32),
        grid_spec=grid_spec,
        compiler_params=pltpu.CompilerParams(
            dimension_semantics=("parallel",),
            vmem_limit_bytes=vmem_limit),
    )(ev, x, wf, w1s, w2s, bias)
    return out[:B]


def reference(sent_emb, batch_e, w_mlp, b_mlp, w_fk, b_fk):
    B, S, E = sent_emb.shape
    pairs = []
    for i in range(B):
        s1, e1, s2, e2 = [int(v) for v in np.asarray(batch_e[i])]
        v1 = sent_emb[i, s1:e1].sum(0) / float(e1 - s1)
        v2 = sent_emb[i, s2:e2].sum(0) / float(e2 - s2)
        pairs.append(jnp.concatenate([v1, v2]))
    pair = jnp.stack(pairs)                                   # [B, 2E]
    sent_cat = sent_emb.reshape(B, S * E)
    return 0.9 * (pair @ w_mlp.T + b_mlp) + 0.1 * (sent_cat @ w_fk.T + b_fk)


if __name__ == "__main__":
    B = 2           # batch_size
    S = 196         # seq length implied by Linear(196 * embedding_size, ...)
    E = 32          # args.embedding_size
    M = 32          # args.mlp_size

    key = jax.random.PRNGKey(0)
    k_sent, k_wm, k_bm, k_wf, k_bf = jax.random.split(key, 5)

    # stand-in for RobertaModel(batch_arg, arg_mask)[0]
    sent_emb = jax.random.normal(k_sent, (B, S, E), jnp.float32)

    # event span indices per batch item: [e1_start, e1_end, e2_start, e2_end]
    batch_e = jnp.array([[3, 7, 50, 55],
                         [10, 12, 100, 104]], dtype=jnp.int32)

    # deterministic Linear params (PyTorch layout: weight [out, in], bias [out])
    w_mlp = 0.02 * jax.random.normal(k_wm, (M, 2 * E), jnp.float32)
    b_mlp = 0.02 * jax.random.normal(k_bm, (M,), jnp.float32)
    w_fk = 0.02 * jax.random.normal(k_wf, (M, S * E), jnp.float32)
    b_fk = 0.02 * jax.random.normal(k_bf, (M,), jnp.float32)

    out = modified_forward(sent_emb, batch_e, w_mlp, b_mlp, w_fk, b_fk)
    out = jax.block_until_ready(out)

    ref = reference(sent_emb, batch_e, w_mlp, b_mlp, w_fk, b_fk)
    # bf16 matmul operands (f32 accumulation) vs the pure-f32 reference.
    np.testing.assert_allclose(np.asarray(out), np.asarray(ref),
                               atol=3e-3, rtol=3e-3)
    print("KERNEL_OK")
</pallas_src>

<mosaic_0001>
module attributes {stable_mosaic.version = 11 : i64} {
  func.func @_kernel(%arg0: i32, %arg1: memref<8x4xi32, #tpu.memory_space<vmem>>, %arg2: memref<8x6272xf32, #tpu.memory_space<vmem>>, %arg3: memref<6272x32xbf16, #tpu.memory_space<vmem>>, %arg4: memref<128x32xbf16, #tpu.memory_space<vmem>>, %arg5: memref<128x32xbf16, #tpu.memory_space<vmem>>, %arg6: memref<1x32xf32, #tpu.memory_space<vmem>>, %arg7: memref<8x32xf32, #tpu.memory_space<vmem>>) attributes {dimension_semantics = [#tpu.dimension_semantics<parallel>], iteration_bounds = array<i64: 1>, scalar_prefetch = 0 : i64, scratch_operands = 0 : i64, tpu.core_type = #tpu.core_type<tc>, window_params = [{transform_indices = @transform_0, window_bounds = array<i64: 8, 4>}, {transform_indices = @transform_1, window_bounds = array<i64: 8, 6272>}, {pipeline_mode = #tpu.pipeline_mode<synchronous>, transform_indices = @transform_2, window_bounds = array<i64: 6272, 32>}, {pipeline_mode = #tpu.pipeline_mode<synchronous>, transform_indices = @transform_3, window_bounds = array<i64: 128, 32>}, {pipeline_mode = #tpu.pipeline_mode<synchronous>, transform_indices = @transform_4, window_bounds = array<i64: 128, 32>}, {pipeline_mode = #tpu.pipeline_mode<synchronous>, transform_indices = @transform_5, window_bounds = array<i64: 1, 32>}, {transform_indices = @transform_6, window_bounds = array<i64: 8, 32>}]} {
    %c0 = arith.constant 0 : index
    %c0_0 = arith.constant 0 : index
    %0 = vector.load %arg1[%c0, %c0_0] : memref<8x4xi32, #tpu.memory_space<vmem>>, vector<8x4xi32>
    %c0_1 = arith.constant 0 : index
    %c0_2 = arith.constant 0 : index
    %1 = vector.load %arg2[%c0_1, %c0_2] : memref<8x6272xf32, #tpu.memory_space<vmem>>, vector<8x6272xf32>
    %2 = arith.truncf %1 : vector<8x6272xf32> to vector<8x6272xbf16>
    %c0_3 = arith.constant 0 : index
    %c0_4 = arith.constant 0 : index
    %3 = vector.load %arg3[%c0_3, %c0_4] : memref<6272x32xbf16, #tpu.memory_space<vmem>>, vector<6272x32xbf16>
    %cst = arith.constant dense<0.000000e+00> : vector<8x32xf32>
    %4 = tpu.matmul %2, %3, %cst {dimension_numbers = #tpu.dot_dimension_numbers<[1], [0], [0], [1], [0, 0, 1, 1], [], []>} : vector<8x6272xbf16>, vector<6272x32xbf16>, vector<8x32xf32> -> vector<8x32xf32>
    %5 = tpu.iota {dimensions = array<i32: 1>} : vector<8x128xi32>
    %6 = vector.extract_strided_slice %0 {offsets = [0, 0], sizes = [8, 1], strides = [1, 1]} : vector<8x4xi32> to vector<8x1xi32>
    %c32_i32 = arith.constant 32 : i32
    %7 = vector.broadcast %c32_i32 : i32 to vector<8x1xi32>
    %8 = arith.muli %6, %7 : vector<8x1xi32>
    %9 = vector.shape_cast %8 : vector<8x1xi32> to vector<8x1xi32>
    %10 = vector.broadcast %9 : vector<8x1xi32> to vector<8x128xi32>
    %11 = vector.extract_strided_slice %0 {offsets = [0, 1], sizes = [8, 1], strides = [1, 1]} : vector<8x4xi32> to vector<8x1xi32>
    %c32_i32_5 = arith.constant 32 : i32
    %12 = vector.broadcast %c32_i32_5 : i32 to vector<8x1xi32>
    %13 = arith.muli %11, %12 : vector<8x1xi32>
    %14 = vector.shape_cast %13 : vector<8x1xi32> to vector<8x1xi32>
    %15 = vector.broadcast %14 : vector<8x1xi32> to vector<8x128xi32>
    %16 = vector.extract_strided_slice %0 {offsets = [0, 2], sizes = [8, 1], strides = [1, 1]} : vector<8x4xi32> to vector<8x1xi32>
    %c32_i32_6 = arith.constant 32 : i32
    %17 = vector.broadcast %c32_i32_6 : i32 to vector<8x1xi32>
    %18 = arith.muli %16, %17 : vector<8x1xi32>
    %19 = vector.shape_cast %18 : vector<8x1xi32> to vector<8x1xi32>
    %20 = vector.broadcast %19 : vector<8x1xi32> to vector<8x128xi32>
    %21 = vector.extract_strided_slice %0 {offsets = [0, 3], sizes = [8, 1], strides = [1, 1]} : vector<8x4xi32> to vector<8x1xi32>
    %c32_i32_7 = arith.constant 32 : i32
    %22 = vector.broadcast %c32_i32_7 : i32 to vector<8x1xi32>
    %23 = arith.muli %21, %22 : vector<8x1xi32>
    %24 = vector.shape_cast %23 : vector<8x1xi32> to vector<8x1xi32>
    %25 = vector.broadcast %24 : vector<8x1xi32> to vector<8x128xi32>
    %cst_8 = arith.constant 0.000000e+00 : f32
    %26 = vector.broadcast %cst_8 : f32 to vector<8x128xf32>
    %cst_9 = arith.constant 0.000000e+00 : f32
    %27 = vector.broadcast %cst_9 : f32 to vector<8x128xf32>
    %c0_10 = arith.constant 0 : index
    %c0_11 = arith.constant 0 : index
    %28 = vector.load %arg2[%c0_10, %c0_11] : memref<8x6272xf32, #tpu.memory_space<vmem>>, vector<8x128xf32>
    %c0_i32 = arith.constant 0 : i32
    %29 = vector.broadcast %c0_i32 : i32 to vector<8x128xi32>
    %30 = arith.addi %5, %29 : vector<8x128xi32>
    %31 = arith.cmpi sge, %30, %10 : vector<8x128xi32>
    %32 = arith.cmpi slt, %30, %15 : vector<8x128xi32>
    %33 = arith.andi %31, %32 : vector<8x128xi1>
    %34 = arith.cmpi sge, %30, %20 : vector<8x128xi32>
    %35 = arith.cmpi slt, %30, %25 : vector<8x128xi32>
    %36 = arith.andi %34, %35 : vector<8x128xi1>
    %cst_12 = arith.constant 0.000000e+00 : f32
    %37 = vector.broadcast %cst_12 : f32 to vector<8x128xf32>
    %38 = arith.select %33, %28, %37 : vector<8x128xi1>, vector<8x128xf32>
    %39 = arith.addf %26, %38 : vector<8x128xf32>
    %cst_13 = arith.constant 0.000000e+00 : f32
    %40 = vector.broadcast %cst_13 : f32 to vector<8x128xf32>
    %41 = arith.select %36, %28, %40 : vector<8x128xi1>, vector<8x128xf32>
    %42 = arith.addf %27, %41 : vector<8x128xf32>
    %c0_14 = arith.constant 0 : index
    %c128 = arith.constant 128 : index
    %43 = vector.load %arg2[%c0_14, %c128] : memref<8x6272xf32, #tpu.memory_space<vmem>>, vector<8x128xf32>
    %c128_i32 = arith.constant 128 : i32
    %44 = vector.broadcast %c128_i32 : i32 to vector<8x128xi32>
    %45 = arith.addi %5, %44 : vector<8x128xi32>
    %46 = arith.cmpi sge, %45, %10 : vector<8x128xi32>
    %47 = arith.cmpi slt, %45, %15 : vector<8x128xi32>
    %48 = arith.andi %46, %47 : vector<8x128xi1>
    %49 = arith.cmpi sge, %45, %20 : vector<8x128xi32>
    %50 = arith.cmpi slt, %45, %25 : vector<8x128xi32>
    %51 = arith.andi %49, %50 : vector<8x128xi1>
    %cst_15 = arith.constant 0.000000e+00 : f32
    %52 = vector.broadcast %cst_15 : f32 to vector<8x128xf32>
    %53 = arith.select %48, %43, %52 : vector<8x128xi1>, vector<8x128xf32>
    %54 = arith.addf %39, %53 : vector<8x128xf32>
    %cst_16 = arith.constant 0.000000e+00 : f32
    %55 = vector.broadcast %cst_16 : f32 to vector<8x128xf32>
    %56 = arith.select %51, %43, %55 : vector<8x128xi1>, vector<8x128xf32>
    %57 = arith.addf %42, %56 : vector<8x128xf32>
    %c0_17 = arith.constant 0 : index
    %c256 = arith.constant 256 : index
    %58 = vector.load %arg2[%c0_17, %c256] : memref<8x6272xf32, #tpu.memory_space<vmem>>, vector<8x128xf32>
    %c256_i32 = arith.constant 256 : i32
    %59 = vector.broadcast %c256_i32 : i32 to vector<8x128xi32>
    %60 = arith.addi %5, %59 : vector<8x128xi32>
    %61 = arith.cmpi sge, %60, %10 : vector<8x128xi32>
    %62 = arith.cmpi slt, %60, %15 : vector<8x128xi32>
    %63 = arith.andi %61, %62 : vector<8x128xi1>
    %64 = arith.cmpi sge, %60, %20 : vector<8x128xi32>
    %65 = arith.cmpi slt, %60, %25 : vector<8x128xi32>
    %66 = arith.andi %64, %65 : vector<8x128xi1>
    %cst_18 = arith.constant 0.000000e+00 : f32
    %67 = vector.broadcast %cst_18 : f32 to vector<8x128xf32>
    %68 = arith.select %63, %58, %67 : vector<8x128xi1>, vector<8x128xf32>
    %69 = arith.addf %54, %68 : vector<8x128xf32>
    %cst_19 = arith.constant 0.000000e+00 : f32
    %70 = vector.broadcast %cst_19 : f32 to vector<8x128xf32>
    %71 = arith.select %66, %58, %70 : vector<8x128xi1>, vector<8x128xf32>
    %72 = arith.addf %57, %71 : vector<8x128xf32>
    %c0_20 = arith.constant 0 : index
    %c384 = arith.constant 384 : index
    %73 = vector.load %arg2[%c0_20, %c384] : memref<8x6272xf32, #tpu.memory_space<vmem>>, vector<8x128xf32>
    %c384_i32 = arith.constant 384 : i32
    %74 = vector.broadcast %c384_i32 : i32 to vector<8x128xi32>
    %75 = arith.addi %5, %74 : vector<8x128xi32>
    %76 = arith.cmpi sge, %75, %10 : vector<8x128xi32>
    %77 = arith.cmpi slt, %75, %15 : vector<8x128xi32>
    %78 = arith.andi %76, %77 : vector<8x128xi1>
    %79 = arith.cmpi sge, %75, %20 : vector<8x128xi32>
    %80 = arith.cmpi slt, %75, %25 : vector<8x128xi32>
    %81 = arith.andi %79, %80 : vector<8x128xi1>
    %cst_21 = arith.constant 0.000000e+00 : f32
    %82 = vector.broadcast %cst_21 : f32 to vector<8x128xf32>
    %83 = arith.select %78, %73, %82 : vector<8x128xi1>, vector<8x128xf32>
    %84 = arith.addf %69, %83 : vector<8x128xf32>
    %cst_22 = arith.constant 0.000000e+00 : f32
    %85 = vector.broadcast %cst_22 : f32 to vector<8x128xf32>
    %86 = arith.select %81, %73, %85 : vector<8x128xi1>, vector<8x128xf32>
    %87 = arith.addf %72, %86 : vector<8x128xf32>
    %c0_23 = arith.constant 0 : index
    %c512 = arith.constant 512 : index
    %88 = vector.load %arg2[%c0_23, %c512] : memref<8x6272xf32, #tpu.memory_space<vmem>>, vector<8x128xf32>
    %c512_i32 = arith.constant 512 : i32
    %89 = vector.broadcast %c512_i32 : i32 to vector<8x128xi32>
    %90 = arith.addi %5, %89 : vector<8x128xi32>
    %91 = arith.cmpi sge, %90, %10 : vector<8x128xi32>
    %92 = arith.cmpi slt, %90, %15 : vector<8x128xi32>
    %93 = arith.andi %91, %92 : vector<8x128xi1>
    %94 = arith.cmpi sge, %90, %20 : vector<8x128xi32>
    %95 = arith.cmpi slt, %90, %25 : vector<8x128xi32>
    %96 = arith.andi %94, %95 : vector<8x128xi1>
    %cst_24 = arith.constant 0.000000e+00 : f32
    %97 = vector.broadcast %cst_24 : f32 to vector<8x128xf32>
    %98 = arith.select %93, %88, %97 : vector<8x128xi1>, vector<8x128xf32>
    %99 = arith.addf %84, %98 : vector<8x128xf32>
    %cst_25 = arith.constant 0.000000e+00 : f32
    %100 = vector.broadcast %cst_25 : f32 to vector<8x128xf32>
    %101 = arith.select %96, %88, %100 : vector<8x128xi1>, vector<8x128xf32>
    %102 = arith.addf %87, %101 : vector<8x128xf32>
    %c0_26 = arith.constant 0 : index
    %c640 = arith.constant 640 : index
    %103 = vector.load %arg2[%c0_26, %c640] : memref<8x6272xf32, #tpu.memory_space<vmem>>, vector<8x128xf32>
    %c640_i32 = arith.constant 640 : i32
    %104 = vector.broadcast %c640_i32 : i32 to vector<8x128xi32>
    %105 = arith.addi %5, %104 : vector<8x128xi32>
    %106 = arith.cmpi sge, %105, %10 : vector<8x128xi32>
    %107 = arith.cmpi slt, %105, %15 : vector<8x128xi32>
    %108 = arith.andi %106, %107 : vector<8x128xi1>
    %109 = arith.cmpi sge, %105, %20 : vector<8x128xi32>
    %110 = arith.cmpi slt, %105, %25 : vector<8x128xi32>
    %111 = arith.andi %109, %110 : vector<8x128xi1>
    %cst_27 = arith.constant 0.000000e+00 : f32
    %112 = vector.broadcast %cst_27 : f32 to vector<8x128xf32>
    %113 = arith.select %108, %103, %112 : vector<8x128xi1>, vector<8x128xf32>
    %114 = arith.addf %99, %113 : vector<8x128xf32>
    %cst_28 = arith.constant 0.000000e+00 : f32
    %115 = vector.broadcast %cst_28 : f32 to vector<8x128xf32>
    %116 = arith.select %111, %103, %115 : vector<8x128xi1>, vector<8x128xf32>
    %117 = arith.addf %102, %116 : vector<8x128xf32>
    %c0_29 = arith.constant 0 : index
    %c768 = arith.constant 768 : index
    %118 = vector.load %arg2[%c0_29, %c768] : memref<8x6272xf32, #tpu.memory_space<vmem>>, vector<8x128xf32>
    %c768_i32 = arith.constant 768 : i32
    %119 = vector.broadcast %c768_i32 : i32 to vector<8x128xi32>
    %120 = arith.addi %5, %119 : vector<8x128xi32>
    %121 = arith.cmpi sge, %120, %10 : vector<8x128xi32>
    %122 = arith.cmpi slt, %120, %15 : vector<8x128xi32>
    %123 = arith.andi %121, %122 : vector<8x128xi1>
    %124 = arith.cmpi sge, %120, %20 : vector<8x128xi32>
    %125 = arith.cmpi slt, %120, %25 : vector<8x128xi32>
    %126 = arith.andi %124, %125 : vector<8x128xi1>
    %cst_30 = arith.constant 0.000000e+00 : f32
    %127 = vector.broadcast %cst_30 : f32 to vector<8x128xf32>
    %128 = arith.select %123, %118, %127 : vector<8x128xi1>, vector<8x128xf32>
    %129 = arith.addf %114, %128 : vector<8x128xf32>
    %cst_31 = arith.constant 0.000000e+00 : f32
    %130 = vector.broadcast %cst_31 : f32 to vector<8x128xf32>
    %131 = arith.select %126, %118, %130 : vector<8x128xi1>, vector<8x128xf32>
    %132 = arith.addf %117, %131 : vector<8x128xf32>
    %c0_32 = arith.constant 0 : index
    %c896 = arith.constant 896 : index
    %133 = vector.load %arg2[%c0_32, %c896] : memref<8x6272xf32, #tpu.memory_space<vmem>>, vector<8x128xf32>
    %c896_i32 = arith.constant 896 : i32
    %134 = vector.broadcast %c896_i32 : i32 to vector<8x128xi32>
    %135 = arith.addi %5, %134 : vector<8x128xi32>
    %136 = arith.cmpi sge, %135, %10 : vector<8x128xi32>
    %137 = arith.cmpi slt, %135, %15 : vector<8x128xi32>
    %138 = arith.andi %136, %137 : vector<8x128xi1>
    %139 = arith.cmpi sge, %135, %20 : vector<8x128xi32>
    %140 = arith.cmpi slt, %135, %25 : vector<8x128xi32>
    %141 = arith.andi %139, %140 : vector<8x128xi1>
    %cst_33 = arith.constant 0.000000e+00 : f32
    %142 = vector.broadcast %cst_33 : f32 to vector<8x128xf32>
    %143 = arith.select %138, %133, %142 : vector<8x128xi1>, vector<8x128xf32>
    %144 = arith.addf %129, %143 : vector<8x128xf32>
    %cst_34 = arith.constant 0.000000e+00 : f32
    %145 = vector.broadcast %cst_34 : f32 to vector<8x128xf32>
    %146 = arith.select %141, %133, %145 : vector<8x128xi1>, vector<8x128xf32>
    %147 = arith.addf %132, %146 : vector<8x128xf32>
    %c0_35 = arith.constant 0 : index
    %c1024 = arith.constant 1024 : index
    %148 = vector.load %arg2[%c0_35, %c1024] : memref<8x6272xf32, #tpu.memory_space<vmem>>, vector<8x128xf32>
    %c1024_i32 = arith.constant 1024 : i32
    %149 = vector.broadcast %c1024_i32 : i32 to vector<8x128xi32>
    %150 = arith.addi %5, %149 : vector<8x128xi32>
    %151 = arith.cmpi sge, %150, %10 : vector<8x128xi32>
    %152 = arith.cmpi slt, %150, %15 : vector<8x128xi32>
    %153 = arith.andi %151, %152 : vector<8x128xi1>
    %154 = arith.cmpi sge, %150, %20 : vector<8x128xi32>
    %155 = arith.cmpi slt, %150, %25 : vector<8x128xi32>
    %156 = arith.andi %154, %155 : vector<8x128xi1>
    %cst_36 = arith.constant 0.000000e+00 : f32
    %157 = vector.broadcast %cst_36 : f32 to vector<8x128xf32>
    %158 = arith.select %153, %148, %157 : vector<8x128xi1>, vector<8x128xf32>
    %159 = arith.addf %144, %158 : vector<8x128xf32>
    %cst_37 = arith.constant 0.000000e+00 : f32
    %160 = vector.broadcast %cst_37 : f32 to vector<8x128xf32>
    %161 = arith.select %156, %148, %160 : vector<8x128xi1>, vector<8x128xf32>
    %162 = arith.addf %147, %161 : vector<8x128xf32>
    %c0_38 = arith.constant 0 : index
    %c1152 = arith.constant 1152 : index
    %163 = vector.load %arg2[%c0_38, %c1152] : memref<8x6272xf32, #tpu.memory_space<vmem>>, vector<8x128xf32>
    %c1152_i32 = arith.constant 1152 : i32
    %164 = vector.broadcast %c1152_i32 : i32 to vector<8x128xi32>
    %165 = arith.addi %5, %164 : vector<8x128xi32>
    %166 = arith.cmpi sge, %165, %10 : vector<8x128xi32>
    %167 = arith.cmpi slt, %165, %15 : vector<8x128xi32>
    %168 = arith.andi %166, %167 : vector<8x128xi1>
    %169 = arith.cmpi sge, %165, %20 : vector<8x128xi32>
    %170 = arith.cmpi slt, %165, %25 : vector<8x128xi32>
    %171 = arith.andi %169, %170 : vector<8x128xi1>
    %cst_39 = arith.constant 0.000000e+00 : f32
    %172 = vector.broadcast %cst_39 : f32 to vector<8x128xf32>
    %173 = arith.select %168, %163, %172 : vector<8x128xi1>, vector<8x128xf32>
    %174 = arith.addf %159, %173 : vector<8x128xf32>
    %cst_40 = arith.constant 0.000000e+00 : f32
    %175 = vector.broadcast %cst_40 : f32 to vector<8x128xf32>
    %176 = arith.select %171, %163, %175 : vector<8x128xi1>, vector<8x128xf32>
    %177 = arith.addf %162, %176 : vector<8x128xf32>
    %c0_41 = arith.constant 0 : index
    %c1280 = arith.constant 1280 : index
    %178 = vector.load %arg2[%c0_41, %c1280] : memref<8x6272xf32, #tpu.memory_space<vmem>>, vector<8x128xf32>
    %c1280_i32 = arith.constant 1280 : i32
    %179 = vector.broadcast %c1280_i32 : i32 to vector<8x128xi32>
    %180 = arith.addi %5, %179 : vector<8x128xi32>
    %181 = arith.cmpi sge, %180, %10 : vector<8x128xi32>
    %182 = arith.cmpi slt, %180, %15 : vector<8x128xi32>
    %183 = arith.andi %181, %182 : vector<8x128xi1>
    %184 = arith.cmpi sge, %180, %20 : vector<8x128xi32>
    %185 = arith.cmpi slt, %180, %25 : vector<8x128xi32>
    %186 = arith.andi %184, %185 : vector<8x128xi1>
    %cst_42 = arith.constant 0.000000e+00 : f32
    %187 = vector.broadcast %cst_42 : f32 to vector<8x128xf32>
    %188 = arith.select %183, %178, %187 : vector<8x128xi1>, vector<8x128xf32>
    %189 = arith.addf %174, %188 : vector<8x128xf32>
    %cst_43 = arith.constant 0.000000e+00 : f32
    %190 = vector.broadcast %cst_43 : f32 to vector<8x128xf32>
    %191 = arith.select %186, %178, %190 : vector<8x128xi1>, vector<8x128xf32>
    %192 = arith.addf %177, %191 : vector<8x128xf32>
    %c0_44 = arith.constant 0 : index
    %c1408 = arith.constant 1408 : index
    %193 = vector.load %arg2[%c0_44, %c1408] : memref<8x6272xf32, #tpu.memory_space<vmem>>, vector<8x128xf32>
    %c1408_i32 = arith.constant 1408 : i32
    %194 = vector.broadcast %c1408_i32 : i32 to vector<8x128xi32>
    %195 = arith.addi %5, %194 : vector<8x128xi32>
    %196 = arith.cmpi sge, %195, %10 : vector<8x128xi32>
    %197 = arith.cmpi slt, %195, %15 : vector<8x128xi32>
    %198 = arith.andi %196, %197 : vector<8x128xi1>
    %199 = arith.cmpi sge, %195, %20 : vector<8x128xi32>
    %200 = arith.cmpi slt, %195, %25 : vector<8x128xi32>
    %201 = arith.andi %199, %200 : vector<8x128xi1>
    %cst_45 = arith.constant 0.000000e+00 : f32
    %202 = vector.broadcast %cst_45 : f32 to vector<8x128xf32>
    %203 = arith.select %198, %193, %202 : vector<8x128xi1>, vector<8x128xf32>
    %204 = arith.addf %189, %203 : vector<8x128xf32>
    %cst_46 = arith.constant 0.000000e+00 : f32
    %205 = vector.broadcast %cst_46 : f32 to vector<8x128xf32>
    %206 = arith.select %201, %193, %205 : vector<8x128xi1>, vector<8x128xf32>
    %207 = arith.addf %192, %206 : vector<8x128xf32>
    %c0_47 = arith.constant 0 : index
    %c1536 = arith.constant 1536 : index
    %208 = vector.load %arg2[%c0_47, %c1536] : memref<8x6272xf32, #tpu.memory_space<vmem>>, vector<8x128xf32>
    %c1536_i32 = arith.constant 1536 : i32
    %209 = vector.broadcast %c1536_i32 : i32 to vector<8x128xi32>
    %210 = arith.addi %5, %209 : vector<8x128xi32>
    %211 = arith.cmpi sge, %210, %10 : vector<8x128xi32>
    %212 = arith.cmpi slt, %210, %15 : vector<8x128xi32>
    %213 = arith.andi %211, %212 : vector<8x128xi1>
    %214 = arith.cmpi sge, %210, %20 : vector<8x128xi32>
    %215 = arith.cmpi slt, %210, %25 : vector<8x128xi32>
    %216 = arith.andi %214, %215 : vector<8x128xi1>
    %cst_48 = arith.constant 0.000000e+00 : f32
    %217 = vector.broadcast %cst_48 : f32 to vector<8x128xf32>
    %218 = arith.select %213, %208, %217 : vector<8x128xi1>, vector<8x128xf32>
    %219 = arith.addf %204, %218 : vector<8x128xf32>
    %cst_49 = arith.constant 0.000000e+00 : f32
    %220 = vector.broadcast %cst_49 : f32 to vector<8x128xf32>
    %221 = arith.select %216, %208, %220 : vector<8x128xi1>, vector<8x128xf32>
    %222 = arith.addf %207, %221 : vector<8x128xf32>
    %c0_50 = arith.constant 0 : index
    %c1664 = arith.constant 1664 : index
    %223 = vector.load %arg2[%c0_50, %c1664] : memref<8x6272xf32, #tpu.memory_space<vmem>>, vector<8x128xf32>
    %c1664_i32 = arith.constant 1664 : i32
    %224 = vector.broadcast %c1664_i32 : i32 to vector<8x128xi32>
    %225 = arith.addi %5, %224 : vector<8x128xi32>
    %226 = arith.cmpi sge, %225, %10 : vector<8x128xi32>
    %227 = arith.cmpi slt, %225, %15 : vector<8x128xi32>
    %228 = arith.andi %226, %227 : vector<8x128xi1>
    %229 = arith.cmpi sge, %225, %20 : vector<8x128xi32>
    %230 = arith.cmpi slt, %225, %25 : vector<8x128xi32>
    %231 = arith.andi %229, %230 : vector<8x128xi1>
    %cst_51 = arith.constant 0.000000e+00 : f32
    %232 = vector.broadcast %cst_51 : f32 to vector<8x128xf32>
    %233 = arith.select %228, %223, %232 : vector<8x128xi1>, vector<8x128xf32>
    %234 = arith.addf %219, %233 : vector<8x128xf32>
    %cst_52 = arith.constant 0.000000e+00 : f32
    %235 = vector.broadcast %cst_52 : f32 to vector<8x128xf32>
    %236 = arith.select %231, %223, %235 : vector<8x128xi1>, vector<8x128xf32>
    %237 = arith.addf %222, %236 : vector<8x128xf32>
    %c0_53 = arith.constant 0 : index
    %c1792 = arith.constant 1792 : index
    %238 = vector.load %arg2[%c0_53, %c1792] : memref<8x6272xf32, #tpu.memory_space<vmem>>, vector<8x128xf32>
    %c1792_i32 = arith.constant 1792 : i32
    %239 = vector.broadcast %c1792_i32 : i32 to vector<8x128xi32>
    %240 = arith.addi %5, %239 : vector<8x128xi32>
    %241 = arith.cmpi sge, %240, %10 : vector<8x128xi32>
    %242 = arith.cmpi slt, %240, %15 : vector<8x128xi32>
    %243 = arith.andi %241, %242 : vector<8x128xi1>
    %244 = arith.cmpi sge, %240, %20 : vector<8x128xi32>
    %245 = arith.cmpi slt, %240, %25 : vector<8x128xi32>
    %246 = arith.andi %244, %245 : vector<8x128xi1>
    %cst_54 = arith.constant 0.000000e+00 : f32
    %247 = vector.broadcast %cst_54 : f32 to vector<8x128xf32>
    %248 = arith.select %243, %238, %247 : vector<8x128xi1>, vector<8x128xf32>
    %249 = arith.addf %234, %248 : vector<8x128xf32>
    %cst_55 = arith.constant 0.000000e+00 : f32
    %250 = vector.broadcast %cst_55 : f32 to vector<8x128xf32>
    %251 = arith.select %246, %238, %250 : vector<8x128xi1>, vector<8x128xf32>
    %252 = arith.addf %237, %251 : vector<8x128xf32>
    %c0_56 = arith.constant 0 : index
    %c1920 = arith.constant 1920 : index
    %253 = vector.load %arg2[%c0_56, %c1920] : memref<8x6272xf32, #tpu.memory_space<vmem>>, vector<8x128xf32>
    %c1920_i32 = arith.constant 1920 : i32
    %254 = vector.broadcast %c1920_i32 : i32 to vector<8x128xi32>
    %255 = arith.addi %5, %254 : vector<8x128xi32>
    %256 = arith.cmpi sge, %255, %10 : vector<8x128xi32>
    %257 = arith.cmpi slt, %255, %15 : vector<8x128xi32>
    %258 = arith.andi %256, %257 : vector<8x128xi1>
    %259 = arith.cmpi sge, %255, %20 : vector<8x128xi32>
    %260 = arith.cmpi slt, %255, %25 : vector<8x128xi32>
    %261 = arith.andi %259, %260 : vector<8x128xi1>
    %cst_57 = arith.constant 0.000000e+00 : f32
    %262 = vector.broadcast %cst_57 : f32 to vector<8x128xf32>
    %263 = arith.select %258, %253, %262 : vector<8x128xi1>, vector<8x128xf32>
    %264 = arith.addf %249, %263 : vector<8x128xf32>
    %cst_58 = arith.constant 0.000000e+00 : f32
    %265 = vector.broadcast %cst_58 : f32 to vector<8x128xf32>
    %266 = arith.select %261, %253, %265 : vector<8x128xi1>, vector<8x128xf32>
    %267 = arith.addf %252, %266 : vector<8x128xf32>
    %c0_59 = arith.constant 0 : index
    %c2048 = arith.constant 2048 : index
    %268 = vector.load %arg2[%c0_59, %c2048] : memref<8x6272xf32, #tpu.memory_space<vmem>>, vector<8x128xf32>
    %c2048_i32 = arith.constant 2048 : i32
    %269 = vector.broadcast %c2048_i32 : i32 to vector<8x128xi32>
    %270 = arith.addi %5, %269 : vector<8x128xi32>
    %271 = arith.cmpi sge, %270, %10 : vector<8x128xi32>
    %272 = arith.cmpi slt, %270, %15 : vector<8x128xi32>
    %273 = arith.andi %271, %272 : vector<8x128xi1>
    %274 = arith.cmpi sge, %270, %20 : vector<8x128xi32>
    %275 = arith.cmpi slt, %270, %25 : vector<8x128xi32>
    %276 = arith.andi %274, %275 : vector<8x128xi1>
    %cst_60 = arith.constant 0.000000e+00 : f32
    %277 = vector.broadcast %cst_60 : f32 to vector<8x128xf32>
    %278 = arith.select %273, %268, %277 : vector<8x128xi1>, vector<8x128xf32>
    %279 = arith.addf %264, %278 : vector<8x128xf32>
    %cst_61 = arith.constant 0.000000e+00 : f32
    %280 = vector.broadcast %cst_61 : f32 to vector<8x128xf32>
    %281 = arith.select %276, %268, %280 : vector<8x128xi1>, vector<8x128xf32>
    %282 = arith.addf %267, %281 : vector<8x128xf32>
    %c0_62 = arith.constant 0 : index
    %c2176 = arith.constant 2176 : index
    %283 = vector.load %arg2[%c0_62, %c2176] : memref<8x6272xf32, #tpu.memory_space<vmem>>, vector<8x128xf32>
    %c2176_i32 = arith.constant 2176 : i32
    %284 = vector.broadcast %c2176_i32 : i32 to vector<8x128xi32>
    %285 = arith.addi %5, %284 : vector<8x128xi32>
    %286 = arith.cmpi sge, %285, %10 : vector<8x128xi32>
    %287 = arith.cmpi slt, %285, %15 : vector<8x128xi32>
    %288 = arith.andi %286, %287 : vector<8x128xi1>
    %289 = arith.cmpi sge, %285, %20 : vector<8x128xi32>
    %290 = arith.cmpi slt, %285, %25 : vector<8x128xi32>
    %291 = arith.andi %289, %290 : vector<8x128xi1>
    %cst_63 = arith.constant 0.000000e+00 : f32
    %292 = vector.broadcast %cst_63 : f32 to vector<8x128xf32>
    %293 = arith.select %288, %283, %292 : vector<8x128xi1>, vector<8x128xf32>
    %294 = arith.addf %279, %293 : vector<8x128xf32>
    %cst_64 = arith.constant 0.000000e+00 : f32
    %295 = vector.broadcast %cst_64 : f32 to vector<8x128xf32>
    %296 = arith.select %291, %283, %295 : vector<8x128xi1>, vector<8x128xf32>
    %297 = arith.addf %282, %296 : vector<8x128xf32>
    %c0_65 = arith.constant 0 : index
    %c2304 = arith.constant 2304 : index
    %298 = vector.load %arg2[%c0_65, %c2304] : memref<8x6272xf32, #tpu.memory_space<vmem>>, vector<8x128xf32>
    %c2304_i32 = arith.constant 2304 : i32
    %299 = vector.broadcast %c2304_i32 : i32 to vector<8x128xi32>
    %300 = arith.addi %5, %299 : vector<8x128xi32>
    %301 = arith.cmpi sge, %300, %10 : vector<8x128xi32>
    %302 = arith.cmpi slt, %300, %15 : vector<8x128xi32>
    %303 = arith.andi %301, %302 : vector<8x128xi1>
    %304 = arith.cmpi sge, %300, %20 : vector<8x128xi32>
    %305 = arith.cmpi slt, %300, %25 : vector<8x128xi32>
    %306 = arith.andi %304, %305 : vector<8x128xi1>
    %cst_66 = arith.constant 0.000000e+00 : f32
    %307 = vector.broadcast %cst_66 : f32 to vector<8x128xf32>
    %308 = arith.select %303, %298, %307 : vector<8x128xi1>, vector<8x128xf32>
    %309 = arith.addf %294, %308 : vector<8x128xf32>
    %cst_67 = arith.constant 0.000000e+00 : f32
    %310 = vector.broadcast %cst_67 : f32 to vector<8x128xf32>
    %311 = arith.select %306, %298, %310 : vector<8x128xi1>, vector<8x128xf32>
    %312 = arith.addf %297, %311 : vector<8x128xf32>
    %c0_68 = arith.constant 0 : index
    %c2432 = arith.constant 2432 : index
    %313 = vector.load %arg2[%c0_68, %c2432] : memref<8x6272xf32, #tpu.memory_space<vmem>>, vector<8x128xf32>
    %c2432_i32 = arith.constant 2432 : i32
    %314 = vector.broadcast %c2432_i32 : i32 to vector<8x128xi32>
    %315 = arith.addi %5, %314 : vector<8x128xi32>
    %316 = arith.cmpi sge, %315, %10 : vector<8x128xi32>
    %317 = arith.cmpi slt, %315, %15 : vector<8x128xi32>
    %318 = arith.andi %316, %317 : vector<8x128xi1>
    %319 = arith.cmpi sge, %315, %20 : vector<8x128xi32>
    %320 = arith.cmpi slt, %315, %25 : vector<8x128xi32>
    %321 = arith.andi %319, %320 : vector<8x128xi1>
    %cst_69 = arith.constant 0.000000e+00 : f32
    %322 = vector.broadcast %cst_69 : f32 to vector<8x128xf32>
    %323 = arith.select %318, %313, %322 : vector<8x128xi1>, vector<8x128xf32>
    %324 = arith.addf %309, %323 : vector<8x128xf32>
    %cst_70 = arith.constant 0.000000e+00 : f32
    %325 = vector.broadcast %cst_70 : f32 to vector<8x128xf32>
    %326 = arith.select %321, %313, %325 : vector<8x128xi1>, vector<8x128xf32>
    %327 = arith.addf %312, %326 : vector<8x128xf32>
    %c0_71 = arith.constant 0 : index
    %c2560 = arith.constant 2560 : index
    %328 = vector.load %arg2[%c0_71, %c2560] : memref<8x6272xf32, #tpu.memory_space<vmem>>, vector<8x128xf32>
    %c2560_i32 = arith.constant 2560 : i32
    %329 = vector.broadcast %c2560_i32 : i32 to vector<8x128xi32>
    %330 = arith.addi %5, %329 : vector<8x128xi32>
    %331 = arith.cmpi sge, %330, %10 : vector<8x128xi32>
    %332 = arith.cmpi slt, %330, %15 : vector<8x128xi32>
    %333 = arith.andi %331, %332 : vector<8x128xi1>
    %334 = arith.cmpi sge, %330, %20 : vector<8x128xi32>
    %335 = arith.cmpi slt, %330, %25 : vector<8x128xi32>
    %336 = arith.andi %334, %335 : vector<8x128xi1>
    %cst_72 = arith.constant 0.000000e+00 : f32
    %337 = vector.broadcast %cst_72 : f32 to vector<8x128xf32>
    %338 = arith.select %333, %328, %337 : vector<8x128xi1>, vector<8x128xf32>
    %339 = arith.addf %324, %338 : vector<8x128xf32>
    %cst_73 = arith.constant 0.000000e+00 : f32
    %340 = vector.broadcast %cst_73 : f32 to vector<8x128xf32>
    %341 = arith.select %336, %328, %340 : vector<8x128xi1>, vector<8x128xf32>
    %342 = arith.addf %327, %341 : vector<8x128xf32>
    %c0_74 = arith.constant 0 : index
    %c2688 = arith.constant 2688 : index
    %343 = vector.load %arg2[%c0_74, %c2688] : memref<8x6272xf32, #tpu.memory_space<vmem>>, vector<8x128xf32>
    %c2688_i32 = arith.constant 2688 : i32
    %344 = vector.broadcast %c2688_i32 : i32 to vector<8x128xi32>
    %345 = arith.addi %5, %344 : vector<8x128xi32>
    %346 = arith.cmpi sge, %345, %10 : vector<8x128xi32>
    %347 = arith.cmpi slt, %345, %15 : vector<8x128xi32>
    %348 = arith.andi %346, %347 : vector<8x128xi1>
    %349 = arith.cmpi sge, %345, %20 : vector<8x128xi32>
    %350 = arith.cmpi slt, %345, %25 : vector<8x128xi32>
    %351 = arith.andi %349, %350 : vector<8x128xi1>
    %cst_75 = arith.constant 0.000000e+00 : f32
    %352 = vector.broadcast %cst_75 : f32 to vector<8x128xf32>
    %353 = arith.select %348, %343, %352 : vector<8x128xi1>, vector<8x128xf32>
    %354 = arith.addf %339, %353 : vector<8x128xf32>
    %cst_76 = arith.constant 0.000000e+00 : f32
    %355 = vector.broadcast %cst_76 : f32 to vector<8x128xf32>
    %356 = arith.select %351, %343, %355 : vector<8x128xi1>, vector<8x128xf32>
    %357 = arith.addf %342, %356 : vector<8x128xf32>
    %c0_77 = arith.constant 0 : index
    %c2816 = arith.constant 2816 : index
    %358 = vector.load %arg2[%c0_77, %c2816] : memref<8x6272xf32, #tpu.memory_space<vmem>>, vector<8x128xf32>
    %c2816_i32 = arith.constant 2816 : i32
    %359 = vector.broadcast %c2816_i32 : i32 to vector<8x128xi32>
    %360 = arith.addi %5, %359 : vector<8x128xi32>
    %361 = arith.cmpi sge, %360, %10 : vector<8x128xi32>
    %362 = arith.cmpi slt, %360, %15 : vector<8x128xi32>
    %363 = arith.andi %361, %362 : vector<8x128xi1>
    %364 = arith.cmpi sge, %360, %20 : vector<8x128xi32>
    %365 = arith.cmpi slt, %360, %25 : vector<8x128xi32>
    %366 = arith.andi %364, %365 : vector<8x128xi1>
    %cst_78 = arith.constant 0.000000e+00 : f32
    %367 = vector.broadcast %cst_78 : f32 to vector<8x128xf32>
    %368 = arith.select %363, %358, %367 : vector<8x128xi1>, vector<8x128xf32>
    %369 = arith.addf %354, %368 : vector<8x128xf32>
    %cst_79 = arith.constant 0.000000e+00 : f32
    %370 = vector.broadcast %cst_79 : f32 to vector<8x128xf32>
    %371 = arith.select %366, %358, %370 : vector<8x128xi1>, vector<8x128xf32>
    %372 = arith.addf %357, %371 : vector<8x128xf32>
    %c0_80 = arith.constant 0 : index
    %c2944 = arith.constant 2944 : index
    %373 = vector.load %arg2[%c0_80, %c2944] : memref<8x6272xf32, #tpu.memory_space<vmem>>, vector<8x128xf32>
    %c2944_i32 = arith.constant 2944 : i32
    %374 = vector.broadcast %c2944_i32 : i32 to vector<8x128xi32>
    %375 = arith.addi %5, %374 : vector<8x128xi32>
    %376 = arith.cmpi sge, %375, %10 : vector<8x128xi32>
    %377 = arith.cmpi slt, %375, %15 : vector<8x128xi32>
    %378 = arith.andi %376, %377 : vector<8x128xi1>
    %379 = arith.cmpi sge, %375, %20 : vector<8x128xi32>
    %380 = arith.cmpi slt, %375, %25 : vector<8x128xi32>
    %381 = arith.andi %379, %380 : vector<8x128xi1>
    %cst_81 = arith.constant 0.000000e+00 : f32
    %382 = vector.broadcast %cst_81 : f32 to vector<8x128xf32>
    %383 = arith.select %378, %373, %382 : vector<8x128xi1>, vector<8x128xf32>
    %384 = arith.addf %369, %383 : vector<8x128xf32>
    %cst_82 = arith.constant 0.000000e+00 : f32
    %385 = vector.broadcast %cst_82 : f32 to vector<8x128xf32>
    %386 = arith.select %381, %373, %385 : vector<8x128xi1>, vector<8x128xf32>
    %387 = arith.addf %372, %386 : vector<8x128xf32>
    %c0_83 = arith.constant 0 : index
    %c3072 = arith.constant 3072 : index
    %388 = vector.load %arg2[%c0_83, %c3072] : memref<8x6272xf32, #tpu.memory_space<vmem>>, vector<8x128xf32>
    %c3072_i32 = arith.constant 3072 : i32
    %389 = vector.broadcast %c3072_i32 : i32 to vector<8x128xi32>
    %390 = arith.addi %5, %389 : vector<8x128xi32>
    %391 = arith.cmpi sge, %390, %10 : vector<8x128xi32>
    %392 = arith.cmpi slt, %390, %15 : vector<8x128xi32>
    %393 = arith.andi %391, %392 : vector<8x128xi1>
    %394 = arith.cmpi sge, %390, %20 : vector<8x128xi32>
    %395 = arith.cmpi slt, %390, %25 : vector<8x128xi32>
    %396 = arith.andi %394, %395 : vector<8x128xi1>
    %cst_84 = arith.constant 0.000000e+00 : f32
    %397 = vector.broadcast %cst_84 : f32 to vector<8x128xf32>
    %398 = arith.select %393, %388, %397 : vector<8x128xi1>, vector<8x128xf32>
    %399 = arith.addf %384, %398 : vector<8x128xf32>
    %cst_85 = arith.constant 0.000000e+00 : f32
    %400 = vector.broadcast %cst_85 : f32 to vector<8x128xf32>
    %401 = arith.select %396, %388, %400 : vector<8x128xi1>, vector<8x128xf32>
    %402 = arith.addf %387, %401 : vector<8x128xf32>
    %c0_86 = arith.constant 0 : index
    %c3200 = arith.constant 3200 : index
    %403 = vector.load %arg2[%c0_86, %c3200] : memref<8x6272xf32, #tpu.memory_space<vmem>>, vector<8x128xf32>
    %c3200_i32 = arith.constant 3200 : i32
    %404 = vector.broadcast %c3200_i32 : i32 to vector<8x128xi32>
    %405 = arith.addi %5, %404 : vector<8x128xi32>
    %406 = arith.cmpi sge, %405, %10 : vector<8x128xi32>
    %407 = arith.cmpi slt, %405, %15 : vector<8x128xi32>
    %408 = arith.andi %406, %407 : vector<8x128xi1>
    %409 = arith.cmpi sge, %405, %20 : vector<8x128xi32>
    %410 = arith.cmpi slt, %405, %25 : vector<8x128xi32>
    %411 = arith.andi %409, %410 : vector<8x128xi1>
    %cst_87 = arith.constant 0.000000e+00 : f32
    %412 = vector.broadcast %cst_87 : f32 to vector<8x128xf32>
    %413 = arith.select %408, %403, %412 : vector<8x128xi1>, vector<8x128xf32>
    %414 = arith.addf %399, %413 : vector<8x128xf32>
    %cst_88 = arith.constant 0.000000e+00 : f32
    %415 = vector.broadcast %cst_88 : f32 to vector<8x128xf32>
    %416 = arith.select %411, %403, %415 : vector<8x128xi1>, vector<8x128xf32>
    %417 = arith.addf %402, %416 : vector<8x128xf32>
    %c0_89 = arith.constant 0 : index
    %c3328 = arith.constant 3328 : index
    %418 = vector.load %arg2[%c0_89, %c3328] : memref<8x6272xf32, #tpu.memory_space<vmem>>, vector<8x128xf32>
    %c3328_i32 = arith.constant 3328 : i32
    %419 = vector.broadcast %c3328_i32 : i32 to vector<8x128xi32>
    %420 = arith.addi %5, %419 : vector<8x128xi32>
    %421 = arith.cmpi sge, %420, %10 : vector<8x128xi32>
    %422 = arith.cmpi slt, %420, %15 : vector<8x128xi32>
    %423 = arith.andi %421, %422 : vector<8x128xi1>
    %424 = arith.cmpi sge, %420, %20 : vector<8x128xi32>
    %425 = arith.cmpi slt, %420, %25 : vector<8x128xi32>
    %426 = arith.andi %424, %425 : vector<8x128xi1>
    %cst_90 = arith.constant 0.000000e+00 : f32
    %427 = vector.broadcast %cst_90 : f32 to vector<8x128xf32>
    %428 = arith.select %423, %418, %427 : vector<8x128xi1>, vector<8x128xf32>
    %429 = arith.addf %414, %428 : vector<8x128xf32>
    %cst_91 = arith.constant 0.000000e+00 : f32
    %430 = vector.broadcast %cst_91 : f32 to vector<8x128xf32>
    %431 = arith.select %426, %418, %430 : vector<8x128xi1>, vector<8x128xf32>
    %432 = arith.addf %417, %431 : vector<8x128xf32>
    %c0_92 = arith.constant 0 : index
    %c3456 = arith.constant 3456 : index
    %433 = vector.load %arg2[%c0_92, %c3456] : memref<8x6272xf32, #tpu.memory_space<vmem>>, vector<8x128xf32>
    %c3456_i32 = arith.constant 3456 : i32
    %434 = vector.broadcast %c3456_i32 : i32 to vector<8x128xi32>
    %435 = arith.addi %5, %434 : vector<8x128xi32>
    %436 = arith.cmpi sge, %435, %10 : vector<8x128xi32>
    %437 = arith.cmpi slt, %435, %15 : vector<8x128xi32>
    %438 = arith.andi %436, %437 : vector<8x128xi1>
    %439 = arith.cmpi sge, %435, %20 : vector<8x128xi32>
    %440 = arith.cmpi slt, %435, %25 : vector<8x128xi32>
    %441 = arith.andi %439, %440 : vector<8x128xi1>
    %cst_93 = arith.constant 0.000000e+00 : f32
    %442 = vector.broadcast %cst_93 : f32 to vector<8x128xf32>
    %443 = arith.select %438, %433, %442 : vector<8x128xi1>, vector<8x128xf32>
    %444 = arith.addf %429, %443 : vector<8x128xf32>
    %cst_94 = arith.constant 0.000000e+00 : f32
    %445 = vector.broadcast %cst_94 : f32 to vector<8x128xf32>
    %446 = arith.select %441, %433, %445 : vector<8x128xi1>, vector<8x128xf32>
    %447 = arith.addf %432, %446 : vector<8x128xf32>
    %c0_95 = arith.constant 0 : index
    %c3584 = arith.constant 3584 : index
    %448 = vector.load %arg2[%c0_95, %c3584] : memref<8x6272xf32, #tpu.memory_space<vmem>>, vector<8x128xf32>
    %c3584_i32 = arith.constant 3584 : i32
    %449 = vector.broadcast %c3584_i32 : i32 to vector<8x128xi32>
    %450 = arith.addi %5, %449 : vector<8x128xi32>
    %451 = arith.cmpi sge, %450, %10 : vector<8x128xi32>
    %452 = arith.cmpi slt, %450, %15 : vector<8x128xi32>
    %453 = arith.andi %451, %452 : vector<8x128xi1>
    %454 = arith.cmpi sge, %450, %20 : vector<8x128xi32>
    %455 = arith.cmpi slt, %450, %25 : vector<8x128xi32>
    %456 = arith.andi %454, %455 : vector<8x128xi1>
    %cst_96 = arith.constant 0.000000e+00 : f32
    %457 = vector.broadcast %cst_96 : f32 to vector<8x128xf32>
    %458 = arith.select %453, %448, %457 : vector<8x128xi1>, vector<8x128xf32>
    %459 = arith.addf %444, %458 : vector<8x128xf32>
    %cst_97 = arith.constant 0.000000e+00 : f32
    %460 = vector.broadcast %cst_97 : f32 to vector<8x128xf32>
    %461 = arith.select %456, %448, %460 : vector<8x128xi1>, vector<8x128xf32>
    %462 = arith.addf %447, %461 : vector<8x128xf32>
    %c0_98 = arith.constant 0 : index
    %c3712 = arith.constant 3712 : index
    %463 = vector.load %arg2[%c0_98, %c3712] : memref<8x6272xf32, #tpu.memory_space<vmem>>, vector<8x128xf32>
    %c3712_i32 = arith.constant 3712 : i32
    %464 = vector.broadcast %c3712_i32 : i32 to vector<8x128xi32>
    %465 = arith.addi %5, %464 : vector<8x128xi32>
    %466 = arith.cmpi sge, %465, %10 : vector<8x128xi32>
    %467 = arith.cmpi slt, %465, %15 : vector<8x128xi32>
    %468 = arith.andi %466, %467 : vector<8x128xi1>
    %469 = arith.cmpi sge, %465, %20 : vector<8x128xi32>
    %470 = arith.cmpi slt, %465, %25 : vector<8x128xi32>
    %471 = arith.andi %469, %470 : vector<8x128xi1>
    %cst_99 = arith.constant 0.000000e+00 : f32
    %472 = vector.broadcast %cst_99 : f32 to vector<8x128xf32>
    %473 = arith.select %468, %463, %472 : vector<8x128xi1>, vector<8x128xf32>
    %474 = arith.addf %459, %473 : vector<8x128xf32>
    %cst_100 = arith.constant 0.000000e+00 : f32
    %475 = vector.broadcast %cst_100 : f32 to vector<8x128xf32>
    %476 = arith.select %471, %463, %475 : vector<8x128xi1>, vector<8x128xf32>
    %477 = arith.addf %462, %476 : vector<8x128xf32>
    %c0_101 = arith.constant 0 : index
    %c3840 = arith.constant 3840 : index
    %478 = vector.load %arg2[%c0_101, %c3840] : memref<8x6272xf32, #tpu.memory_space<vmem>>, vector<8x128xf32>
    %c3840_i32 = arith.constant 3840 : i32
    %479 = vector.broadcast %c3840_i32 : i32 to vector<8x128xi32>
    %480 = arith.addi %5, %479 : vector<8x128xi32>
    %481 = arith.cmpi sge, %480, %10 : vector<8x128xi32>
    %482 = arith.cmpi slt, %480, %15 : vector<8x128xi32>
    %483 = arith.andi %481, %482 : vector<8x128xi1>
    %484 = arith.cmpi sge, %480, %20 : vector<8x128xi32>
    %485 = arith.cmpi slt, %480, %25 : vector<8x128xi32>
    %486 = arith.andi %484, %485 : vector<8x128xi1>
    %cst_102 = arith.constant 0.000000e+00 : f32
    %487 = vector.broadcast %cst_102 : f32 to vector<8x128xf32>
    %488 = arith.select %483, %478, %487 : vector<8x128xi1>, vector<8x128xf32>
    %489 = arith.addf %474, %488 : vector<8x128xf32>
    %cst_103 = arith.constant 0.000000e+00 : f32
    %490 = vector.broadcast %cst_103 : f32 to vector<8x128xf32>
    %491 = arith.select %486, %478, %490 : vector<8x128xi1>, vector<8x128xf32>
    %492 = arith.addf %477, %491 : vector<8x128xf32>
    %c0_104 = arith.constant 0 : index
    %c3968 = arith.constant 3968 : index
    %493 = vector.load %arg2[%c0_104, %c3968] : memref<8x6272xf32, #tpu.memory_space<vmem>>, vector<8x128xf32>
    %c3968_i32 = arith.constant 3968 : i32
    %494 = vector.broadcast %c3968_i32 : i32 to vector<8x128xi32>
    %495 = arith.addi %5, %494 : vector<8x128xi32>
    %496 = arith.cmpi sge, %495, %10 : vector<8x128xi32>
    %497 = arith.cmpi slt, %495, %15 : vector<8x128xi32>
    %498 = arith.andi %496, %497 : vector<8x128xi1>
    %499 = arith.cmpi sge, %495, %20 : vector<8x128xi32>
    %500 = arith.cmpi slt, %495, %25 : vector<8x128xi32>
    %501 = arith.andi %499, %500 : vector<8x128xi1>
    %cst_105 = arith.constant 0.000000e+00 : f32
    %502 = vector.broadcast %cst_105 : f32 to vector<8x128xf32>
    %503 = arith.select %498, %493, %502 : vector<8x128xi1>, vector<8x128xf32>
    %504 = arith.addf %489, %503 : vector<8x128xf32>
    %cst_106 = arith.constant 0.000000e+00 : f32
    %505 = vector.broadcast %cst_106 : f32 to vector<8x128xf32>
    %506 = arith.select %501, %493, %505 : vector<8x128xi1>, vector<8x128xf32>
    %507 = arith.addf %492, %506 : vector<8x128xf32>
    %c0_107 = arith.constant 0 : index
    %c4096 = arith.constant 4096 : index
    %508 = vector.load %arg2[%c0_107, %c4096] : memref<8x6272xf32, #tpu.memory_space<vmem>>, vector<8x128xf32>
    %c4096_i32 = arith.constant 4096 : i32
    %509 = vector.broadcast %c4096_i32 : i32 to vector<8x128xi32>
    %510 = arith.addi %5, %509 : vector<8x128xi32>
    %511 = arith.cmpi sge, %510, %10 : vector<8x128xi32>
    %512 = arith.cmpi slt, %510, %15 : vector<8x128xi32>
    %513 = arith.andi %511, %512 : vector<8x128xi1>
    %514 = arith.cmpi sge, %510, %20 : vector<8x128xi32>
    %515 = arith.cmpi slt, %510, %25 : vector<8x128xi32>
    %516 = arith.andi %514, %515 : vector<8x128xi1>
    %cst_108 = arith.constant 0.000000e+00 : f32
    %517 = vector.broadcast %cst_108 : f32 to vector<8x128xf32>
    %518 = arith.select %513, %508, %517 : vector<8x128xi1>, vector<8x128xf32>
    %519 = arith.addf %504, %518 : vector<8x128xf32>
    %cst_109 = arith.constant 0.000000e+00 : f32
    %520 = vector.broadcast %cst_109 : f32 to vector<8x128xf32>
    %521 = arith.select %516, %508, %520 : vector<8x128xi1>, vector<8x128xf32>
    %522 = arith.addf %507, %521 : vector<8x128xf32>
    %c0_110 = arith.constant 0 : index
    %c4224 = arith.constant 4224 : index
    %523 = vector.load %arg2[%c0_110, %c4224] : memref<8x6272xf32, #tpu.memory_space<vmem>>, vector<8x128xf32>
    %c4224_i32 = arith.constant 4224 : i32
    %524 = vector.broadcast %c4224_i32 : i32 to vector<8x128xi32>
    %525 = arith.addi %5, %524 : vector<8x128xi32>
    %526 = arith.cmpi sge, %525, %10 : vector<8x128xi32>
    %527 = arith.cmpi slt, %525, %15 : vector<8x128xi32>
    %528 = arith.andi %526, %527 : vector<8x128xi1>
    %529 = arith.cmpi sge, %525, %20 : vector<8x128xi32>
    %530 = arith.cmpi slt, %525, %25 : vector<8x128xi32>
    %531 = arith.andi %529, %530 : vector<8x128xi1>
    %cst_111 = arith.constant 0.000000e+00 : f32
    %532 = vector.broadcast %cst_111 : f32 to vector<8x128xf32>
    %533 = arith.select %528, %523, %532 : vector<8x128xi1>, vector<8x128xf32>
    %534 = arith.addf %519, %533 : vector<8x128xf32>
    %cst_112 = arith.constant 0.000000e+00 : f32
    %535 = vector.broadcast %cst_112 : f32 to vector<8x128xf32>
    %536 = arith.select %531, %523, %535 : vector<8x128xi1>, vector<8x128xf32>
    %537 = arith.addf %522, %536 : vector<8x128xf32>
    %c0_113 = arith.constant 0 : index
    %c4352 = arith.constant 4352 : index
    %538 = vector.load %arg2[%c0_113, %c4352] : memref<8x6272xf32, #tpu.memory_space<vmem>>, vector<8x128xf32>
    %c4352_i32 = arith.constant 4352 : i32
    %539 = vector.broadcast %c4352_i32 : i32 to vector<8x128xi32>
    %540 = arith.addi %5, %539 : vector<8x128xi32>
    %541 = arith.cmpi sge, %540, %10 : vector<8x128xi32>
    %542 = arith.cmpi slt, %540, %15 : vector<8x128xi32>
    %543 = arith.andi %541, %542 : vector<8x128xi1>
    %544 = arith.cmpi sge, %540, %20 : vector<8x128xi32>
    %545 = arith.cmpi slt, %540, %25 : vector<8x128xi32>
    %546 = arith.andi %544, %545 : vector<8x128xi1>
    %cst_114 = arith.constant 0.000000e+00 : f32
    %547 = vector.broadcast %cst_114 : f32 to vector<8x128xf32>
    %548 = arith.select %543, %538, %547 : vector<8x128xi1>, vector<8x128xf32>
    %549 = arith.addf %534, %548 : vector<8x128xf32>
    %cst_115 = arith.constant 0.000000e+00 : f32
    %550 = vector.broadcast %cst_115 : f32 to vector<8x128xf32>
    %551 = arith.select %546, %538, %550 : vector<8x128xi1>, vector<8x128xf32>
    %552 = arith.addf %537, %551 : vector<8x128xf32>
    %c0_116 = arith.constant 0 : index
    %c4480 = arith.constant 4480 : index
    %553 = vector.load %arg2[%c0_116, %c4480] : memref<8x6272xf32, #tpu.memory_space<vmem>>, vector<8x128xf32>
    %c4480_i32 = arith.constant 4480 : i32
    %554 = vector.broadcast %c4480_i32 : i32 to vector<8x128xi32>
    %555 = arith.addi %5, %554 : vector<8x128xi32>
    %556 = arith.cmpi sge, %555, %10 : vector<8x128xi32>
    %557 = arith.cmpi slt, %555, %15 : vector<8x128xi32>
    %558 = arith.andi %556, %557 : vector<8x128xi1>
    %559 = arith.cmpi sge, %555, %20 : vector<8x128xi32>
    %560 = arith.cmpi slt, %555, %25 : vector<8x128xi32>
    %561 = arith.andi %559, %560 : vector<8x128xi1>
    %cst_117 = arith.constant 0.000000e+00 : f32
    %562 = vector.broadcast %cst_117 : f32 to vector<8x128xf32>
    %563 = arith.select %558, %553, %562 : vector<8x128xi1>, vector<8x128xf32>
    %564 = arith.addf %549, %563 : vector<8x128xf32>
    %cst_118 = arith.constant 0.000000e+00 : f32
    %565 = vector.broadcast %cst_118 : f32 to vector<8x128xf32>
    %566 = arith.select %561, %553, %565 : vector<8x128xi1>, vector<8x128xf32>
    %567 = arith.addf %552, %566 : vector<8x128xf32>
    %c0_119 = arith.constant 0 : index
    %c4608 = arith.constant 4608 : index
    %568 = vector.load %arg2[%c0_119, %c4608] : memref<8x6272xf32, #tpu.memory_space<vmem>>, vector<8x128xf32>
    %c4608_i32 = arith.constant 4608 : i32
    %569 = vector.broadcast %c4608_i32 : i32 to vector<8x128xi32>
    %570 = arith.addi %5, %569 : vector<8x128xi32>
    %571 = arith.cmpi sge, %570, %10 : vector<8x128xi32>
    %572 = arith.cmpi slt, %570, %15 : vector<8x128xi32>
    %573 = arith.andi %571, %572 : vector<8x128xi1>
    %574 = arith.cmpi sge, %570, %20 : vector<8x128xi32>
    %575 = arith.cmpi slt, %570, %25 : vector<8x128xi32>
    %576 = arith.andi %574, %575 : vector<8x128xi1>
    %cst_120 = arith.constant 0.000000e+00 : f32
    %577 = vector.broadcast %cst_120 : f32 to vector<8x128xf32>
    %578 = arith.select %573, %568, %577 : vector<8x128xi1>, vector<8x128xf32>
    %579 = arith.addf %564, %578 : vector<8x128xf32>
    %cst_121 = arith.constant 0.000000e+00 : f32
    %580 = vector.broadcast %cst_121 : f32 to vector<8x128xf32>
    %581 = arith.select %576, %568, %580 : vector<8x128xi1>, vector<8x128xf32>
    %582 = arith.addf %567, %581 : vector<8x128xf32>
    %c0_122 = arith.constant 0 : index
    %c4736 = arith.constant 4736 : index
    %583 = vector.load %arg2[%c0_122, %c4736] : memref<8x6272xf32, #tpu.memory_space<vmem>>, vector<8x128xf32>
    %c4736_i32 = arith.constant 4736 : i32
    %584 = vector.broadcast %c4736_i32 : i32 to vector<8x128xi32>
    %585 = arith.addi %5, %584 : vector<8x128xi32>
    %586 = arith.cmpi sge, %585, %10 : vector<8x128xi32>
    %587 = arith.cmpi slt, %585, %15 : vector<8x128xi32>
    %588 = arith.andi %586, %587 : vector<8x128xi1>
    %589 = arith.cmpi sge, %585, %20 : vector<8x128xi32>
    %590 = arith.cmpi slt, %585, %25 : vector<8x128xi32>
    %591 = arith.andi %589, %590 : vector<8x128xi1>
    %cst_123 = arith.constant 0.000000e+00 : f32
    %592 = vector.broadcast %cst_123 : f32 to vector<8x128xf32>
    %593 = arith.select %588, %583, %592 : vector<8x128xi1>, vector<8x128xf32>
    %594 = arith.addf %579, %593 : vector<8x128xf32>
    %cst_124 = arith.constant 0.000000e+00 : f32
    %595 = vector.broadcast %cst_124 : f32 to vector<8x128xf32>
    %596 = arith.select %591, %583, %595 : vector<8x128xi1>, vector<8x128xf32>
    %597 = arith.addf %582, %596 : vector<8x128xf32>
    %c0_125 = arith.constant 0 : index
    %c4864 = arith.constant 4864 : index
    %598 = vector.load %arg2[%c0_125, %c4864] : memref<8x6272xf32, #tpu.memory_space<vmem>>, vector<8x128xf32>
    %c4864_i32 = arith.constant 4864 : i32
    %599 = vector.broadcast %c4864_i32 : i32 to vector<8x128xi32>
    %600 = arith.addi %5, %599 : vector<8x128xi32>
    %601 = arith.cmpi sge, %600, %10 : vector<8x128xi32>
    %602 = arith.cmpi slt, %600, %15 : vector<8x128xi32>
    %603 = arith.andi %601, %602 : vector<8x128xi1>
    %604 = arith.cmpi sge, %600, %20 : vector<8x128xi32>
    %605 = arith.cmpi slt, %600, %25 : vector<8x128xi32>
    %606 = arith.andi %604, %605 : vector<8x128xi1>
    %cst_126 = arith.constant 0.000000e+00 : f32
    %607 = vector.broadcast %cst_126 : f32 to vector<8x128xf32>
    %608 = arith.select %603, %598, %607 : vector<8x128xi1>, vector<8x128xf32>
    %609 = arith.addf %594, %608 : vector<8x128xf32>
    %cst_127 = arith.constant 0.000000e+00 : f32
    %610 = vector.broadcast %cst_127 : f32 to vector<8x128xf32>
    %611 = arith.select %606, %598, %610 : vector<8x128xi1>, vector<8x128xf32>
    %612 = arith.addf %597, %611 : vector<8x128xf32>
    %c0_128 = arith.constant 0 : index
    %c4992 = arith.constant 4992 : index
    %613 = vector.load %arg2[%c0_128, %c4992] : memref<8x6272xf32, #tpu.memory_space<vmem>>, vector<8x128xf32>
    %c4992_i32 = arith.constant 4992 : i32
    %614 = vector.broadcast %c4992_i32 : i32 to vector<8x128xi32>
    %615 = arith.addi %5, %614 : vector<8x128xi32>
    %616 = arith.cmpi sge, %615, %10 : vector<8x128xi32>
    %617 = arith.cmpi slt, %615, %15 : vector<8x128xi32>
    %618 = arith.andi %616, %617 : vector<8x128xi1>
    %619 = arith.cmpi sge, %615, %20 : vector<8x128xi32>
    %620 = arith.cmpi slt, %615, %25 : vector<8x128xi32>
    %621 = arith.andi %619, %620 : vector<8x128xi1>
    %cst_129 = arith.constant 0.000000e+00 : f32
    %622 = vector.broadcast %cst_129 : f32 to vector<8x128xf32>
    %623 = arith.select %618, %613, %622 : vector<8x128xi1>, vector<8x128xf32>
    %624 = arith.addf %609, %623 : vector<8x128xf32>
    %cst_130 = arith.constant 0.000000e+00 : f32
    %625 = vector.broadcast %cst_130 : f32 to vector<8x128xf32>
    %626 = arith.select %621, %613, %625 : vector<8x128xi1>, vector<8x128xf32>
    %627 = arith.addf %612, %626 : vector<8x128xf32>
    %c0_131 = arith.constant 0 : index
    %c5120 = arith.constant 5120 : index
    %628 = vector.load %arg2[%c0_131, %c5120] : memref<8x6272xf32, #tpu.memory_space<vmem>>, vector<8x128xf32>
    %c5120_i32 = arith.constant 5120 : i32
    %629 = vector.broadcast %c5120_i32 : i32 to vector<8x128xi32>
    %630 = arith.addi %5, %629 : vector<8x128xi32>
    %631 = arith.cmpi sge, %630, %10 : vector<8x128xi32>
    %632 = arith.cmpi slt, %630, %15 : vector<8x128xi32>
    %633 = arith.andi %631, %632 : vector<8x128xi1>
    %634 = arith.cmpi sge, %630, %20 : vector<8x128xi32>
    %635 = arith.cmpi slt, %630, %25 : vector<8x128xi32>
    %636 = arith.andi %634, %635 : vector<8x128xi1>
    %cst_132 = arith.constant 0.000000e+00 : f32
    %637 = vector.broadcast %cst_132 : f32 to vector<8x128xf32>
    %638 = arith.select %633, %628, %637 : vector<8x128xi1>, vector<8x128xf32>
    %639 = arith.addf %624, %638 : vector<8x128xf32>
    %cst_133 = arith.constant 0.000000e+00 : f32
    %640 = vector.broadcast %cst_133 : f32 to vector<8x128xf32>
    %641 = arith.select %636, %628, %640 : vector<8x128xi1>, vector<8x128xf32>
    %642 = arith.addf %627, %641 : vector<8x128xf32>
    %c0_134 = arith.constant 0 : index
    %c5248 = arith.constant 5248 : index
    %643 = vector.load %arg2[%c0_134, %c5248] : memref<8x6272xf32, #tpu.memory_space<vmem>>, vector<8x128xf32>
    %c5248_i32 = arith.constant 5248 : i32
    %644 = vector.broadcast %c5248_i32 : i32 to vector<8x128xi32>
    %645 = arith.addi %5, %644 : vector<8x128xi32>
    %646 = arith.cmpi sge, %645, %10 : vector<8x128xi32>
    %647 = arith.cmpi slt, %645, %15 : vector<8x128xi32>
    %648 = arith.andi %646, %647 : vector<8x128xi1>
    %649 = arith.cmpi sge, %645, %20 : vector<8x128xi32>
    %650 = arith.cmpi slt, %645, %25 : vector<8x128xi32>
    %651 = arith.andi %649, %650 : vector<8x128xi1>
    %cst_135 = arith.constant 0.000000e+00 : f32
    %652 = vector.broadcast %cst_135 : f32 to vector<8x128xf32>
    %653 = arith.select %648, %643, %652 : vector<8x128xi1>, vector<8x128xf32>
    %654 = arith.addf %639, %653 : vector<8x128xf32>
    %cst_136 = arith.constant 0.000000e+00 : f32
    %655 = vector.broadcast %cst_136 : f32 to vector<8x128xf32>
    %656 = arith.select %651, %643, %655 : vector<8x128xi1>, vector<8x128xf32>
    %657 = arith.addf %642, %656 : vector<8x128xf32>
    %c0_137 = arith.constant 0 : index
    %c5376 = arith.constant 5376 : index
    %658 = vector.load %arg2[%c0_137, %c5376] : memref<8x6272xf32, #tpu.memory_space<vmem>>, vector<8x128xf32>
    %c5376_i32 = arith.constant 5376 : i32
    %659 = vector.broadcast %c5376_i32 : i32 to vector<8x128xi32>
    %660 = arith.addi %5, %659 : vector<8x128xi32>
    %661 = arith.cmpi sge, %660, %10 : vector<8x128xi32>
    %662 = arith.cmpi slt, %660, %15 : vector<8x128xi32>
    %663 = arith.andi %661, %662 : vector<8x128xi1>
    %664 = arith.cmpi sge, %660, %20 : vector<8x128xi32>
    %665 = arith.cmpi slt, %660, %25 : vector<8x128xi32>
    %666 = arith.andi %664, %665 : vector<8x128xi1>
    %cst_138 = arith.constant 0.000000e+00 : f32
    %667 = vector.broadcast %cst_138 : f32 to vector<8x128xf32>
    %668 = arith.select %663, %658, %667 : vector<8x128xi1>, vector<8x128xf32>
    %669 = arith.addf %654, %668 : vector<8x128xf32>
    %cst_139 = arith.constant 0.000000e+00 : f32
    %670 = vector.broadcast %cst_139 : f32 to vector<8x128xf32>
    %671 = arith.select %666, %658, %670 : vector<8x128xi1>, vector<8x128xf32>
    %672 = arith.addf %657, %671 : vector<8x128xf32>
    %c0_140 = arith.constant 0 : index
    %c5504 = arith.constant 5504 : index
    %673 = vector.load %arg2[%c0_140, %c5504] : memref<8x6272xf32, #tpu.memory_space<vmem>>, vector<8x128xf32>
    %c5504_i32 = arith.constant 5504 : i32
    %674 = vector.broadcast %c5504_i32 : i32 to vector<8x128xi32>
    %675 = arith.addi %5, %674 : vector<8x128xi32>
    %676 = arith.cmpi sge, %675, %10 : vector<8x128xi32>
    %677 = arith.cmpi slt, %675, %15 : vector<8x128xi32>
    %678 = arith.andi %676, %677 : vector<8x128xi1>
    %679 = arith.cmpi sge, %675, %20 : vector<8x128xi32>
    %680 = arith.cmpi slt, %675, %25 : vector<8x128xi32>
    %681 = arith.andi %679, %680 : vector<8x128xi1>
    %cst_141 = arith.constant 0.000000e+00 : f32
    %682 = vector.broadcast %cst_141 : f32 to vector<8x128xf32>
    %683 = arith.select %678, %673, %682 : vector<8x128xi1>, vector<8x128xf32>
    %684 = arith.addf %669, %683 : vector<8x128xf32>
    %cst_142 = arith.constant 0.000000e+00 : f32
    %685 = vector.broadcast %cst_142 : f32 to vector<8x128xf32>
    %686 = arith.select %681, %673, %685 : vector<8x128xi1>, vector<8x128xf32>
    %687 = arith.addf %672, %686 : vector<8x128xf32>
    %c0_143 = arith.constant 0 : index
    %c5632 = arith.constant 5632 : index
    %688 = vector.load %arg2[%c0_143, %c5632] : memref<8x6272xf32, #tpu.memory_space<vmem>>, vector<8x128xf32>
    %c5632_i32 = arith.constant 5632 : i32
    %689 = vector.broadcast %c5632_i32 : i32 to vector<8x128xi32>
    %690 = arith.addi %5, %689 : vector<8x128xi32>
    %691 = arith.cmpi sge, %690, %10 : vector<8x128xi32>
    %692 = arith.cmpi slt, %690, %15 : vector<8x128xi32>
    %693 = arith.andi %691, %692 : vector<8x128xi1>
    %694 = arith.cmpi sge, %690, %20 : vector<8x128xi32>
    %695 = arith.cmpi slt, %690, %25 : vector<8x128xi32>
    %696 = arith.andi %694, %695 : vector<8x128xi1>
    %cst_144 = arith.constant 0.000000e+00 : f32
    %697 = vector.broadcast %cst_144 : f32 to vector<8x128xf32>
    %698 = arith.select %693, %688, %697 : vector<8x128xi1>, vector<8x128xf32>
    %699 = arith.addf %684, %698 : vector<8x128xf32>
    %cst_145 = arith.constant 0.000000e+00 : f32
    %700 = vector.broadcast %cst_145 : f32 to vector<8x128xf32>
    %701 = arith.select %696, %688, %700 : vector<8x128xi1>, vector<8x128xf32>
    %702 = arith.addf %687, %701 : vector<8x128xf32>
    %c0_146 = arith.constant 0 : index
    %c5760 = arith.constant 5760 : index
    %703 = vector.load %arg2[%c0_146, %c5760] : memref<8x6272xf32, #tpu.memory_space<vmem>>, vector<8x128xf32>
    %c5760_i32 = arith.constant 5760 : i32
    %704 = vector.broadcast %c5760_i32 : i32 to vector<8x128xi32>
    %705 = arith.addi %5, %704 : vector<8x128xi32>
    %706 = arith.cmpi sge, %705, %10 : vector<8x128xi32>
    %707 = arith.cmpi slt, %705, %15 : vector<8x128xi32>
    %708 = arith.andi %706, %707 : vector<8x128xi1>
    %709 = arith.cmpi sge, %705, %20 : vector<8x128xi32>
    %710 = arith.cmpi slt, %705, %25 : vector<8x128xi32>
    %711 = arith.andi %709, %710 : vector<8x128xi1>
    %cst_147 = arith.constant 0.000000e+00 : f32
    %712 = vector.broadcast %cst_147 : f32 to vector<8x128xf32>
    %713 = arith.select %708, %703, %712 : vector<8x128xi1>, vector<8x128xf32>
    %714 = arith.addf %699, %713 : vector<8x128xf32>
    %cst_148 = arith.constant 0.000000e+00 : f32
    %715 = vector.broadcast %cst_148 : f32 to vector<8x128xf32>
    %716 = arith.select %711, %703, %715 : vector<8x128xi1>, vector<8x128xf32>
    %717 = arith.addf %702, %716 : vector<8x128xf32>
    %c0_149 = arith.constant 0 : index
    %c5888 = arith.constant 5888 : index
    %718 = vector.load %arg2[%c0_149, %c5888] : memref<8x6272xf32, #tpu.memory_space<vmem>>, vector<8x128xf32>
    %c5888_i32 = arith.constant 5888 : i32
    %719 = vector.broadcast %c5888_i32 : i32 to vector<8x128xi32>
    %720 = arith.addi %5, %719 : vector<8x128xi32>
    %721 = arith.cmpi sge, %720, %10 : vector<8x128xi32>
    %722 = arith.cmpi slt, %720, %15 : vector<8x128xi32>
    %723 = arith.andi %721, %722 : vector<8x128xi1>
    %724 = arith.cmpi sge, %720, %20 : vector<8x128xi32>
    %725 = arith.cmpi slt, %720, %25 : vector<8x128xi32>
    %726 = arith.andi %724, %725 : vector<8x128xi1>
    %cst_150 = arith.constant 0.000000e+00 : f32
    %727 = vector.broadcast %cst_150 : f32 to vector<8x128xf32>
    %728 = arith.select %723, %718, %727 : vector<8x128xi1>, vector<8x128xf32>
    %729 = arith.addf %714, %728 : vector<8x128xf32>
    %cst_151 = arith.constant 0.000000e+00 : f32
    %730 = vector.broadcast %cst_151 : f32 to vector<8x128xf32>
    %731 = arith.select %726, %718, %730 : vector<8x128xi1>, vector<8x128xf32>
    %732 = arith.addf %717, %731 : vector<8x128xf32>
    %c0_152 = arith.constant 0 : index
    %c6016 = arith.constant 6016 : index
    %733 = vector.load %arg2[%c0_152, %c6016] : memref<8x6272xf32, #tpu.memory_space<vmem>>, vector<8x128xf32>
    %c6016_i32 = arith.constant 6016 : i32
    %734 = vector.broadcast %c6016_i32 : i32 to vector<8x128xi32>
    %735 = arith.addi %5, %734 : vector<8x128xi32>
    %736 = arith.cmpi sge, %735, %10 : vector<8x128xi32>
    %737 = arith.cmpi slt, %735, %15 : vector<8x128xi32>
    %738 = arith.andi %736, %737 : vector<8x128xi1>
    %739 = arith.cmpi sge, %735, %20 : vector<8x128xi32>
    %740 = arith.cmpi slt, %735, %25 : vector<8x128xi32>
    %741 = arith.andi %739, %740 : vector<8x128xi1>
    %cst_153 = arith.constant 0.000000e+00 : f32
    %742 = vector.broadcast %cst_153 : f32 to vector<8x128xf32>
    %743 = arith.select %738, %733, %742 : vector<8x128xi1>, vector<8x128xf32>
    %744 = arith.addf %729, %743 : vector<8x128xf32>
    %cst_154 = arith.constant 0.000000e+00 : f32
    %745 = vector.broadcast %cst_154 : f32 to vector<8x128xf32>
    %746 = arith.select %741, %733, %745 : vector<8x128xi1>, vector<8x128xf32>
    %747 = arith.addf %732, %746 : vector<8x128xf32>
    %c0_155 = arith.constant 0 : index
    %c6144 = arith.constant 6144 : index
    %748 = vector.load %arg2[%c0_155, %c6144] : memref<8x6272xf32, #tpu.memory_space<vmem>>, vector<8x128xf32>
    %c6144_i32 = arith.constant 6144 : i32
    %749 = vector.broadcast %c6144_i32 : i32 to vector<8x128xi32>
    %750 = arith.addi %5, %749 : vector<8x128xi32>
    %751 = arith.cmpi sge, %750, %10 : vector<8x128xi32>
    %752 = arith.cmpi slt, %750, %15 : vector<8x128xi32>
    %753 = arith.andi %751, %752 : vector<8x128xi1>
    %754 = arith.cmpi sge, %750, %20 : vector<8x128xi32>
    %755 = arith.cmpi slt, %750, %25 : vector<8x128xi32>
    %756 = arith.andi %754, %755 : vector<8x128xi1>
    %cst_156 = arith.constant 0.000000e+00 : f32
    %757 = vector.broadcast %cst_156 : f32 to vector<8x128xf32>
    %758 = arith.select %753, %748, %757 : vector<8x128xi1>, vector<8x128xf32>
    %759 = arith.addf %744, %758 : vector<8x128xf32>
    %cst_157 = arith.constant 0.000000e+00 : f32
    %760 = vector.broadcast %cst_157 : f32 to vector<8x128xf32>
    %761 = arith.select %756, %748, %760 : vector<8x128xi1>, vector<8x128xf32>
    %762 = arith.addf %747, %761 : vector<8x128xf32>
    %763 = vector.extract_strided_slice %0 {offsets = [0, 1], sizes = [8, 1], strides = [1, 1]} : vector<8x4xi32> to vector<8x1xi32>
    %764 = vector.extract_strided_slice %0 {offsets = [0, 0], sizes = [8, 1], strides = [1, 1]} : vector<8x4xi32> to vector<8x1xi32>
    %765 = arith.subi %763, %764 : vector<8x1xi32>
    %766 = arith.sitofp %765 : vector<8x1xi32> to vector<8x1xf32>
    %cst_158 = arith.constant 1.000000e+00 : f32
    %767 = vector.broadcast %cst_158 : f32 to vector<8x1xf32>
    %768 = arith.divf %767, %766 : vector<8x1xf32>
    %769 = vector.extract_strided_slice %0 {offsets = [0, 3], sizes = [8, 1], strides = [1, 1]} : vector<8x4xi32> to vector<8x1xi32>
    %770 = vector.extract_strided_slice %0 {offsets = [0, 2], sizes = [8, 1], strides = [1, 1]} : vector<8x4xi32> to vector<8x1xi32>
    %771 = arith.subi %769, %770 : vector<8x1xi32>
    %772 = arith.sitofp %771 : vector<8x1xi32> to vector<8x1xf32>
    %cst_159 = arith.constant 1.000000e+00 : f32
    %773 = vector.broadcast %cst_159 : f32 to vector<8x1xf32>
    %774 = arith.divf %773, %772 : vector<8x1xf32>
    %775 = arith.truncf %759 : vector<8x128xf32> to vector<8x128xbf16>
    %c0_160 = arith.constant 0 : index
    %c0_161 = arith.constant 0 : index
    %776 = vector.load %arg4[%c0_160, %c0_161] : memref<128x32xbf16, #tpu.memory_space<vmem>>, vector<128x32xbf16>
    %cst_162 = arith.constant dense<0.000000e+00> : vector<8x32xf32>
    %777 = tpu.matmul %775, %776, %cst_162 {dimension_numbers = #tpu.dot_dimension_numbers<[1], [0], [0], [1], [0, 0, 1, 1], [], []>} : vector<8x128xbf16>, vector<128x32xbf16>, vector<8x32xf32> -> vector<8x32xf32>
    %778 = vector.broadcast %768 : vector<8x1xf32> to vector<8x32xf32>
    %779 = arith.mulf %778, %777 : vector<8x32xf32>
    %780 = arith.addf %4, %779 : vector<8x32xf32>
    %781 = arith.truncf %762 : vector<8x128xf32> to vector<8x128xbf16>
    %c0_163 = arith.constant 0 : index
    %c0_164 = arith.constant 0 : index
    %782 = vector.load %arg5[%c0_163, %c0_164] : memref<128x32xbf16, #tpu.memory_space<vmem>>, vector<128x32xbf16>
    %cst_165 = arith.constant dense<0.000000e+00> : vector<8x32xf32>
    %783 = tpu.matmul %781, %782, %cst_165 {dimension_numbers = #tpu.dot_dimension_numbers<[1], [0], [0], [1], [0, 0, 1, 1], [], []>} : vector<8x128xbf16>, vector<128x32xbf16>, vector<8x32xf32> -> vector<8x32xf32>
    %784 = vector.broadcast %774 : vector<8x1xf32> to vector<8x32xf32>
    %785 = arith.mulf %784, %783 : vector<8x32xf32>
    %786 = arith.addf %780, %785 : vector<8x32xf32>
    %c0_166 = arith.constant 0 : index
    %c0_167 = arith.constant 0 : index
    %787 = vector.load %arg6[%c0_166, %c0_167] : memref<1x32xf32, #tpu.memory_space<vmem>>, vector<1x32xf32>
    %788 = vector.broadcast %787 : vector<1x32xf32> to vector<8x32xf32>
    %789 = arith.addf %786, %788 : vector<8x32xf32>
    %c0_168 = arith.constant 0 : index
    %c0_169 = arith.constant 0 : index
    %790 = vector.load %arg7[%c0_168, %c0_169] : memref<8x32xf32, #tpu.memory_space<vmem>>, vector<8x32xf32>
    tpu.vector_store %arg7[%c0_168, %c0_169], %789 {strides = array<i32>} : memref<8x32xf32, #tpu.memory_space<vmem>>, vector<8x32xf32>,
    return
  }
  func.func @transform_0(%arg0: i32) -> (i32, i32) {
    %c0_i32 = arith.constant 0 : i32
    %c0_i32_0 = arith.constant 0 : i32
    return %arg0, %c0_i32 : i32, i32
  }
  func.func @transform_1(%arg0: i32) -> (i32, i32) {
    %c0_i32 = arith.constant 0 : i32
    %c0_i32_0 = arith.constant 0 : i32
    return %arg0, %c0_i32 : i32, i32
  }
  func.func @transform_2(%arg0: i32) -> (i32, i32) {
    %c0_i32 = arith.constant 0 : i32
    %c0_i32_0 = arith.constant 0 : i32
    %c0_i32_1 = arith.constant 0 : i32
    return %c0_i32, %c0_i32_0 : i32, i32
  }
  func.func @transform_3(%arg0: i32) -> (i32, i32) {
    %c0_i32 = arith.constant 0 : i32
    %c0_i32_0 = arith.constant 0 : i32
    %c0_i32_1 = arith.constant 0 : i32
    return %c0_i32, %c0_i32_0 : i32, i32
  }
  func.func @transform_4(%arg0: i32) -> (i32, i32) {
    %c0_i32 = arith.constant 0 : i32
    %c0_i32_0 = arith.constant 0 : i32
    %c0_i32_1 = arith.constant 0 : i32
    return %c0_i32, %c0_i32_0 : i32, i32
  }
  func.func @transform_5(%arg0: i32) -> (i32, i32) {
    %c0_i32 = arith.constant 0 : i32
    %c0_i32_0 = arith.constant 0 : i32
    %c0_i32_1 = arith.constant 0 : i32
    return %c0_i32, %c0_i32_0 : i32, i32
  }
  func.func @transform_6(%arg0: i32) -> (i32, i32) {
    %c0_i32 = arith.constant 0 : i32
    %c0_i32_0 = arith.constant 0 : i32
    return %arg0, %c0_i32 : i32, i32
  }
}

</mosaic_0001>

<bundles_post_ra>
// kernel: tpu_custom_call.1
= control target key start
LH: loop header
LB: loop body
LE: loop exit
PB: predicated region body
PF: predicated region fallthrough
CT: control target
= control target key end

     0   :  { %v6587_v1 = vmov 2   ;;  %v6588_v2 = vmov 0   ;;  %v6589_v4 = vmov 3   ;;  %v6590_v5 = vmov 1   ;;  %s6591_s23 = smov 1   ;;  %s9490_s0 = inlined_call_operand.vmem [shape: s32[8,4], index: 0, kind: input, shape index: {}]   ;;  %s9491_s1 = inlined_call_operand.vmem [shape: f32[8,6272], index: 1, kind: input, shape index: {}]   ;;  %s9492_s2 = inlined_call_operand.vmem [shape: bf16[6272,32], index: 2, kind: input, shape index: {}]   ;;  %s9493_s3 = inlined_call_operand.vmem [shape: bf16[128,32], index: 3, kind: input, shape index: {}]   ;;  %s9494_s4 = inlined_call_operand.vmem [shape: bf16[128,32], index: 4, kind: input, shape index: {}]   ;;  %s9495_s5 = inlined_call_operand.vmem [shape: f32[1,32], index: 5, kind: input, shape index: {}]   ;;  %s9496_s6 = inlined_call_operand.hbm [shape: f32[8,32], index: 6, kind: output, shape index: {}]  }
   0x1   :  { %v6633_v0 = vld [vmem:[%s9490_s0] sm:$0xff]  ;;  %6147 = vset.pattern.permute.xlu1 %v6587_v1  ;;  %6145 = vset.pattern.permute.xlu0 %v6588_v2  ;;  %v6641_v6 = vld [vmem:[%s9491_s1 + $0x8] sm:$0xff]  ;;  %v9508_v11 = vmov 0.0   ;;  %vm9497_vm0 = vmmov 0   ;;  %v6156_v15 = vld [vmem:[%s9492_s2 + $0x50] sm:$0xff]   ;;  %v908_v44 = vlaneseq }
   0x2   :  { %v910_v3 = vmul.u32 32, %v6633_v0  ;;  %v6150_v7 = vld [vmem:[%s9492_s2 + $0x40] sm:$0xff]   ;;  %v76_v10 = vpack.c.bf16 %v6641_v6, %v6641_v6  ;;  %6077 = vmatprep.subr.bf16.mxu0 %v9508_v11  ;;  %v6153_v12 = vld [vmem:[%s9492_s2 + $0x48] sm:$0xff]   ;;  %6093 = vmatprep.mubr.msk.bf16.mxu0 %vm9497_vm0, %v9508_v11  ;;  %v6157_v16 = vld [vmem:[%s9493_s3 + $0x10] sm:$0xff]  }
   0x3   :  { %v6151_v8 = vld [vmem:[%s9493_s3] sm:$0xff]   ;;  %5531 = vmatprep.subr.bf16.mxu1 %v6150_v7  ;;  %v6154_v13 = vld [vmem:[%s9493_s3 + $0x8] sm:$0xff]   ;;  %v6158_v17 = vld [vmem:[%s9492_s2 + $0x10] sm:$0xff]   ;;  %v6767_v47 = vand.u32 127, %v908_v44 }
   0x4   :  { %918 = vperm.xlu1 %6147, %v910_v3   ;;  %912 = vperm.xlu0 %6145, %v910_v3   ;;  %v6152_v9 = vld [vmem:[%s9492_s2] sm:$0xff]   ;;  %v6155_v14 = vld [vmem:[%s9492_s2 + $0x8] sm:$0xff]   ;;  %v6159_v18 = vld [vmem:[%s9492_s2 + $0x58] sm:$0xff]  }
   0x5   :  { %6078 = vmatpush3.bf16.msra.mxu0 %v6151_v8  ;;  %5532 = vmatpush3.bf16.msra.mxu1 %v6152_v9  ;;  %v6160_v19 = vld [vmem:[%s9493_s3 + $0x18] sm:$0xff]   ;;  %v6162_v21 = vld [vmem:[%s9492_s2 + $0x60] sm:$0xff]   ;;  %v6165_v24 = vld [vmem:[%s9492_s2 + $0x68] sm:$0xff]   ;;  %v6780_v52 = vadd.s32 128, %v6767_v47  ;;  %v947_v55 = vadd.s32 256, %v6767_v47  ;;  %v959_v60 = vadd.s32 384, %v6767_v47 }
   0x6   :  { %6079 = vmatprep.subr.bf16.mxu0 %v9508_v11  ;;  %5533 = vmatprep.subr.bf16.mxu1 %v6153_v12  ;;  %v6161_v20 = vld [vmem:[%s9492_s2 + $0x18] sm:$0xff]   ;;  %v6163_v22 = vld [vmem:[%s9493_s3 + $0x20] sm:$0xff]   ;;  %v6166_v25 = vld [vmem:[%s9493_s3 + $0x28] sm:$0xff]   ;;  %v971_v61 = vadd.s32 512, %v6767_v47  ;;  %v983_v62 = vadd.s32 640, %v6767_v47  ;;  %v6818_v1 = vadd.s32 768, %v6767_v47 }
   0x7   :  { %4010 = vmatprep.mubr.bf16.mxu1 %v76_v10  ;;  %v6164_v23 = vld [vmem:[%s9492_s2 + $0x20] sm:$0xff]   ;;  %v6167_v26 = vld [vmem:[%s9492_s2 + $0x28] sm:$0xff]   ;;  %v6168_v27 = vld [vmem:[%s9492_s2 + $0x70] sm:$0xff]  }
   0x8   :  { %6148 = vset.pattern.permute.xlu1 %v6589_v4  ;;  %6146 = vset.pattern.permute.xlu0 %v6590_v5  ;;  %v6169_v28 = vld [vmem:[%s9493_s3 + $0x30] sm:$0xff]   ;;  %v6171_v30 = vld [vmem:[%s9492_s2 + $0x78] sm:$0xff]   ;;  %v6174_v33 = vld [vmem:[%s9492_s2 + $0xc0] sm:$0xff]   ;;  %v6829_v5 = vadd.s32 1024, %v6767_v47 }
   0x9   :  { %921 = vperm.xlu1 %6148, %v910_v3   ;;  %915 = vperm.xlu0 %6146, %v910_v3   ;;  %v6170_v29 = vld [vmem:[%s9492_s2 + $0x30] sm:$0xff]   ;;  %v6172_v31 = vld [vmem:[%s9493_s3 + $0x38] sm:$0xff]   ;;  %v6733_v34 = vld [vmem:[%s9491_s1] sm:$0xff]  ;;  %v6826_v3 = vadd.s32 896, %v6767_v47 }
   0xa   :  { %6080 = vmatpush3.bf16.msra.mxu0 %v6154_v13  ;;  %5534 = vmatpush3.bf16.msra.mxu1 %v6155_v14  ;;  %v6173_v32 = vld [vmem:[%s9492_s2 + $0x38] sm:$0xff]   ;;  %v75_v35 = vpack.c.bf16 %v6733_v34, %v6733_v34  ;;  %v6176_v36 = vld [vmem:[%s9492_s2 + $0x140] sm:$0xff]   ;;  %v6180_v38 = vld [vmem:[%s9492_s2 + $0x148] sm:$0xff]  }
   0xb   :  { %6081 = vmatprep.subr.bf16.mxu0 %v9508_v11  ;;  %5535 = vmatprep.subr.bf16.mxu1 %v6156_v15  ;;  %v6177_v37 = vld [vmem:[%s9492_s2 + $0x100] sm:$0xff]   ;;  %v6181_v39 = vld [vmem:[%s9492_s2 + $0x108] sm:$0xff]   ;;  %v6184_v40 = vld [vmem:[%s9492_s2 + $0x150] sm:$0xff]  }
   0xc   :  { %v6185_v41 = vld [vmem:[%s9492_s2 + $0x110] sm:$0xff]   ;;  %v6188_v42 = vld [vmem:[%s9492_s2 + $0x158] sm:$0xff]   ;;  %v6192_v45 = vld [vmem:[%s9492_s2 + $0x160] sm:$0xff]  }
   0xd   :  { %1509 = vrot.lane.b32.xlu1 %v6633_v0, %s6591_s23  ;;  %v6189_v43 = vld [vmem:[%s9492_s2 + $0x118] sm:$0xff]   ;;  %v6193_v46 = vld [vmem:[%s9492_s2 + $0x120] sm:$0xff]   ;;  %v6196_v50 = vld [vmem:[%s9492_s2 + $0x168] sm:$0xff]  }
   0xe   :  { %6082 = vmatpush3.bf16.msra.mxu0 %v6157_v16  ;;  %5536 = vmatpush3.bf16.msra.mxu1 %v6158_v17  ;;  %v6197_v51 = vld [vmem:[%s9492_s2 + $0x128] sm:$0xff]   ;;  %v6200_v56 = vld [vmem:[%s9492_s2 + $0x170] sm:$0xff]   ;;  %v6204_v9 = vld [vmem:[%s9492_s2 + $0x178] sm:$0xff]  }
   0xf   :  { %6083 = vmatprep.subr.bf16.mxu0 %v9508_v11  ;;  %5537 = vmatprep.subr.bf16.mxu1 %v6159_v18  ;;  %v6201_v57 = vld [vmem:[%s9492_s2 + $0x130] sm:$0xff]   ;;  %v6843_v12 = vld [vmem:[%s9491_s1 + $0x18] sm:$0xff]  ;;  %v6872_v18 = vld [vmem:[%s9491_s1 + $0x20] sm:$0xff] }
  0x10   :  { %v6806_v59 = vld [vmem:[%s9491_s1 + $0x10] sm:$0xff]  ;;  %v7419_v17 = vld [vmem:[%s9491_s1 + $0xd8] sm:$0xff]  ;;  %v6370_v14 = vld [vmem:[%s9492_s2 + $0x6c8] sm:$0xff]  }
  0x11   :  { %9654 = vst [vmem:[#allocation13_spill] sm:$0xff] %v7419_v17 }
  0x12   :  { %6084 = vmatpush3.bf16.msra.mxu0 %v6160_v19  ;;  %5538 = vmatpush3.bf16.msra.mxu1 %v6161_v20 }
  0x13   :  { %6085 = vmatprep.subr.bf16.mxu0 %v9508_v11  ;;  %5539 = vmatprep.subr.bf16.mxu1 %v6162_v21 }
  0x16   :  { %6086 = vmatpush3.bf16.msra.mxu0 %v6163_v22  ;;  %5540 = vmatpush3.bf16.msra.mxu1 %v6164_v23  ;;  %v6895_v23 = vld [vmem:[%s9491_s1 + $0x28] sm:$0xff] }
  0x17   :  { %6087 = vmatprep.subr.bf16.mxu0 %v9508_v11  ;;  %5541 = vmatprep.subr.bf16.mxu1 %v6165_v24  ;;  %v6208_v24 = vld [vmem:[%s9492_s2 + $0x240] sm:$0xff]  }
  0x1a   :  { %6088 = vmatpush3.bf16.msra.mxu0 %v6166_v25  ;;  %5542 = vmatpush3.bf16.msra.mxu1 %v6167_v26  ;;  %v6371_v25 = vld [vmem:[%s9492_s2 + $0x688] sm:$0xff]  }
  0x1b   :  { %6089 = vmatprep.subr.bf16.mxu0 %v9508_v11  ;;  %5543 = vmatprep.subr.bf16.mxu1 %v6168_v27  ;;  %v6913_v27 = vld [vmem:[%s9491_s1 + $0x30] sm:$0xff] }
  0x1e   :  { %6090 = vmatpush3.bf16.msra.mxu0 %v6169_v28  ;;  %5544 = vmatpush3.bf16.msra.mxu1 %v6170_v29  ;;  %v6918_v28 = vadd.s32 1280, %v6767_v47 }
  0x1f   :  { %6091 = vmatprep.subr.bf16.mxu0 %v9508_v11  ;;  %5545 = vmatprep.subr.bf16.mxu1 %v6171_v30 }
  0x22   :  { %6092 = vmatpush3.bf16.msra.mxu0 %v6172_v31  ;;  %5546 = vmatpush3.bf16.msra.mxu1 %v6173_v32 }
  0x23   :  { %5553 = vmatprep.subr.bf16.mxu0 %v6174_v33  ;;  %5575 = vmatprep.subr.bf16.mxu1 %v6176_v36  ;;  %v6941_v33 = vadd.s32 1408, %v6767_v47  ;;  %v6952_v36 = vld [vmem:[%s9491_s1 + $0x38] sm:$0xff] }
  0x25   :  { %4011 = vmatmul.mubr.bf16.vlgmr.msra.gmra.mrb[0].mxu1 %v75_v35  ;;  %v9643_v35 = vmov 0 }
  0x26   :  { %5576 = vmatpush3.bf16.msra.mxu1 %v6177_v37  ;;  %v6961_v37 = vld [vmem:[%s9491_s1 + $0x40] sm:$0xff] }
  0x27   :  { %5577 = vmatprep.subr.bf16.mxu1 %v6180_v38  ;;  %v9600_v38 = vmov 0 }
  0x2a   :  { %5578 = vmatpush3.bf16.msra.mxu1 %v6181_v39 }
  0x2b   :  { %5579 = vmatprep.subr.bf16.mxu1 %v6184_v40  ;;  %v6976_v40 = vadd.s32 1536, %v6767_v47 }
  0x2e   :  { %5580 = vmatpush3.bf16.msra.mxu1 %v6185_v41 }
  0x2f   :  { %5581 = vmatprep.subr.bf16.mxu1 %v6188_v42  ;;  %v7381_v42 = vld [vmem:[%s9491_s1 + $0xc8] sm:$0xff] }
  0x30   :  { %9646 = vst [vmem:[#allocation9_spill] sm:$0xff] %v7381_v42 }
  0x32   :  { %5582 = vmatpush3.bf16.msra.mxu1 %v6189_v43  ;;  %v9602_v43 = vmov 0 }
  0x33   :  { %5583 = vmatprep.subr.bf16.mxu1 %v6192_v45  ;;  %v6998_v45 = vadd.s32 1664, %v6767_v47 }
  0x36   :  { %5584 = vmatpush3.bf16.msra.mxu1 %v6193_v46 }
  0x37   :  { %5585 = vmatprep.subr.bf16.mxu1 %v6196_v50 }
  0x3a   :  { %5586 = vmatpush3.bf16.msra.mxu1 %v6197_v51  ;;  %v7006_v51 = vld [vmem:[%s9491_s1 + $0x48] sm:$0xff] }
  0x3b   :  { %5587 = vmatprep.subr.bf16.mxu1 %v6200_v56 }
  0x3e   :  { %5588 = vmatpush3.bf16.msra.mxu1 %v6201_v57  ;;  %v9604_v57 = vmov 0 }
  0x3f   :  { %5589 = vmatprep.subr.bf16.mxu1 %v6204_v9  ;;  %v9608_v9 = vmov 0 }
  0x83   :  { %v6769_v48 = vpop.permute.xlu0 %912  ;;  %v6771_v49 = vpop.permute.xlu1 %918 }
  0x84   :  { %vm924_vm1 = vcmp.ge.s32.totalorder %v6767_v47, %v6769_v48  ;;  %vm936_vm5 = vcmp.ge.s32.totalorder %v6780_v52, %v6769_v48  ;;  %vm951_vm8 = vcmp.ge.s32.totalorder %v947_v55, %v6771_v49  ;;  %vm948_vm10 = vcmp.ge.s32.totalorder %v947_v55, %v6769_v48 }
  0x85   :  { %vm963_vm13 = vcmp.ge.s32.totalorder %v959_v60, %v6771_v49 }
  0x88   :  { %v6782_v53 = vpop.permute.xlu1 %921  ;;  %v6784_v54 = vpop.permute.xlu0 %915 }
  0x89   :  { %vm925_vm2 = vcmp.lt.s32.totalorder %v6767_v47, %v6784_v54  ;;  %vm937_vm3 = vcmp.lt.s32.totalorder %v6780_v52, %v6784_v54  ;;  %vm949_vm6 = vcmp.lt.s32.totalorder %v947_v55, %v6784_v54  ;;  %vm952_vm9 = vcmp.lt.s32.totalorder %v947_v55, %v6782_v53  ;;  %v7015_v55 = vld [vmem:[%s9491_s1 + $0x50] sm:$0xff] }
  0x8a   :  { %vm6799_vm4 = vmand %vm924_vm1, %vm925_vm2  ;;  %vm961_vm11 = vcmp.lt.s32.totalorder %v959_v60, %v6784_v54  ;;  %vm964_vm14 = vcmp.lt.s32.totalorder %v959_v60, %v6782_v53  ;;  %vm960_vm1 = vcmp.ge.s32.totalorder %v959_v60, %v6769_v48  ;;  %vm973_vm2 = vcmp.lt.s32.totalorder %v971_v61, %v6784_v54 }
  0x8b   :  { %v930_v63 = vsel %vm6799_vm4, %v6733_v34, 0.0  ;;  %vm938_vm7 = vmand %vm936_vm5, %vm937_vm3  ;;  %vm975_vm4 = vcmp.ge.s32.totalorder %v971_v61, %v6771_v49  ;;  %vm976_vm5 = vcmp.lt.s32.totalorder %v971_v61, %v6782_v53  ;;  %v7030_v60 = vadd.s32 1792, %v6767_v47 }
  0x8c   :  { %v1510_v2 = vpop.permute.xlu1 %1509  ;;  %v942_v8 = vsel %vm938_vm7, %v6641_v6, 0.0  ;;  %vm950_vm12 = vmand %vm948_vm10, %vm949_vm6  ;;  %v6205_v6 = vld [vmem:[%s9492_s2 + $0x138] sm:$0xff]   ;;  %vm972_vm7 = vcmp.ge.s32.totalorder %v971_v61, %v6769_v48  ;;  %vm987_vm10 = vcmp.ge.s32.totalorder %v983_v62, %v6771_v49 }
  0x8d   :  { %v1511_v7 = vsub.s32 %v6633_v0, %v1510_v2  ;;  %v943_v10 = vadd.f32 %v942_v8, %v930_v63  ;;  %v6848_v0 = vadd.s32 1152, %v6767_v47  ;;  %vm6857_vm15 = vmand %vm951_vm8, %vm952_vm9  ;;  %v954_v15 = vsel %vm950_vm12, %v6806_v59, 0.0  ;;  %5590 = vmatpush3.bf16.msra.mxu1 %v6205_v6  ;;  %v7078_v8 = vld [vmem:[%s9491_s1 + $0x60] sm:$0xff] }
  0x8e   :  { %vm962_vm3 = vmand %vm960_vm1, %vm961_vm11  ;;  %vm985_vm8 = vcmp.lt.s32.totalorder %v983_v62, %v6784_v54  ;;  %vm988_vm11 = vcmp.lt.s32.totalorder %v983_v62, %v6782_v53  ;;  %5619 = vmatprep.subr.bf16.mxu1 %v6208_v24  ;;  %v9606_v63 = vmov 0  ;;  %v7058_v2 = vadd.s32 1920, %v6767_v47 }
  0x8f   :  { %v1512_v13 = vcvt.s32.f32 %v1511_v7  ;;  %v955_v16 = vadd.f32 %v954_v15, %v943_v10  ;;  %vm6880_vm6 = vmand %vm963_vm13, %vm964_vm14  ;;  %v966_v20 = vsel %vm962_vm3, %v6843_v12, 0.0  ;;  %vm984_vm13 = vcmp.ge.s32.totalorder %v983_v62, %v6769_v48  ;;  %v7069_v7 = vld [vmem:[%s9491_s1 + $0x58] sm:$0xff] }
  0x90   :  { %vm974_vm9 = vmand %vm972_vm7, %vm973_vm2  ;;  %vm997_vm14 = vcmp.lt.s32.totalorder %v6818_v1, %v6784_v54  ;;  %vm999_vm2 = vcmp.ge.s32.totalorder %v6818_v1, %v6771_v49  ;;  %vm1000_vm3 = vcmp.lt.s32.totalorder %v6818_v1, %v6782_v53  ;;  %vm1009_vm7 = vcmp.lt.s32.totalorder %v6826_v3, %v6784_v54 }
  0x91   :  { %6558 = vrcp.f32 %v1512_v13  ;;  %v967_v21 = vadd.f32 %v966_v20, %v955_v16  ;;  %vm6904_vm12 = vmand %vm975_vm4, %vm976_vm5  ;;  %v978_v26 = vsel %vm974_vm9, %v6872_v18, 0.0  ;;  %vm996_vm5 = vcmp.ge.s32.totalorder %v6818_v1, %v6769_v48  ;;  %v7339_v13 = vld [vmem:[%s9491_s1 + $0xb8] sm:$0xff] }
  0x92   :  { %vm986_vm1 = vmand %vm984_vm13, %vm985_vm8  ;;  %vm1011_vm9 = vcmp.ge.s32.totalorder %v6826_v3, %v6771_v49  ;;  %vm1008_vm13 = vcmp.ge.s32.totalorder %v6826_v3, %v6769_v48  ;;  %vm1033_vm0 = vcmp.lt.s32.totalorder %v6848_v0, %v6784_v54  ;;  %v9611_v15 = vmov 0  ;;  %9639 = vst [vmem:[#allocation6_spill] sm:$0xff] %v7339_v13 }
  0x93   :  { %v979_v29 = vadd.f32 %v978_v26, %v967_v21  ;;  %vm6931_vm4 = vmand %vm987_vm10, %vm988_vm11  ;;  %v990_v32 = vsel %vm986_vm1, %v6895_v23, 0.0  ;;  %vm1012_vm10 = vcmp.lt.s32.totalorder %v6826_v3, %v6782_v53  ;;  %v1127_v20 = vadd.s32 2176, %v6767_v47  ;;  %v7134_v26 = vld [vmem:[%s9491_s1 + $0x70] sm:$0xff] }
  0x94   :  { %vm998_vm8 = vmand %vm996_vm5, %vm997_vm14  ;;  %vm1021_vm14 = vcmp.lt.s32.totalorder %v6829_v5, %v6784_v54  ;;  %v9633_v24 = vmov 0 }
  0x95   :  { %v991_v34 = vadd.f32 %v990_v32, %v979_v29  ;;  %vm6966_vm11 = vmand %vm999_vm2, %vm1000_vm3  ;;  %v1002_v39 = vsel %vm998_vm8, %v6913_v27, 0.0  ;;  %vm1023_vm2 = vcmp.ge.s32.totalorder %v6829_v5, %v6771_v49  ;;  %vm1024_vm3 = vcmp.lt.s32.totalorder %v6829_v5, %v6782_v53 }
  0x96   :  { %v9601_v38 = vsel %vm6966_vm11, 4294967295, %v9600_v38  ;;  %vm1010_vm1 = vmand %vm1008_vm13, %vm1009_vm7  ;;  %vm1020_vm8 = vcmp.ge.s32.totalorder %v6829_v5, %v6769_v48  ;;  %v1139_v32 = vadd.s32 2304, %v6767_v47  ;;  %v9637_v5 = vmov 0 }
  0x97   :  { %v1003_v41 = vadd.f32 %v1002_v39, %v991_v34  ;;  %vm6988_vm5 = vmand %vm1011_vm9, %vm1012_vm10  ;;  %v1014_v44 = vsel %vm1010_vm1, %v6952_v36, 0.0  ;;  %vm1035_vm9 = vcmp.ge.s32.totalorder %v6848_v0, %v6771_v49  ;;  %vm1036_vm10 = vcmp.lt.s32.totalorder %v6848_v0, %v6782_v53  ;;  %v7301_v34 = vld [vmem:[%s9491_s1 + $0xa8] sm:$0xff] }
  0x98   :  { %v9603_v43 = vsel %vm6988_vm5, 4294967295, %v9602_v43  ;;  %vm1022_vm7 = vmand %vm1020_vm8, %vm1021_vm14  ;;  %vm1032_vm14 = vcmp.ge.s32.totalorder %v6848_v0, %v6769_v48  ;;  %vm1045_vm1 = vcmp.lt.s32.totalorder %v6918_v28, %v6784_v54  ;;  %vm1048_vm8 = vcmp.lt.s32.totalorder %v6918_v28, %v6782_v53 }
  0x99   :  { %v1015_v46 = vadd.f32 %v1014_v44, %v1003_v41  ;;  %vm7020_vm13 = vmand %vm1023_vm2, %vm1024_vm3  ;;  %v1026_v58 = vsel %vm1022_vm7, %v6961_v37, 0.0  ;;  %vm1047_vm3 = vcmp.ge.s32.totalorder %v6918_v28, %v6771_v49  ;;  %v7093_v0 = vadd.s32 2048, %v6767_v47 }
  0x9a   :  { %v9605_v57 = vsel %vm7020_vm13, 4294967295, %v9604_v57  ;;  %vm1034_vm2 = vmand %vm1032_vm14, %vm1033_vm0  ;;  %vm1044_vm0 = vcmp.ge.s32.totalorder %v6918_v28, %v6769_v48  ;;  %v9614_v28 = vmov 0  ;;  %v9617_v39 = vmov 0 }
  0x9b   :  { %v6559_v56 = vpop.eup %6558  ;;  %v1027_v61 = vadd.f32 %v1026_v58, %v1015_v46  ;;  %vm7048_vm7 = vmand %vm1035_vm9, %vm1036_vm10  ;;  %v1038_v1 = vsel %vm1034_vm2, %v7006_v51, 0.0  ;;  %vm1059_vm10 = vcmp.ge.s32.totalorder %v6941_v33, %v6771_v49  ;;  %vm1060_vm2 = vcmp.lt.s32.totalorder %v6941_v33, %v6782_v53  ;;  %v7175_v46 = vld [vmem:[%s9491_s1 + $0x78] sm:$0xff] }
  0x9c   :  { %1622 = vperm.xlu0 %6146, %v6559_v56   ;;  %5084 = vperm.xlu1 %6148, %v6559_v56   ;;  %v9607_v63 = vsel %vm7048_vm7, 4294967295, %v9606_v63  ;;  %vm1046_vm9 = vmand %vm1044_vm0, %vm1045_vm1  ;;  %vm1056_vm0 = vcmp.ge.s32.totalorder %v6941_v33, %v6769_v48  ;;  %vm1072_vm7 = vcmp.lt.s32.totalorder %v6976_v40, %v6782_v53  ;;  %vm1092_vm5 = vcmp.ge.s32.totalorder %v7030_v60, %v6769_v48  ;;  %v7184_v56 = vld [vmem:[%s9491_s1 + $0x80] sm:$0xff] }
  0x9d   :  { %v1039_v3 = vadd.f32 %v1038_v1, %v1027_v61  ;;  %vm7083_vm1 = vmand %vm1047_vm3, %vm1048_vm8  ;;  %v1050_v10 = vsel %vm1046_vm9, %v7015_v55, 0.0  ;;  %vm9610_vm3 = vcmp.lt.s32.totalorder %v6941_v33, %v6784_v54  ;;  %vm1071_vm9 = vcmp.ge.s32.totalorder %v6976_v40, %v6771_v49 }
  0x9e   :  { %v9609_v9 = vsel %vm7083_vm1, 4294967295, %v9608_v9  ;;  %vm1058_vm8 = vmand %vm1056_vm0, %vm9610_vm3  ;;  %vm1068_vm1 = vcmp.ge.s32.totalorder %v6976_v40, %v6769_v48  ;;  %vm1083_vm3 = vcmp.ge.s32.totalorder %v6998_v45, %v6771_v49  ;;  %vm1093_vm0 = vcmp.lt.s32.totalorder %v7030_v60, %v6784_v54 }
  0x9f   :  { %v1051_v6 = vadd.f32 %v1050_v10, %v1039_v3  ;;  %vm7106_vm14 = vmand %vm1059_vm10, %vm1060_vm2  ;;  %v1062_v16 = vsel %vm1058_vm8, %v7069_v7, 0.0  ;;  %vm9613_vm10 = vcmp.lt.s32.totalorder %v6976_v40, %v6784_v54  ;;  %vm1084_vm8 = vcmp.lt.s32.totalorder %v6998_v45, %v6782_v53  ;;  %v7281_v3 = vld [vmem:[%s9491_s1 + $0xa0] sm:$0xff] }
  0xa0   :  { %6149 = vset.pattern.permute.xlu0 %v6589_v4  ;;  %v9612_v15 = vsel %vm7106_vm14, 4294967295, %v9611_v15  ;;  %vm1070_vm2 = vmand %vm1068_vm1, %vm9613_vm10  ;;  %v7125_v4 = vld [vmem:[%s9491_s1 + $0x68] sm:$0xff]  ;;  %vm1080_vm10 = vcmp.ge.s32.totalorder %v6998_v45, %v6769_v48  ;;  %vm1096_vm14 = vcmp.lt.s32.totalorder %v7030_v60, %v6782_v53  ;;  %v1151_v41 = vadd.s32 2432, %v6767_v47 }
  0xa1   :  { %v1063_v21 = vadd.f32 %v1062_v16, %v1051_v6  ;;  %vm7139_vm1 = vmand %vm1071_vm9, %vm1072_vm7  ;;  %v1074_v29 = vsel %vm1070_vm2, %v7078_v8, 0.0  ;;  %vm9616_vm7 = vcmp.lt.s32.totalorder %v6998_v45, %v6784_v54  ;;  %vm1095_vm2 = vcmp.ge.s32.totalorder %v7030_v60, %v6771_v49 }
  0xa2   :  { %v9615_v28 = vsel %vm7139_vm1, 4294967295, %v9614_v28  ;;  %vm1082_vm9 = vmand %vm1080_vm10, %vm9616_vm7  ;;  %vm1105_vm1 = vcmp.lt.s32.totalorder %v7058_v2, %v6784_v54  ;;  %v9619_v58 = vmov 0  ;;  %v1163_v61 = vadd.s32 2560, %v6767_v47 }
  0xa3   :  { %v1075_v33 = vadd.f32 %v1074_v29, %v1063_v21  ;;  %vm7159_vm13 = vmand %vm1083_vm3, %vm1084_vm8  ;;  %v1086_v40 = vsel %vm1082_vm9, %v7125_v4, 0.0  ;;  %vm1107_vm3 = vcmp.ge.s32.totalorder %v7058_v2, %v6771_v49  ;;  %vm1108_vm8 = vcmp.lt.s32.totalorder %v7058_v2, %v6782_v53  ;;  %v7221_v29 = vld [vmem:[%s9491_s1 + $0x88] sm:$0xff] }
  0xa4   :  { %v9618_v39 = vsel %vm7159_vm13, 4294967295, %v9617_v39  ;;  %vm1094_vm10 = vmand %vm1092_vm5, %vm1093_vm0  ;;  %vm1104_vm5 = vcmp.ge.s32.totalorder %v7058_v2, %v6769_v48  ;;  %vm1117_vm0 = vcmp.lt.s32.totalorder %v7093_v0, %v6784_v54  ;;  %vm1119_vm9 = vcmp.ge.s32.totalorder %v7093_v0, %v6771_v49 }
  0xa5   :  { %v1087_v44 = vadd.f32 %v1086_v40, %v1075_v33  ;;  %vm7186_vm7 = vmand %vm1095_vm2, %vm1096_vm14  ;;  %v1098_v60 = vsel %vm1094_vm10, %v7134_v26, 0.0  ;;  %vm1120_vm2 = vcmp.lt.s32.totalorder %v7093_v0, %v6782_v53  ;;  %v9621_v10 = vmov 0 }
  0xa6   :  { %v9620_v58 = vsel %vm7186_vm7, 4294967295, %v9619_v58  ;;  %vm1106_vm14 = vmand %vm1104_vm5, %vm1105_vm1  ;;  %vm1116_vm13 = vcmp.ge.s32.totalorder %v7093_v0, %v6769_v48  ;;  %vm1129_vm7 = vcmp.lt.s32.totalorder %v1127_v20, %v6784_v54  ;;  %v1175_v2 = vadd.s32 2688, %v6767_v47  ;;  %v7228_v0 = vld [vmem:[%s9491_s1 + $0x90] sm:$0xff] }
  0xa7   :  { %v1099_v1 = vadd.f32 %v1098_v60, %v1087_v44  ;;  %vm7206_vm10 = vmand %vm1107_vm3, %vm1108_vm8  ;;  %v1110_v6 = vsel %vm1106_vm14, %v7175_v46, 0.0  ;;  %vm1131_vm3 = vcmp.ge.s32.totalorder %v1127_v20, %v6771_v49  ;;  %vm1132_vm8 = vcmp.lt.s32.totalorder %v1127_v20, %v6782_v53 }
  0xa8   :  { %v9622_v10 = vsel %vm7206_vm10, 4294967295, %v9621_v10  ;;  %vm1118_vm1 = vmand %vm1116_vm13, %vm1117_vm0  ;;  %v9623_v33 = vmov 0  ;;  %vm1128_vm13 = vcmp.ge.s32.totalorder %v1127_v20, %v6769_v48  ;;  %vm1141_vm0 = vcmp.lt.s32.totalorder %v1139_v32, %v6784_v54 }
  0xa9   :  { %v1111_v16 = vadd.f32 %v1110_v6, %v1099_v1  ;;  %vm7230_vm5 = vmand %vm1119_vm9, %vm1120_vm2  ;;  %v1122_v40 = vsel %vm1118_vm1, %v7184_v56, 0.0  ;;  %v1187_v44 = vadd.s32 2816, %v6767_v47  ;;  %vm1143_vm9 = vcmp.ge.s32.totalorder %v1139_v32, %v6771_v49  ;;  %v7259_v1 = vld [vmem:[%s9491_s1 + $0x98] sm:$0xff] }
  0xaa   :  { %v9624_v33 = vsel %vm7230_vm5, 4294967295, %v9623_v33  ;;  %vm1130_vm14 = vmand %vm1128_vm13, %vm1129_vm7  ;;  %vm1144_vm2 = vcmp.lt.s32.totalorder %v1139_v32, %v6782_v53  ;;  %v9625_v6 = vmov 0  ;;  %vm1140_vm1 = vcmp.ge.s32.totalorder %v1139_v32, %v6769_v48 }
  0xab   :  { %v1123_v60 = vadd.f32 %v1122_v40, %v1111_v16  ;;  %vm7245_vm10 = vmand %vm1131_vm3, %vm1132_vm8  ;;  %v1134_v11 = vsel %vm1130_vm14, %v7221_v29, 0.0  ;;  %v1199_v16 = vadd.s32 2944, %v6767_v47  ;;  %vm1155_vm3 = vcmp.ge.s32.totalorder %v1151_v41, %v6771_v49 }
  0xac   :  { %v9626_v6 = vsel %vm7245_vm10, 4294967295, %v9625_v6  ;;  %vm1142_vm7 = vmand %vm1140_vm1, %vm1141_vm0  ;;  %vm1156_vm8 = vcmp.lt.s32.totalorder %v1151_v41, %v6782_v53  ;;  %v9627_v32 = vmov 0  ;;  %vm1152_vm14 = vcmp.ge.s32.totalorder %v1151_v41, %v6769_v48 }
  0xad   :  { %v1135_v40 = vadd.f32 %v1134_v11, %v1123_v60  ;;  %vm7263_vm13 = vmand %vm1143_vm9, %vm1144_vm2  ;;  %v1146_v11 = vsel %vm1142_vm7, %v7228_v0, 0.0  ;;  %v7271_v60 = vadd.s32 3072, %v6767_v47  ;;  %vm9629_vm0 = vcmp.lt.s32.totalorder %v1151_v41, %v6784_v54 }
  0xae   :  { %v9628_v32 = vsel %vm7263_vm13, 4294967295, %v9627_v32  ;;  %vm1154_vm9 = vmand %vm1152_vm14, %vm9629_vm0  ;;  %vm1167_vm2 = vcmp.ge.s32.totalorder %v1163_v61, %v6771_v49  ;;  %vm1168_vm1 = vcmp.lt.s32.totalorder %v1163_v61, %v6782_v53  ;;  %v9630_v45 = vmov 0 }
  0xaf   :  { %v1147_v20 = vadd.f32 %v1146_v11, %v1135_v40  ;;  %vm7285_vm7 = vmand %vm1155_vm3, %vm1156_vm8  ;;  %v1158_v40 = vsel %vm1154_vm9, %v7259_v1, 0.0  ;;  %vm1164_vm11 = vcmp.ge.s32.totalorder %v1163_v61, %v6769_v48  ;;  %v1223_v41 = vadd.s32 3200, %v6767_v47 }
  0xb0   :  { %v9631_v45 = vsel %vm7285_vm7, 4294967295, %v9630_v45  ;;  %vm9632_vm14 = vcmp.lt.s32.totalorder %v1163_v61, %v6784_v54  ;;  %vm1179_vm3 = vcmp.ge.s32.totalorder %v1175_v2, %v6771_v49  ;;  %vm1180_vm8 = vcmp.lt.s32.totalorder %v1175_v2, %v6782_v53  ;;  %vm7305_vm9 = vmand %vm1167_vm2, %vm1168_vm1  ;;  %v7314_v61 = vld [vmem:[%s9491_s1 + $0xb0] sm:$0xff] }
  0xb1   :  { %v1159_v11 = vadd.f32 %v1158_v40, %v1147_v20  ;;  %vm1166_vm0 = vmand %vm1164_vm11, %vm9632_vm14  ;;  %v9634_v24 = vsel %vm7305_vm9, 4294967295, %v9633_v24  ;;  %vm1176_vm13 = vcmp.ge.s32.totalorder %v1175_v2, %v6769_v48  ;;  %9635 = vst [vmem:[#allocation5_spill] sm:$0xff] %v7314_v61  ;;  %vm1189_vm11 = vcmp.lt.s32.totalorder %v1187_v44, %v6784_v54 }
  0xb2   :  { %v1170_v20 = vsel %vm1166_vm0, %v7281_v3, 0.0  ;;  %v1235_v40 = vadd.s32 3328, %v6767_v47  ;;  %vm9636_vm2 = vcmp.lt.s32.totalorder %v1175_v2, %v6784_v54  ;;  %vm1191_vm14 = vcmp.ge.s32.totalorder %v1187_v44, %v6771_v49  ;;  %vm7325_vm7 = vmand %vm1179_vm3, %vm1180_vm8 }
  0xb3   :  { %v1171_v21 = vadd.f32 %v1170_v20, %v1159_v11  ;;  %vm1178_vm1 = vmand %vm1176_vm13, %vm9636_vm2  ;;  %vm1192_vm0 = vcmp.lt.s32.totalorder %v1187_v44, %v6782_v53  ;;  %v9638_v5 = vsel %vm7325_vm7, 4294967295, %v9637_v5  ;;  %vm1188_vm10 = vcmp.ge.s32.totalorder %v1187_v44, %v6769_v48  ;;  %v7346_v44 = vld [vmem:[%s9491_s1 + $0xc0] sm:$0xff] }
  0xb4   :  { %v1182_v62 = vsel %vm1178_vm1, %v7301_v34, 0.0  ;;  %vm1201_vm5 = vcmp.lt.s32.totalorder %v1199_v16, %v6784_v54  ;;  %v1247_v11 = vadd.s32 3456, %v6767_v47  ;;  %vm1190_vm13 = vmand %vm1188_vm10, %vm1189_vm11  ;;  %vm1203_vm3 = vcmp.ge.s32.totalorder %v1199_v16, %v6771_v49  ;;  %9640 = vst [vmem:[#allocation7_spill] sm:$0xff] %v7346_v44 }
  0xb5   :  { %v1183_v20 = vadd.f32 %v1182_v62, %v1171_v21  ;;  %vm1204_vm8 = vcmp.lt.s32.totalorder %v1199_v16, %v6782_v53  ;;  %vm7348_vm2 = vmand %vm1191_vm14, %vm1192_vm0  ;;  %v9641_v62 = vmov 0  ;;  %v1194_v21 = vsel %vm1190_vm13, %v7314_v61, 0.0 }
  0xb6   :  { %v9642_v62 = vsel %vm7348_vm2, 4294967295, %v9641_v62  ;;  %vm1200_vm10 = vcmp.ge.s32.totalorder %v1199_v16, %v6769_v48  ;;  %vm1213_vm11 = vcmp.lt.s32.totalorder %v7271_v60, %v6784_v54  ;;  %v1259_v2 = vadd.s32 3584, %v6767_v47  ;;  %vm7366_vm13 = vmand %vm1203_vm3, %vm1204_vm8 }
  0xb7   :  { %v1195_v50 = vadd.f32 %v1194_v21, %v1183_v20  ;;  %vm1202_vm1 = vmand %vm1200_vm10, %vm1201_vm5  ;;  %vm1215_vm14 = vcmp.ge.s32.totalorder %v7271_v60, %v6771_v49  ;;  %vm1216_vm0 = vcmp.lt.s32.totalorder %v7271_v60, %v6782_v53  ;;  %v9644_v35 = vsel %vm7366_vm13, 4294967295, %v9643_v35 }
  0xb8   :  { %9645 = vst [vmem:[#allocation8_spill] sm:$0xff] %v9644_v35  ;;  %v1206_v30 = vsel %vm1202_vm1, %v7339_v13, 0.0  ;;  %vm1212_vm7 = vcmp.ge.s32.totalorder %v7271_v60, %v6769_v48  ;;  %vm1225_vm2 = vcmp.lt.s32.totalorder %v1223_v41, %v6784_v54  ;;  %v1271_v16 = vadd.s32 3712, %v6767_v47  ;;  %v7388_v60 = vld [vmem:[%s9491_s1 + $0xd0] sm:$0xff]  ;;  %vm7390_vm10 = vmand %vm1215_vm14, %vm1216_vm0 }
  0xb9   :  { %v1207_v20 = vadd.f32 %v1206_v30, %v1195_v50  ;;  %vm1214_vm5 = vmand %vm1212_vm7, %vm1213_vm11  ;;  %vm1227_vm3 = vcmp.ge.s32.totalorder %v1223_v41, %v6771_v49  ;;  %vm1228_vm8 = vcmp.lt.s32.totalorder %v1223_v41, %v6782_v53  ;;  %9647 = vst [vmem:[#allocation10_spill] sm:$0xff] %v7388_v60  ;;  %v9648_v30 = vmov 0 }
  0xba   :  { %v9649_v30 = vsel %vm7390_vm10, 4294967295, %v9648_v30  ;;  %v1218_v50 = vsel %vm1214_vm5, %v7346_v44, 0.0  ;;  %vm1224_vm7 = vcmp.ge.s32.totalorder %v1223_v41, %v6769_v48  ;;  %vm1237_vm11 = vcmp.lt.s32.totalorder %v1235_v40, %v6784_v54  ;;  %vm7405_vm13 = vmand %vm1227_vm3, %vm1228_vm8 }
  0xbb   :  { %9650 = vst [vmem:[#allocation11_spill] sm:$0xff] %v9649_v30  ;;  %v1283_v21 = vadd.s32 3840, %v6767_v47  ;;  %v1219_v22 = vadd.f32 %v1218_v50, %v1207_v20  ;;  %vm1226_vm1 = vmand %vm1224_vm7, %vm1225_vm2  ;;  %vm1239_vm14 = vcmp.ge.s32.totalorder %v1235_v40, %v6771_v49  ;;  %vm1240_vm0 = vcmp.lt.s32.totalorder %v1235_v40, %v6782_v53 }
  0xbc   :  { %v9651_v13 = vmov 0  ;;  %v1230_v35 = vsel %vm1226_vm1, %v7381_v42, 0.0  ;;  %vm1236_vm5 = vcmp.ge.s32.totalorder %v1235_v40, %v6769_v48  ;;  %vm1249_vm9 = vcmp.lt.s32.totalorder %v1247_v11, %v6784_v54  ;;  %v7426_v40 = vld [vmem:[%s9491_s1 + $0xe0] sm:$0xff]  ;;  %vm7428_vm7 = vmand %vm1239_vm14, %vm1240_vm0 }
  0xbd   :  { %v9652_v13 = vsel %vm7405_vm13, 4294967295, %v9651_v13  ;;  %v1295_v20 = vadd.s32 3968, %v6767_v47  ;;  %v1231_v50 = vadd.f32 %v1230_v35, %v1219_v22  ;;  %vm1238_vm2 = vmand %vm1236_vm5, %vm1237_vm11  ;;  %vm1251_vm3 = vcmp.ge.s32.totalorder %v1247_v11, %v6771_v49  ;;  %9655 = vst [vmem:[#allocation14_spill] sm:$0xff] %v7426_v40 }
  0xbe   :  { %9653 = vst [vmem:[#allocation12_spill] sm:$0xff] %v9652_v13  ;;  %vm1252_vm8 = vcmp.lt.s32.totalorder %v1247_v11, %v6782_v53  ;;  %v9656_v22 = vmov 0  ;;  %v1242_v35 = vsel %vm1238_vm2, %v7388_v60, 0.0  ;;  %vm1248_vm11 = vcmp.ge.s32.totalorder %v1247_v11, %v6769_v48  ;;  %v7461_v13 = vld [vmem:[%s9491_s1 + $0xe8] sm:$0xff] }
  0xbf   :  { %v9657_v22 = vsel %vm7428_vm7, 4294967295, %v9656_v22  ;;  %vm1261_vm1 = vcmp.lt.s32.totalorder %v1259_v2, %v6784_v54  ;;  %v7436_v41 = vadd.s32 4096, %v6767_v47  ;;  %v1243_v42 = vadd.f32 %v1242_v35, %v1231_v50  ;;  %vm1250_vm14 = vmand %vm1248_vm11, %vm1249_vm9  ;;  %9662 = vst [vmem:[#allocation17_spill] sm:$0xff] %v7461_v13 }
  0xc0   :  { %9658 = vst [vmem:[#allocation15_spill] sm:$0xff] %v9657_v22  ;;  %vm1263_vm0 = vcmp.ge.s32.totalorder %v1259_v2, %v6771_v49  ;;  %vm1264_vm5 = vcmp.lt.s32.totalorder %v1259_v2, %v6782_v53  ;;  %vm7445_vm2 = vmand %vm1251_vm3, %vm1252_vm8  ;;  %v9659_v44 = vmov 0  ;;  %v1254_v30 = vsel %vm1250_vm14, %v7419_v17, 0.0 }
  0xc1   :  { %v9660_v44 = vsel %vm7445_vm2, 4294967295, %v9659_v44  ;;  %vm1260_vm13 = vcmp.ge.s32.totalorder %v1259_v2, %v6769_v48  ;;  %vm1273_vm10 = vcmp.lt.s32.totalorder %v1271_v16, %v6784_v54  ;;  %v7453_v50 = vadd.s32 4224, %v6767_v47  ;;  %v7468_v2 = vld [vmem:[%s9491_s1 + $0xf0] sm:$0xff]  ;;  %vm7470_vm11 = vmand %vm1263_vm0, %vm1264_vm5 }
  0xc2   :  { %9661 = vst [vmem:[#allocation16_spill] sm:$0xff] %v9660_v44  ;;  %v1255_v35 = vadd.f32 %v1254_v30, %v1243_v42  ;;  %vm1262_vm9 = vmand %vm1260_vm13, %vm1261_vm1  ;;  %vm1275_vm3 = vcmp.ge.s32.totalorder %v1271_v16, %v6771_v49  ;;  %vm1276_vm8 = vcmp.lt.s32.totalorder %v1271_v16, %v6782_v53  ;;  %v9664_v42 = vmov 0  ;;  %v7503_v44 = vld [vmem:[%s9491_s1 + $0xf8] sm:$0xff] }
  0xc3   :  { %9663 = vst [vmem:[#allocation18_spill] sm:$0xff] %v7468_v2  ;;  %v9665_v42 = vsel %vm7470_vm11, 4294967295, %v9664_v42  ;;  %v1266_v30 = vsel %vm1262_vm9, %v7426_v40, 0.0  ;;  %vm1272_vm13 = vcmp.ge.s32.totalorder %v1271_v16, %v6769_v48  ;;  %vm1285_vm1 = vcmp.lt.s32.totalorder %v1283_v21, %v6784_v54  ;;  %vm7487_vm9 = vmand %vm1275_vm3, %vm1276_vm8 }
  0xc4   :  { %9666 = vst [vmem:[#allocation19_spill] sm:$0xff] %v9665_v42  ;;  %v7478_v11 = vadd.s32 4352, %v6767_v47  ;;  %v1267_v17 = vadd.f32 %v1266_v30, %v1255_v35  ;;  %vm1274_vm14 = vmand %vm1272_vm13, %vm1273_vm10  ;;  %vm1287_vm0 = vcmp.ge.s32.totalorder %v1283_v21, %v6771_v49  ;;  %vm1288_vm5 = vcmp.lt.s32.totalorder %v1283_v21, %v6782_v53 }
  0xc5   :  { %v9667_v60 = vmov 0  ;;  %v1278_v22 = vsel %vm1274_vm14, %v7461_v13, 0.0  ;;  %vm1284_vm2 = vcmp.ge.s32.totalorder %v1283_v21, %v6769_v48  ;;  %vm1297_vm7 = vcmp.lt.s32.totalorder %v1295_v20, %v6784_v54  ;;  %9670 = vst [vmem:[#allocation21_spill] sm:$0xff] %v7503_v44  ;;  %v7510_v21 = vld [vmem:[%s9491_s1 + $0x100] sm:$0xff]  ;;  %vm7512_vm13 = vmand %vm1287_vm0, %vm1288_vm5 }
  0xc6   :  { %v9668_v60 = vsel %vm7487_vm9, 4294967295, %v9667_v60  ;;  %v7495_v35 = vadd.s32 4480, %v6767_v47  ;;  %v1279_v30 = vadd.f32 %v1278_v22, %v1267_v17  ;;  %vm1286_vm10 = vmand %vm1284_vm2, %vm1285_vm1  ;;  %vm1299_vm3 = vcmp.ge.s32.totalorder %v1295_v20, %v6771_v49  ;;  %9671 = vst [vmem:[#allocation22_spill] sm:$0xff] %v7510_v21 }
  0xc7   :  { %9669 = vst [vmem:[#allocation20_spill] sm:$0xff] %v9668_v60  ;;  %vm1300_vm8 = vcmp.lt.s32.totalorder %v1295_v20, %v6782_v53  ;;  %v9672_v17 = vmov 0  ;;  %v1290_v22 = vsel %vm1286_vm10, %v7468_v2, 0.0  ;;  %vm1296_vm2 = vcmp.ge.s32.totalorder %v1295_v20, %v6769_v48  ;;  %v7542_v20 = vld [vmem:[%s9491_s1 + $0x108] sm:$0xff]  ;;  %v7562_v2 = vld [vmem:[%s9491_s1 + $0x110] sm:$0xff] }
  0xc8   :  { %v9673_v17 = vsel %vm7512_vm13, 4294967295, %v9672_v17  ;;  %v7521_v16 = vadd.s32 4608, %v6767_v47  ;;  %v1291_v13 = vadd.f32 %v1290_v22, %v1279_v30  ;;  %vm1298_vm14 = vmand %vm1296_vm2, %vm1297_vm7  ;;  %vm1311_vm0 = vcmp.ge.s32.totalorder %v7436_v41, %v6771_v49  ;;  %9678 = vst [vmem:[#allocation25_spill] sm:$0xff] %v7542_v20 }
  0xc9   :  { %9674 = vst [vmem:[#allocation23_spill] sm:$0xff] %v9673_v17  ;;  %vm1312_vm5 = vcmp.lt.s32.totalorder %v7436_v41, %v6782_v53  ;;  %vm7532_vm10 = vmand %vm1299_vm3, %vm1300_vm8  ;;  %v9675_v40 = vmov 0  ;;  %v1302_v42 = vsel %vm1298_vm14, %v7503_v44, 0.0  ;;  %vm1308_vm1 = vcmp.ge.s32.totalorder %v7436_v41, %v6769_v48 }
  0xca   :  { %v9676_v40 = vsel %vm7532_vm10, 4294967295, %v9675_v40  ;;  %v7547_v30 = vadd.s32 4736, %v6767_v47  ;;  %v1303_v22 = vadd.f32 %v1302_v42, %v1291_v13  ;;  %vm9679_vm3 = vcmp.lt.s32.totalorder %v7436_v41, %v6784_v54  ;;  %9680 = vst [vmem:[#allocation26_spill] sm:$0xff] %v7562_v2  ;;  %v31_v13 = vld [vmem:[%s9491_s1 + $0x28] sm:$0xff]  ;;  %v30_v42 = vld [vmem:[%s9491_s1 + $0x20] sm:$0xff] }
  0xcb   :  { %9677 = vst [vmem:[#allocation24_spill] sm:$0xff] %v9676_v40  ;;  %vm1310_vm8 = vmand %vm1308_vm1, %vm9679_vm3  ;;  %vm1324_vm14 = vcmp.lt.s32.totalorder %v7453_v50, %v6782_v53  ;;  %v9681_v60 = vmov 0  ;;  %vm1320_vm3 = vcmp.ge.s32.totalorder %v7453_v50, %v6769_v48  ;;  %vm1333_vm7 = vcmp.lt.s32.totalorder %v7478_v11, %v6784_v54 }
  0xcc   :  { %vm7576_vm1 = vmand %vm1311_vm0, %vm1312_vm5  ;;  %v1314_v44 = vsel %vm1310_vm8, %v7510_v21, 0.0  ;;  %vm9684_vm0 = vcmp.lt.s32.totalorder %v7453_v50, %v6784_v54  ;;  %vm1335_vm8 = vcmp.ge.s32.totalorder %v7478_v11, %v6771_v49  ;;  %vm1336_vm10 = vcmp.lt.s32.totalorder %v7478_v11, %v6782_v53  ;;  %v7623_v21 = vld [vmem:[%s9491_s1 + $0x118] sm:$0xff] }
  0xcd   :  { %v9682_v60 = vsel %vm7576_vm1, 4294967295, %v9681_v60  ;;  %v1315_v40 = vadd.f32 %v1314_v44, %v1303_v22  ;;  %vm1322_vm5 = vmand %vm1320_vm3, %vm9684_vm0  ;;  %vm9685_vm2 = vcmp.ge.s32.totalorder %v7453_v50, %v6771_v49  ;;  %v9686_v17 = vmov 0  ;;  %v35_v22 = vld [vmem:[%s9491_s1 + $0x48] sm:$0xff]  ;;  %9690 = vst [vmem:[#allocation29_spill] sm:$0xff] %v7623_v21 }
  0xce   :  { %9683 = vst [vmem:[#allocation27_spill] sm:$0xff] %v9682_v60  ;;  %vm7600_vm13 = vmand %vm9685_vm2, %vm1324_vm14  ;;  %v1326_v44 = vsel %vm1322_vm5, %v7542_v20, 0.0  ;;  %vm1345_vm3 = vcmp.lt.s32.totalorder %v7495_v35, %v6784_v54  ;;  %vm9689_vm2 = vcmp.ge.s32.totalorder %v7478_v11, %v6769_v48  ;;  %vm1348_vm5 = vcmp.lt.s32.totalorder %v7495_v35, %v6782_v53  ;;  %v7654_v11 = vld [vmem:[%s9491_s1 + $0x120] sm:$0xff] }
  0xcf   :  { %v9687_v17 = vsel %vm7600_vm13, 4294967295, %v9686_v17  ;;  %v1327_v50 = vadd.f32 %v1326_v44, %v1315_v40  ;;  %vm1334_vm14 = vmand %vm9689_vm2, %vm1333_vm7  ;;  %vm1357_vm0 = vcmp.lt.s32.totalorder %v7521_v16, %v6784_v54  ;;  %v6209_v40 = vld [vmem:[%s9492_s2 + $0x200] sm:$0xff]   ;;  %v9691_v44 = vmov 0  ;;  %9694 = vst [vmem:[#allocation30_spill] sm:$0xff] %v7654_v11 }
  0xd0   :  { %9688 = vst [vmem:[#allocation28_spill] sm:$0xff] %v9687_v17  ;;  %vm7635_vm1 = vmand %vm1335_vm8, %vm1336_vm10  ;;  %v1338_v41 = vsel %vm1334_vm14, %v7562_v2, 0.0  ;;  %v80_v20 = vpack.c.bf16 %v31_v13, %v31_v13  ;;  %v79_v17 = vpack.c.bf16 %v30_v42, %v30_v42  ;;  %vm9693_vm10 = vcmp.ge.s32.totalorder %v7495_v35, %v6769_v48  ;;  %v6212_v13 = vld [vmem:[%s9492_s2 + $0x248] sm:$0xff]  }
  0xd1   :  { %v9692_v44 = vsel %vm7635_vm1, 4294967295, %v9691_v44  ;;  %v1339_v60 = vadd.f32 %v1338_v41, %v1327_v50  ;;  %vm1346_vm8 = vmand %vm9693_vm10, %vm1345_vm3  ;;  %vm1360_vm2 = vcmp.lt.s32.totalorder %v7521_v16, %v6782_v53  ;;  %v84_v42 = vpack.c.bf16 %v35_v22, %v35_v22  ;;  %v7686_v2 = vld [vmem:[%s9491_s1 + $0x128] sm:$0xff] }
  0xd2   :  { %vm9695_vm14 = vcmp.ge.s32.totalorder %v7495_v35, %v6771_v49  ;;  %v9696_v41 = vmov 0  ;;  %v1350_v50 = vsel %vm1346_vm8, %v7623_v21, 0.0  ;;  %vm1356_vm10 = vcmp.ge.s32.totalorder %v7521_v16, %v6769_v48  ;;  %4090 = vmatprep.mubr.bf16.mxu1 %v80_v20  ;;  %9699 = vst [vmem:[#allocation32_spill] sm:$0xff] %v7686_v2 }
  0xd3   :  { %vm7667_vm3 = vmand %vm9695_vm14, %vm1348_vm5  ;;  %vm1369_vm7 = vcmp.lt.s32.totalorder %v7547_v30, %v6784_v54  ;;  %v1379_v22 = vadd.s32 4864, %v6767_v47  ;;  %v1351_v61 = vadd.f32 %v1350_v50, %v1339_v60  ;;  %v7695_v60 = vld [vmem:[%s9491_s1 + $0x130] sm:$0xff]  ;;  %4091 = vmatmul.mubr.bf16.vlgmr.msra.gmra.mrb[4].mxu1 %v79_v17  ;;  %v9702_v20 = vmov 0  ;;  %v6213_v17 = vld [vmem:[%s9492_s2 + $0x208] sm:$0xff]  }
  0xd4   :  { %v9697_v41 = vsel %vm7667_vm3, 4294967295, %v9696_v41  ;;  %vm1358_vm5 = vmand %vm1356_vm10, %vm1357_vm0  ;;  %9700 = vst [vmem:[#allocation33_spill] sm:$0xff] %v7695_v60  ;;  %vm9701_vm0 = vcmp.ge.s32.totalorder %v7521_v16, %v6771_v49  ;;  %vm1368_vm8 = vcmp.ge.s32.totalorder %v7547_v30, %v6769_v48  ;;  %v1391_v35 = vadd.s32 4992, %v6767_v47  ;;  %5620 = vmatpush3.bf16.msra.mxu1 %v6209_v40  ;;  %v6216_v16 = vld [vmem:[%s9492_s2 + $0x250] sm:$0xff]   ;;  %4170 = vmatprep.mubr.bf16.mxu1 %v84_v42  ;;  %v7741_v42 = vld [vmem:[%s9491_s1 + $0x138] sm:$0xff] }
  0xd5   :  { %9698 = vst [vmem:[#allocation31_spill] sm:$0xff] %v9697_v41  ;;  %vm7703_vm10 = vmand %vm9701_vm0, %vm1360_vm2  ;;  %v1362_v50 = vsel %vm1358_vm5, %v7654_v11, 0.0  ;;  %vm1383_vm5 = vcmp.ge.s32.totalorder %v1379_v22, %v6771_v49  ;;  %vm1384_vm0 = vcmp.lt.s32.totalorder %v1379_v22, %v6782_v53  ;;  %5621 = vmatprep.subr.bf16.mxu1 %v6212_v13  ;;  %vm9705_vm14 = vcmp.lt.s32.totalorder %v7547_v30, %v6782_v53  ;;  %v7755_v41 = vld [vmem:[%s9491_s1 + $0x140] sm:$0xff] }
  0xd6   :  { %v9703_v20 = vsel %vm7703_vm10, 4294967295, %v9702_v20  ;;  %v1363_v21 = vadd.f32 %v1362_v50, %v1351_v61  ;;  %vm1370_vm2 = vmand %vm1368_vm8, %vm1369_vm7  ;;  %vm9706_vm3 = vcmp.ge.s32.totalorder %v7547_v30, %v6771_v49  ;;  %v9707_v61 = vmov 0  ;;  %9710 = vst [vmem:[#allocation36_spill] sm:$0xff] %v7741_v42 }
  0xd7   :  { %9704 = vst [vmem:[#allocation34_spill] sm:$0xff] %v9703_v20  ;;  %vm7732_vm1 = vmand %vm9706_vm3, %vm9705_vm14  ;;  %v1374_v40 = vsel %vm1370_vm2, %v7686_v2, 0.0  ;;  %vm1380_vm10 = vcmp.ge.s32.totalorder %v1379_v22, %v6769_v48  ;;  %vm1393_vm7 = vcmp.lt.s32.totalorder %v1391_v35, %v6784_v54  ;;  %v1403_v13 = vadd.s32 5120, %v6767_v47  ;;  %v7809_v20 = vld [vmem:[%s9491_s1 + $0x150] sm:$0xff] }
  0xd8   :  { %v9708_v61 = vsel %vm7732_vm1, 4294967295, %v9707_v61  ;;  %v1375_v50 = vadd.f32 %v1374_v40, %v1363_v21  ;;  %vm9711_vm3 = vcmp.lt.s32.totalorder %v1379_v22, %v6784_v54  ;;  %9712 = vst [vmem:[#allocation37_spill] sm:$0xff] %v7755_v41  ;;  %v6217_v21 = vld [vmem:[%s9492_s2 + $0x210] sm:$0xff]   ;;  %v6220_v40 = vld [vmem:[%s9492_s2 + $0x258] sm:$0xff]   ;;  %v9713_v30 = vmov 0  ;;  %5622 = vmatpush3.bf16.msra.mxu1 %v6213_v17  ;;  %v7795_v17 = vld [vmem:[%s9491_s1 + $0x148] sm:$0xff] }
  0xd9   :  { %9709 = vst [vmem:[#allocation35_spill] sm:$0xff] %v9708_v61  ;;  %vm1382_vm8 = vmand %vm1380_vm10, %vm9711_vm3  ;;  %vm1392_vm3 = vcmp.ge.s32.totalorder %v1391_v35, %v6769_v48  ;;  %v1415_v61 = vadd.s32 5248, %v6767_v47  ;;  %vm1408_vm2 = vcmp.lt.s32.totalorder %v1403_v13, %v6782_v53  ;;  %5623 = vmatprep.subr.bf16.mxu1 %v6216_v16  ;;  %vm9717_vm14 = vcmp.ge.s32.totalorder %v1391_v35, %v6771_v49 }
  0xda   :  { %vm7767_vm10 = vmand %vm1383_vm5, %vm1384_vm0  ;;  %v1386_v2 = vsel %vm1382_vm8, %v7695_v60, 0.0  ;;  %vm1407_vm0 = vcmp.ge.s32.totalorder %v1403_v13, %v6771_v49  ;;  %vm9716_vm8 = vcmp.lt.s32.totalorder %v1391_v35, %v6782_v53  ;;  %v9718_v22 = vmov 0  ;;  %9721 = vst [vmem:[#allocation40_spill] sm:$0xff] %v7795_v17 }
  0xdb   :  { %v9714_v30 = vsel %vm7767_vm10, 4294967295, %v9713_v30  ;;  %v1387_v11 = vadd.f32 %v1386_v2, %v1375_v50  ;;  %vm1394_vm5 = vmand %vm1392_vm3, %vm1393_vm7  ;;  %vm1404_vm10 = vcmp.ge.s32.totalorder %v1403_v13, %v6769_v48  ;;  %vm1417_vm7 = vcmp.lt.s32.totalorder %v1415_v61, %v6784_v54  ;;  %9723 = vst [vmem:[#allocation41_spill] sm:$0xff] %v7809_v20 }
  0xdc   :  { %9715 = vst [vmem:[#allocation38_spill] sm:$0xff] %v9714_v30  ;;  %vm7786_vm1 = vmand %vm9717_vm14, %vm9716_vm8  ;;  %v1398_v2 = vsel %vm1394_vm5, %v7741_v42, 0.0  ;;  %v1427_v16 = vadd.s32 5376, %v6767_v47  ;;  %vm9722_vm14 = vcmp.lt.s32.totalorder %v1403_v13, %v6784_v54  ;;  %v9724_v35 = vmov 0  ;;  %5624 = vmatpush3.bf16.msra.mxu1 %v6217_v21  ;;  %v7849_v21 = vld [vmem:[%s9491_s1 + $0x158] sm:$0xff]  ;;  %v7863_v30 = vld [vmem:[%s9491_s1 + $0x160] sm:$0xff] }
  0xdd   :  { %v9719_v22 = vsel %vm7786_vm1, 4294967295, %v9718_v22  ;;  %v1399_v50 = vadd.f32 %v1398_v2, %v1387_v11  ;;  %vm1406_vm3 = vmand %vm1404_vm10, %vm9722_vm14  ;;  %v6221_v11 = vld [vmem:[%s9492_s2 + $0x218] sm:$0xff]   ;;  %v6224_v2 = vld [vmem:[%s9492_s2 + $0x260] sm:$0xff]   ;;  %vm1416_vm14 = vcmp.ge.s32.totalorder %v1415_v61, %v6769_v48  ;;  %5625 = vmatprep.subr.bf16.mxu1 %v6220_v40  ;;  %vm9728_vm5 = vcmp.ge.s32.totalorder %v1415_v61, %v6771_v49  ;;  %9732 = vst [vmem:[#allocation44_spill] sm:$0xff] %v7849_v21 }
  0xde   :  { %9720 = vst [vmem:[#allocation39_spill] sm:$0xff] %v9719_v22  ;;  %vm7821_vm10 = vmand %vm1407_vm0, %vm1408_vm2  ;;  %v1410_v42 = vsel %vm1406_vm3, %v7755_v41, 0.0  ;;  %v1439_v22 = vadd.s32 5504, %v6767_v47  ;;  %vm1431_vm0 = vcmp.ge.s32.totalorder %v1427_v16, %v6771_v49  ;;  %vm1432_vm8 = vcmp.lt.s32.totalorder %v1427_v16, %v6782_v53 }
  0xdf   :  { %v9725_v35 = vsel %vm7821_vm10, 4294967295, %v9724_v35  ;;  %v1411_v60 = vadd.f32 %v1410_v42, %v1399_v50  ;;  %vm1418_vm2 = vmand %vm1416_vm14, %vm1417_vm7  ;;  %vm9727_vm3 = vcmp.lt.s32.totalorder %v1415_v61, %v6782_v53  ;;  %v9729_v13 = vmov 0  ;;  %9734 = vst [vmem:[#allocation45_spill] sm:$0xff] %v7863_v30 }
  0xe0   :  { %9726 = vst [vmem:[#allocation42_spill] sm:$0xff] %v9725_v35  ;;  %vm7840_vm1 = vmand %vm9728_vm5, %vm9727_vm3  ;;  %v1422_v42 = vsel %vm1418_vm2, %v7795_v17, 0.0  ;;  %vm1428_vm10 = vcmp.ge.s32.totalorder %v1427_v16, %v6769_v48  ;;  %vm1441_vm7 = vcmp.lt.s32.totalorder %v1439_v22, %v6784_v54  ;;  %v1451_v40 = vadd.s32 5632, %v6767_v47  ;;  %5626 = vmatpush3.bf16.msra.mxu1 %v6221_v11  ;;  %v7903_v11 = vld [vmem:[%s9491_s1 + $0x168] sm:$0xff]  ;;  %v7917_v35 = vld [vmem:[%s9491_s1 + $0x170] sm:$0xff] }
  0xe1   :  { %v9730_v13 = vsel %vm7840_vm1, 4294967295, %v9729_v13  ;;  %v1423_v50 = vadd.f32 %v1422_v42, %v1411_v60  ;;  %vm9733_vm5 = vcmp.lt.s32.totalorder %v1427_v16, %v6784_v54  ;;  %v6225_v60 = vld [vmem:[%s9492_s2 + $0x220] sm:$0xff]   ;;  %v6228_v42 = vld [vmem:[%s9492_s2 + $0x268] sm:$0xff]   ;;  %v9735_v61 = vmov 0  ;;  %5627 = vmatprep.subr.bf16.mxu1 %v6224_v2  ;;  %9743 = vst [vmem:[#allocation48_spill] sm:$0xff] %v7903_v11  ;;  %9745 = vst [vmem:[#allocation49_spill] sm:$0xff] %v7917_v35 }
  0xe2   :  { %9731 = vst [vmem:[#allocation43_spill] sm:$0xff] %v9730_v13  ;;  %vm1430_vm14 = vmand %vm1428_vm10, %vm9733_vm5  ;;  %vm1440_vm5 = vcmp.ge.s32.totalorder %v1439_v22, %v6769_v48  ;;  %v1463_v13 = vadd.s32 5760, %v6767_v47  ;;  %vm1456_vm3 = vcmp.lt.s32.totalorder %v1451_v40, %v6782_v53  ;;  %vm9739_vm2 = vcmp.ge.s32.totalorder %v1439_v22, %v6771_v49 }
  0xe3   :  { %vm7875_vm10 = vmand %vm1431_vm0, %vm1432_vm8  ;;  %v1434_v17 = vsel %vm1430_vm14, %v7809_v20, 0.0  ;;  %vm1455_vm0 = vcmp.ge.s32.totalorder %v1451_v40, %v6771_v49  ;;  %vm9738_vm14 = vcmp.lt.s32.totalorder %v1439_v22, %v6782_v53  ;;  %v9740_v16 = vmov 0 }
  0xe4   :  { %v9736_v61 = vsel %vm7875_vm10, 4294967295, %v9735_v61  ;;  %v1435_v41 = vadd.f32 %v1434_v17, %v1423_v50  ;;  %vm1442_vm8 = vmand %vm1440_vm5, %vm1441_vm7  ;;  %vm1452_vm10 = vcmp.ge.s32.totalorder %v1451_v40, %v6769_v48  ;;  %vm1465_vm7 = vcmp.lt.s32.totalorder %v1463_v13, %v6784_v54  ;;  %5628 = vmatpush3.bf16.msra.mxu1 %v6225_v60  ;;  %v7957_v60 = vld [vmem:[%s9491_s1 + $0x178] sm:$0xff] }
  0xe5   :  { %9737 = vst [vmem:[#allocation46_spill] sm:$0xff] %v9736_v61  ;;  %vm7894_vm1 = vmand %vm9739_vm2, %vm9738_vm14  ;;  %v1446_v17 = vsel %vm1442_vm8, %v7849_v21, 0.0  ;;  %v1475_v2 = vadd.s32 5888, %v6767_v47  ;;  %vm9744_vm2 = vcmp.lt.s32.totalorder %v1451_v40, %v6784_v54  ;;  %v9746_v22 = vmov 0  ;;  %5629 = vmatprep.subr.bf16.mxu1 %v6228_v42 }
  0xe6   :  { %v9741_v16 = vsel %vm7894_vm1, 4294967295, %v9740_v16  ;;  %v1447_v50 = vadd.f32 %v1446_v17, %v1435_v41  ;;  %vm1454_vm5 = vmand %vm1452_vm10, %vm9744_vm2  ;;  %v6229_v41 = vld [vmem:[%s9492_s2 + $0x228] sm:$0xff]   ;;  %v6232_v17 = vld [vmem:[%s9492_s2 + $0x270] sm:$0xff]   ;;  %vm1464_vm2 = vcmp.ge.s32.totalorder %v1463_v13, %v6769_v48  ;;  %vm9750_vm8 = vcmp.ge.s32.totalorder %v1463_v13, %v6771_v49  ;;  %9754 = vst [vmem:[#allocation52_spill] sm:$0xff] %v7957_v60 }
  0xe7   :  { %9742 = vst [vmem:[#allocation47_spill] sm:$0xff] %v9741_v16  ;;  %vm7929_vm10 = vmand %vm1455_vm0, %vm1456_vm3  ;;  %v1458_v21 = vsel %vm1454_vm5, %v7863_v30, 0.0  ;;  %v1487_v16 = vadd.s32 6016, %v6767_v47  ;;  %vm1479_vm0 = vcmp.ge.s32.totalorder %v1475_v2, %v6771_v49  ;;  %vm1480_vm14 = vcmp.lt.s32.totalorder %v1475_v2, %v6782_v53  ;;  %v6233_v30 = vld [vmem:[%s9492_s2 + $0x230] sm:$0xff]  }
  0xe8   :  { %v9747_v22 = vsel %vm7929_vm10, 4294967295, %v9746_v22  ;;  %v1459_v20 = vadd.f32 %v1458_v21, %v1447_v50  ;;  %vm1466_vm3 = vmand %vm1464_vm2, %vm1465_vm7  ;;  %vm9749_vm5 = vcmp.lt.s32.totalorder %v1463_v13, %v6782_v53  ;;  %v9751_v40 = vmov 0  ;;  %v74_v13 = vld [vmem:[%s9491_s1 + $0x180] sm:$0xff]  ;;  %5630 = vmatpush3.bf16.msra.mxu1 %v6229_v41  ;;  %v29_v41 = vld [vmem:[%s9491_s1 + $0x18] sm:$0xff] }
  0xe9   :  { %9748 = vst [vmem:[#allocation50_spill] sm:$0xff] %v9747_v22  ;;  %vm7948_vm1 = vmand %vm9750_vm8, %vm9749_vm5  ;;  %v1470_v21 = vsel %vm1466_vm3, %v7903_v11, 0.0  ;;  %vm1476_vm10 = vcmp.ge.s32.totalorder %v1475_v2, %v6769_v48  ;;  %v7961_v42 = vadd.s32 6144, %v6767_v47  ;;  %vm9756_vm8 = vcmp.lt.s32.totalorder %v1475_v2, %v6784_v54  ;;  %v6236_v22 = vld [vmem:[%s9492_s2 + $0x278] sm:$0xff]   ;;  %5631 = vmatprep.subr.bf16.mxu1 %v6232_v17  ;;  %v34_v17 = vld [vmem:[%s9491_s1 + $0x40] sm:$0xff] }
  0xea   :  { %v9752_v40 = vsel %vm7948_vm1, 4294967295, %v9751_v40  ;;  %v1471_v50 = vadd.f32 %v1470_v21, %v1459_v20  ;;  %vm1478_vm2 = vmand %vm1476_vm10, %vm9756_vm8  ;;  %vm1491_vm3 = vcmp.ge.s32.totalorder %v1487_v16, %v6771_v49  ;;  %vm1492_vm5 = vcmp.lt.s32.totalorder %v1487_v16, %v6782_v53  ;;  %v39_v11 = vld [vmem:[%s9491_s1 + $0x68] sm:$0xff] }
  0xeb   :  { %9753 = vst [vmem:[#allocation51_spill] sm:$0xff] %v9752_v40  ;;  %9755 = vst [vmem:[#allocation53_spill] sm:$0xff] %v7961_v42  ;;  %v1482_v21 = vsel %vm1478_vm2, %v7917_v35, 0.0  ;;  %vm1488_vm10 = vcmp.ge.s32.totalorder %v1487_v16, %v6769_v48  ;;  %vm1500_vm8 = vcmp.lt.s32.totalorder %v7961_v42, %v6784_v54  ;;  %vm9759_vm1 = vcmp.lt.s32.totalorder %v1487_v16, %v6784_v54  ;;  %v6178_v16 = vld [vmem:[%s9492_s2 + $0xc8] sm:$0xff]   ;;  %v6337_v35 = vld [vmem:[%s9492_s2 + $0x600] sm:$0xff]  }
  0xec   :  { %vm7983_vm7 = vmand %vm1479_vm0, %vm1480_vm14  ;;  %v1483_v61 = vadd.f32 %v1482_v21, %v1471_v50  ;;  %v9760_v2 = vmov 0  ;;  %vm1499_vm0 = vcmp.ge.s32.totalorder %v7961_v42, %v6769_v48  ;;  %v6237_v50 = vld [vmem:[%s9492_s2 + $0x238] sm:$0xff]   ;;  %v6240_v48 = vld [vmem:[%s9492_s2 + $0x340] sm:$0xff]   ;;  %5632 = vmatpush3.bf16.msra.mxu1 %v6233_v30  ;;  %v78_v42 = vpack.c.bf16 %v29_v41, %v29_v41 }
  0xed   :  { %vm1490_vm13 = vmand %vm1488_vm10, %vm9759_vm1  ;;  %5633 = vmatprep.subr.bf16.mxu1 %v6236_v22  ;;  %v6241_v30 = vld [vmem:[%s9492_s2 + $0x300] sm:$0xff]   ;;  %v6244_v22 = vld [vmem:[%s9492_s2 + $0x348] sm:$0xff]   ;;  %vm928_vm2 = vcmp.lt.s32.totalorder %v6767_v47, %v6782_v53 }
  0xee   :  { %vm7996_vm14 = vmand %vm1491_vm3, %vm1492_vm5  ;;  %v1494_v40 = vsel %vm1490_vm13, %v7957_v60, 0.0  ;;  %v6182_v41 = vld [vmem:[%s9492_s2 + $0xd0] sm:$0xff]   ;;  %vm927_vm13 = vcmp.ge.s32.totalorder %v6767_v47, %v6771_v49  ;;  %vm939_vm3 = vcmp.ge.s32.totalorder %v6780_v52, %v6771_v49  ;;  %vm940_vm5 = vcmp.lt.s32.totalorder %v6780_v52, %v6782_v53  ;;  %v6412_v52 = vld [vmem:[%s9492_s2 + $0x858] sm:$0xff]  }
  0xef   :  { %v9761_v2 = vsel %vm7996_vm14, 4294967295, %v9760_v2  ;;  %v1495_v54 = vadd.f32 %v1494_v40, %v1483_v61  ;;  %vm1501_vm1 = vmand %vm1499_vm0, %vm1500_vm8  ;;  %v6175_v40 = vld [vmem:[%s9492_s2 + $0x80] sm:$0xff]   ;;  %v6409_v47 = vld [vmem:[%s9492_s2 + $0x810] sm:$0xff]   ;;  %vm9779_vm0 = vnez %v9609_v9 }
  0xf0   :  { %9762 = vst [vmem:[#allocation54_spill] sm:$0xff] %v9761_v2  ;;  %v1505_v21 = vsel %vm1501_vm1, %v74_v13, 0.0  ;;  %v83_v2 = vpack.c.bf16 %v34_v17, %v34_v17  ;;  %5634 = vmatpush3.bf16.msra.mxu1 %v6237_v50  ;;  %v88_v13 = vpack.c.bf16 %v39_v11, %v39_v11  ;;  %v6245_v11 = vld [vmem:[%s9492_s2 + $0x308] sm:$0xff]   ;;  %v6183_v50 = vld [vmem:[%s9492_s2 + $0x90] sm:$0xff]   ;;  %v6187_v17 = vld [vmem:[%s9492_s2 + $0x98] sm:$0xff]   ;;  %vm9781_vm1 = vnez %v9612_v15 }
  0xf1   :  { %v1506_v61 = vadd.f32 %v1505_v21, %v1495_v54  ;;  %5663 = vmatprep.subr.bf16.mxu1 %v6240_v48  ;;  %v6179_v54 = vld [vmem:[%s9492_s2 + $0x88] sm:$0xff]   ;;  %v6190_v48 = vld [vmem:[%s9492_s2 + $0xe0] sm:$0xff]   ;;  %v6253_v21 = vld [vmem:[%s9492_s2 + $0x318] sm:$0xff]  }
  0xf2   :  { %vm8604_vm10 = vmand %vm927_vm13, %vm928_vm2  ;;  %v6452_v9 = vld [vmem:[%s9492_s2 + $0x968] sm:$0xff]   ;;  %vm9783_vm13 = vnez %v9615_v28  ;;  %vm9785_vm2 = vnez %v9618_v39  ;;  %v6391_v39 = vld [vmem:[%s9492_s2 + $0x6b0] sm:$0xff]  }
  0xf3   :  { %v1515_v60 = vpack.c.bf16 %v1506_v61, %v1506_v61  ;;  %4171 = vmatmul.mubr.bf16.vlgmr.msra.gmra.mrb[8].mxu1 %v83_v2  ;;  %v6249_v2 = vld [vmem:[%s9492_s2 + $0x310] sm:$0xff]   ;;  %v6256_v61 = vld [vmem:[%s9492_s2 + $0x360] sm:$0xff]   ;;  %vm8611_vm8 = vmand %vm939_vm3, %vm940_vm5  ;;  %vm9787_vm3 = vnez %v9620_v58  ;;  %vm9789_vm5 = vnez %v9622_v10 }
  0xf4   :  { %5664 = vmatpush3.bf16.msra.mxu1 %v6241_v30  ;;  %4250 = vmatprep.mubr.bf16.mxu1 %v88_v13  ;;  %v6194_v30 = vld [vmem:[%s9492_s2 + $0xe8] sm:$0xff]   ;;  %v6257_v13 = vld [vmem:[%s9492_s2 + $0x320] sm:$0xff]   ;;  %v6394_v58 = vld [vmem:[%s9492_s2 + $0x6f8] sm:$0xff]  }
  0xf5   :  { %6094 = vmatmul.mubr.bf16.vlgmr.msra.gmra.mrb[0].mxu0 %v1515_v60  ;;  %v6248_v60 = vld [vmem:[%s9492_s2 + $0x350] sm:$0xff]   ;;  %5665 = vmatprep.subr.bf16.mxu1 %v6244_v22  ;;  %v6260_v22 = vld [vmem:[%s9492_s2 + $0x368] sm:$0xff]  }
  0xf6   :  { %5554 = vmatpush3.bf16.msra.mxu0 %v6175_v40  ;;  %4050 = vmatprep.mubr.bf16.mxu0 %v78_v42  ;;  %v6186_v42 = vld [vmem:[%s9492_s2 + $0xd8] sm:$0xff]   ;;  %v6191_v40 = vld [vmem:[%s9492_s2 + $0xa0] sm:$0xff]  }
  0xf7   :  { %5555 = vmatprep.subr.bf16.mxu0 %v6178_v16  ;;  %v6252_v16 = vld [vmem:[%s9492_s2 + $0x358] sm:$0xff]  }
  0xf8   :  { %5666 = vmatpush3.bf16.msra.mxu1 %v6245_v11  ;;  %v6261_v11 = vld [vmem:[%s9492_s2 + $0x328] sm:$0xff]  }
  0xf9   :  { %5667 = vmatprep.subr.bf16.mxu1 %v6248_v60  ;;  %v6264_v60 = vld [vmem:[%s9492_s2 + $0x370] sm:$0xff]  }
  0xfa   :  { %5556 = vmatpush3.bf16.msra.mxu0 %v6179_v54  ;;  %v6195_v54 = vld [vmem:[%s9492_s2 + $0xa8] sm:$0xff]  }
  0xfb   :  { %5557 = vmatprep.subr.bf16.mxu0 %v6182_v41  ;;  %v6198_v41 = vld [vmem:[%s9492_s2 + $0xf0] sm:$0xff]  }
  0xfc   :  { %5668 = vmatpush3.bf16.msra.mxu1 %v6249_v2  ;;  %v6265_v2 = vld [vmem:[%s9492_s2 + $0x330] sm:$0xff]  }
  0xfd   :  { %5669 = vmatprep.subr.bf16.mxu1 %v6252_v16  ;;  %v6268_v16 = vld [vmem:[%s9492_s2 + $0x378] sm:$0xff]  }
  0xfe   :  { %5558 = vmatpush3.bf16.msra.mxu0 %v6183_v50  ;;  %v6199_v50 = vld [vmem:[%s9492_s2 + $0xb0] sm:$0xff]  }
  0xff   :  { %5559 = vmatprep.subr.bf16.mxu0 %v6186_v42  ;;  %v6202_v42 = vld [vmem:[%s9492_s2 + $0xf8] sm:$0xff]  }
 0x100   :  { %5670 = vmatpush3.bf16.msra.mxu1 %v6253_v21  ;;  %v6206_v21 = vld [vmem:[%s9492_s2 + $0x1c0] sm:$0xff]  }
 0x101   :  { %5671 = vmatprep.subr.bf16.mxu1 %v6256_v61  ;;  %v33_v61 = vld [vmem:[%s9491_s1 + $0x38] sm:$0xff] }
 0x102   :  { %5560 = vmatpush3.bf16.msra.mxu0 %v6187_v17  ;;  %v6203_v17 = vld [vmem:[%s9492_s2 + $0xb8] sm:$0xff]  }
 0x103   :  { %5561 = vmatprep.subr.bf16.mxu0 %v6190_v48  ;;  %v28_v48 = vld [vmem:[%s9491_s1 + $0x10] sm:$0xff] }
 0x104   :  { %5672 = vmatpush3.bf16.msra.mxu1 %v6257_v13  ;;  %v6272_v13 = vld [vmem:[%s9492_s2 + $0x440] sm:$0xff]  }
 0x105   :  { %5673 = vmatprep.subr.bf16.mxu1 %v6260_v22  ;;  %v43_v22 = vld [vmem:[%s9491_s1 + $0x88] sm:$0xff] }
 0x106   :  { %5562 = vmatpush3.bf16.msra.mxu0 %v6191_v40  ;;  %v6269_v40 = vld [vmem:[%s9492_s2 + $0x338] sm:$0xff]  }
 0x107   :  { %5563 = vmatprep.subr.bf16.mxu0 %v6194_v30  ;;  %v38_v30 = vld [vmem:[%s9491_s1 + $0x60] sm:$0xff] }
 0x108   :  { %5674 = vmatpush3.bf16.msra.mxu1 %v6261_v11  ;;  %v6210_v11 = vld [vmem:[%s9492_s2 + $0x1c8] sm:$0xff]  }
 0x109   :  { %5675 = vmatprep.subr.bf16.mxu1 %v6264_v60  ;;  %v82_v60 = vpack.c.bf16 %v33_v61, %v33_v61  ;;  %v6280_v61 = vld [vmem:[%s9492_s2 + $0x450] sm:$0xff]  }
 0x10a   :  { %5564 = vmatpush3.bf16.msra.mxu0 %v6195_v54  ;;  %v77_v54 = vpack.c.bf16 %v28_v48, %v28_v48  ;;  %v6214_v48 = vld [vmem:[%s9492_s2 + $0x1d0] sm:$0xff]  }
 0x10b   :  { %5565 = vmatprep.subr.bf16.mxu0 %v6198_v41  ;;  %v6207_v41 = vld [vmem:[%s9492_s2 + $0x180] sm:$0xff]  }
 0x10c   :  { %5676 = vmatpush3.bf16.msra.mxu1 %v6265_v2  ;;  %v92_v2 = vpack.c.bf16 %v43_v22, %v43_v22  ;;  %v6284_v22 = vld [vmem:[%s9492_s2 + $0x458] sm:$0xff]  }
 0x10d   :  { %5677 = vmatprep.subr.bf16.mxu1 %v6268_v16  ;;  %v6276_v16 = vld [vmem:[%s9492_s2 + $0x448] sm:$0xff]  }
 0x10e   :  { %5566 = vmatpush3.bf16.msra.mxu0 %v6199_v50  ;;  %v87_v50 = vpack.c.bf16 %v38_v30, %v38_v30  ;;  %v6218_v30 = vld [vmem:[%s9492_s2 + $0x1d8] sm:$0xff]  }
 0x10f   :  { %5567 = vmatprep.subr.bf16.mxu0 %v6202_v42  ;;  %v6273_v42 = vld [vmem:[%s9492_s2 + $0x400] sm:$0xff]  }
 0x110   :  { %5678 = vmatpush3.bf16.msra.mxu1 %v6269_v40  ;;  %v6215_v40 = vld [vmem:[%s9492_s2 + $0x190] sm:$0xff]  }
 0x111   :  { %5707 = vmatprep.subr.bf16.mxu1 %v6272_v13  ;;  %v6281_v13 = vld [vmem:[%s9492_s2 + $0x410] sm:$0xff]  }
 0x112   :  { %5568 = vmatpush3.bf16.msra.mxu0 %v6203_v17  ;;  %v6211_v17 = vld [vmem:[%s9492_s2 + $0x188] sm:$0xff]  }
 0x113   :  { %5597 = vmatprep.subr.bf16.mxu0 %v6206_v21  ;;  %4251 = vmatmul.mubr.bf16.vlgmr.msra.gmra.mrb[12].mxu1 %v87_v50  ;;  %v6277_v21 = vld [vmem:[%s9492_s2 + $0x408] sm:$0xff]   ;;  %v6223_v50 = vld [vmem:[%s9492_s2 + $0x1a0] sm:$0xff]  }
 0x114   :  { %5708 = vmatpush3.bf16.msra.mxu1 %v6273_v42  ;;  %4330 = vmatprep.mubr.bf16.mxu1 %v92_v2  ;;  %v6226_v42 = vld [vmem:[%s9492_s2 + $0x1e8] sm:$0xff]   ;;  %v6289_v2 = vld [vmem:[%s9492_s2 + $0x420] sm:$0xff]  }
 0x115   :  { %4051 = vmatmul.mubr.bf16.vlgmr.msra.gmra.mrb[4].mxu0 %v77_v54  ;;  %5709 = vmatprep.subr.bf16.mxu1 %v6276_v16  ;;  %v6219_v54 = vld [vmem:[%s9492_s2 + $0x198] sm:$0xff]   ;;  %v6292_v16 = vld [vmem:[%s9492_s2 + $0x468] sm:$0xff]  }
 0x116   :  { %5598 = vmatpush3.bf16.msra.mxu0 %v6207_v41  ;;  %4130 = vmatprep.mubr.bf16.mxu0 %v82_v60  ;;  %v6222_v41 = vld [vmem:[%s9492_s2 + $0x1e0] sm:$0xff]  }
 0x117   :  { %5599 = vmatprep.subr.bf16.mxu0 %v6210_v11  ;;  %v6285_v11 = vld [vmem:[%s9492_s2 + $0x418] sm:$0xff]   ;;  %v6288_v60 = vld [vmem:[%s9492_s2 + $0x460] sm:$0xff]  }
 0x118   :  { %5710 = vmatpush3.bf16.msra.mxu1 %v6277_v21  ;;  %v6293_v21 = vld [vmem:[%s9492_s2 + $0x428] sm:$0xff]  }
 0x119   :  { %5711 = vmatprep.subr.bf16.mxu1 %v6280_v61  ;;  %v6296_v61 = vld [vmem:[%s9492_s2 + $0x470] sm:$0xff]  }
 0x11a   :  { %5600 = vmatpush3.bf16.msra.mxu0 %v6211_v17  ;;  %v6227_v17 = vld [vmem:[%s9492_s2 + $0x1a8] sm:$0xff]  }
 0x11b   :  { %5601 = vmatprep.subr.bf16.mxu0 %v6214_v48  ;;  %v6230_v48 = vld [vmem:[%s9492_s2 + $0x1f0] sm:$0xff]  }
 0x11c   :  { %5712 = vmatpush3.bf16.msra.mxu1 %v6281_v13  ;;  %v6297_v13 = vld [vmem:[%s9492_s2 + $0x430] sm:$0xff]  }
 0x11d   :  { %5713 = vmatprep.subr.bf16.mxu1 %v6284_v22  ;;  %v6300_v22 = vld [vmem:[%s9492_s2 + $0x478] sm:$0xff]  }
 0x11e   :  { %5602 = vmatpush3.bf16.msra.mxu0 %v6215_v40  ;;  %v6231_v40 = vld [vmem:[%s9492_s2 + $0x1b0] sm:$0xff]  }
 0x11f   :  { %5603 = vmatprep.subr.bf16.mxu0 %v6218_v30  ;;  %v6234_v30 = vld [vmem:[%s9492_s2 + $0x1f8] sm:$0xff]  }
 0x120   :  { %5714 = vmatpush3.bf16.msra.mxu1 %v6285_v11  ;;  %v6238_v11 = vld [vmem:[%s9492_s2 + $0x2c0] sm:$0xff]  }
 0x121   :  { %5715 = vmatprep.subr.bf16.mxu1 %v6288_v60  ;;  %v37_v60 = vld [vmem:[%s9491_s1 + $0x58] sm:$0xff] }
 0x122   :  { %5604 = vmatpush3.bf16.msra.mxu0 %v6219_v54  ;;  %v6235_v54 = vld [vmem:[%s9492_s2 + $0x1b8] sm:$0xff]  }
 0x123   :  { %5605 = vmatprep.subr.bf16.mxu0 %v6222_v41  ;;  %v32_v41 = vld [vmem:[%s9491_s1 + $0x30] sm:$0xff] }
 0x124   :  { %5716 = vmatpush3.bf16.msra.mxu1 %v6289_v2  ;;  %v6304_v2 = vld [vmem:[%s9492_s2 + $0x540] sm:$0xff]  }
 0x125   :  { %5717 = vmatprep.subr.bf16.mxu1 %v6292_v16  ;;  %v47_v16 = vld [vmem:[%s9491_s1 + $0xa8] sm:$0xff] }
 0x126   :  { %5606 = vmatpush3.bf16.msra.mxu0 %v6223_v50  ;;  %v6301_v50 = vld [vmem:[%s9492_s2 + $0x438] sm:$0xff]  }
 0x127   :  { %5607 = vmatprep.subr.bf16.mxu0 %v6226_v42  ;;  %v42_v42 = vld [vmem:[%s9491_s1 + $0x80] sm:$0xff] }
 0x128   :  { %5718 = vmatpush3.bf16.msra.mxu1 %v6293_v21  ;;  %v6242_v21 = vld [vmem:[%s9492_s2 + $0x2c8] sm:$0xff]  }
 0x129   :  { %5719 = vmatprep.subr.bf16.mxu1 %v6296_v61  ;;  %v86_v61 = vpack.c.bf16 %v37_v60, %v37_v60  ;;  %v6312_v60 = vld [vmem:[%s9492_s2 + $0x550] sm:$0xff]  }
 0x12a   :  { %5608 = vmatpush3.bf16.msra.mxu0 %v6227_v17  ;;  %v81_v17 = vpack.c.bf16 %v32_v41, %v32_v41  ;;  %v6246_v41 = vld [vmem:[%s9492_s2 + $0x2d0] sm:$0xff]  }
 0x12b   :  { %5609 = vmatprep.subr.bf16.mxu0 %v6230_v48  ;;  %v6239_v48 = vld [vmem:[%s9492_s2 + $0x280] sm:$0xff]  }
 0x12c   :  { %5720 = vmatpush3.bf16.msra.mxu1 %v6297_v13  ;;  %v96_v13 = vpack.c.bf16 %v47_v16, %v47_v16  ;;  %v6316_v16 = vld [vmem:[%s9492_s2 + $0x558] sm:$0xff]  }
 0x12d   :  { %5721 = vmatprep.subr.bf16.mxu1 %v6300_v22  ;;  %v6308_v22 = vld [vmem:[%s9492_s2 + $0x548] sm:$0xff]  }
 0x12e   :  { %5610 = vmatpush3.bf16.msra.mxu0 %v6231_v40  ;;  %v91_v40 = vpack.c.bf16 %v42_v42, %v42_v42  ;;  %v6250_v42 = vld [vmem:[%s9492_s2 + $0x2d8] sm:$0xff]  }
 0x12f   :  { %5611 = vmatprep.subr.bf16.mxu0 %v6234_v30  ;;  %v6305_v30 = vld [vmem:[%s9492_s2 + $0x500] sm:$0xff]  }
 0x130   :  { %5722 = vmatpush3.bf16.msra.mxu1 %v6301_v50  ;;  %v6247_v50 = vld [vmem:[%s9492_s2 + $0x290] sm:$0xff]  }
 0x131   :  { %5751 = vmatprep.subr.bf16.mxu1 %v6304_v2  ;;  %v6313_v2 = vld [vmem:[%s9492_s2 + $0x510] sm:$0xff]  }
 0x132   :  { %5612 = vmatpush3.bf16.msra.mxu0 %v6235_v54  ;;  %v6243_v54 = vld [vmem:[%s9492_s2 + $0x288] sm:$0xff]  }
 0x133   :  { %5641 = vmatprep.subr.bf16.mxu0 %v6238_v11  ;;  %4331 = vmatmul.mubr.bf16.vlgmr.msra.gmra.mrb[16].mxu1 %v91_v40  ;;  %v6309_v11 = vld [vmem:[%s9492_s2 + $0x508] sm:$0xff]   ;;  %v6255_v40 = vld [vmem:[%s9492_s2 + $0x2a0] sm:$0xff]  }
 0x134   :  { %5752 = vmatpush3.bf16.msra.mxu1 %v6305_v30  ;;  %4410 = vmatprep.mubr.bf16.mxu1 %v96_v13  ;;  %v6258_v30 = vld [vmem:[%s9492_s2 + $0x2e8] sm:$0xff]   ;;  %v6321_v13 = vld [vmem:[%s9492_s2 + $0x520] sm:$0xff]  }
 0x135   :  { %4131 = vmatmul.mubr.bf16.vlgmr.msra.gmra.mrb[8].mxu0 %v81_v17  ;;  %5753 = vmatprep.subr.bf16.mxu1 %v6308_v22  ;;  %v6251_v17 = vld [vmem:[%s9492_s2 + $0x298] sm:$0xff]   ;;  %v6324_v22 = vld [vmem:[%s9492_s2 + $0x568] sm:$0xff]  }
 0x136   :  { %5642 = vmatpush3.bf16.msra.mxu0 %v6239_v48  ;;  %4210 = vmatprep.mubr.bf16.mxu0 %v86_v61  ;;  %v6254_v48 = vld [vmem:[%s9492_s2 + $0x2e0] sm:$0xff]  }
 0x137   :  { %5643 = vmatprep.subr.bf16.mxu0 %v6242_v21  ;;  %v6317_v21 = vld [vmem:[%s9492_s2 + $0x518] sm:$0xff]   ;;  %v6320_v61 = vld [vmem:[%s9492_s2 + $0x560] sm:$0xff]  }
 0x138   :  { %5754 = vmatpush3.bf16.msra.mxu1 %v6309_v11  ;;  %v6325_v11 = vld [vmem:[%s9492_s2 + $0x528] sm:$0xff]  }
 0x139   :  { %5755 = vmatprep.subr.bf16.mxu1 %v6312_v60  ;;  %v5547_v60 = vpop.f32.mrb[0].mxu1 }
 0x13a   :  { %5644 = vmatpush3.bf16.msra.mxu0 %v6243_v54  ;;  %v6259_v54 = vld [vmem:[%s9492_s2 + $0x2a8] sm:$0xff]  }
 0x13b   :  { %5645 = vmatprep.subr.bf16.mxu0 %v6246_v41  ;;  %v6262_v41 = vld [vmem:[%s9492_s2 + $0x2f0] sm:$0xff]  }
 0x13c   :  { %5756 = vmatpush3.bf16.msra.mxu1 %v6313_v2  ;;  %v6263_v2 = vld [vmem:[%s9492_s2 + $0x2b0] sm:$0xff]  }
 0x13d   :  { %5757 = vmatprep.subr.bf16.mxu1 %v6316_v16 }
 0x13e   :  { %5646 = vmatpush3.bf16.msra.mxu0 %v6247_v50  ;;  %v6328_v50 = vld [vmem:[%s9492_s2 + $0x570] sm:$0xff]  }
 0x13f   :  { %5647 = vmatprep.subr.bf16.mxu0 %v6250_v42  ;;  %v5548_v42 = vpop.f32.mrb[1].mxu1 }
 0x140   :  { %5758 = vmatpush3.bf16.msra.mxu1 %v6317_v21  ;;  %v8312_v16 = vadd.f32 %v5548_v42, %v5547_v60  ;;  %v6336_v60 = vld [vmem:[%s9492_s2 + $0x640] sm:$0xff]  }
 0x141   :  { %5759 = vmatprep.subr.bf16.mxu1 %v6320_v61  ;;  %v6267_v61 = vld [vmem:[%s9492_s2 + $0x2b8] sm:$0xff]  }
 0x142   :  { %5648 = vmatpush3.bf16.msra.mxu0 %v6251_v17  ;;  %v5550_v17 = vpop.f32.mrb[2].mxu1 }
 0x143   :  { %5649 = vmatprep.subr.bf16.mxu0 %v6254_v48  ;;  %v6266_v48 = vld [vmem:[%s9492_s2 + $0x2f8] sm:$0xff]   ;;  %v5551_v21 = vpop.f32.mrb[3].mxu1  ;;  %v6274_v17 = vld [vmem:[%s9492_s2 + $0x3c8] sm:$0xff]  }
 0x144   :  { %5760 = vmatpush3.bf16.msra.mxu1 %v6321_v13  ;;  %v6332_v13 = vld [vmem:[%s9492_s2 + $0x578] sm:$0xff]  }
 0x145   :  { %5761 = vmatprep.subr.bf16.mxu1 %v6324_v22  ;;  %v6270_v22 = vld [vmem:[%s9492_s2 + $0x3c0] sm:$0xff]  }
 0x146   :  { %5650 = vmatpush3.bf16.msra.mxu0 %v6255_v40  ;;  %v36_v40 = vld [vmem:[%s9491_s1 + $0x50] sm:$0xff] }
 0x147   :  { %5651 = vmatprep.subr.bf16.mxu0 %v6258_v30  ;;  %v6329_v30 = vld [vmem:[%s9492_s2 + $0x530] sm:$0xff]   ;;  %v85_v42 = vpack.c.bf16 %v36_v40, %v36_v40  ;;  %v6275_v40 = vld [vmem:[%s9492_s2 + $0x388] sm:$0xff]  }
 0x148   :  { %5762 = vmatpush3.bf16.msra.mxu1 %v6325_v11  ;;  %v46_v11 = vld [vmem:[%s9491_s1 + $0xa0] sm:$0xff] }
 0x149   :  { %5763 = vmatprep.subr.bf16.mxu1 %v6328_v50  ;;  %v51_v50 = vld [vmem:[%s9491_s1 + $0xc8] sm:$0xff]  ;;  %v95_v21 = vpack.c.bf16 %v46_v11, %v46_v11  ;;  %v6282_v11 = vld [vmem:[%s9492_s2 + $0x3d8] sm:$0xff]  }
 0x14a   :  { %5652 = vmatpush3.bf16.msra.mxu0 %v6259_v54  ;;  %v41_v54 = vld [vmem:[%s9491_s1 + $0x78] sm:$0xff] }
 0x14b   :  { %5653 = vmatprep.subr.bf16.mxu0 %v6262_v41  ;;  %v6333_v41 = vld [vmem:[%s9492_s2 + $0x538] sm:$0xff]  }
 0x14c   :  { %5764 = vmatpush3.bf16.msra.mxu1 %v6329_v30  ;;  %v100_v30 = vpack.c.bf16 %v51_v50, %v51_v50  ;;  %v6283_v50 = vld [vmem:[%s9492_s2 + $0x398] sm:$0xff]  }
 0x14d   :  { %5765 = vmatprep.subr.bf16.mxu1 %v6332_v13  ;;  %v6278_v13 = vld [vmem:[%s9492_s2 + $0x3d0] sm:$0xff]  }
 0x14e   :  { %5654 = vmatpush3.bf16.msra.mxu0 %v6263_v2  ;;  %v6271_v2 = vld [vmem:[%s9492_s2 + $0x380] sm:$0xff]  }
 0x14f   :  { %5655 = vmatprep.subr.bf16.mxu0 %v6266_v48  ;;  %v90_v48 = vpack.c.bf16 %v41_v54, %v41_v54  ;;  %v6344_v54 = vld [vmem:[%s9492_s2 + $0x650] sm:$0xff]  }
 0x150   :  { %5766 = vmatpush3.bf16.msra.mxu1 %v6333_v41  ;;  %v6279_v41 = vld [vmem:[%s9492_s2 + $0x390] sm:$0xff]  }
 0x151   :  { %5795 = vmatprep.subr.bf16.mxu1 %v6336_v60  ;;  %v6345_v60 = vld [vmem:[%s9492_s2 + $0x610] sm:$0xff]  }
 0x152   :  { %5656 = vmatpush3.bf16.msra.mxu0 %v6267_v61  ;;  %v6340_v61 = vld [vmem:[%s9492_s2 + $0x648] sm:$0xff]  }
 0x153   :  { %5685 = vmatprep.subr.bf16.mxu0 %v6270_v22  ;;  %4411 = vmatmul.mubr.bf16.vlgmr.msra.gmra.mrb[20].mxu1 %v95_v21  ;;  %v6341_v22 = vld [vmem:[%s9492_s2 + $0x608] sm:$0xff]  }
 0x154   :  { %5796 = vmatpush3.bf16.msra.mxu1 %v6337_v35  ;;  %4490 = vmatprep.mubr.bf16.mxu1 %v100_v30  ;;  %v6348_v35 = vld [vmem:[%s9492_s2 + $0x658] sm:$0xff]   ;;  %v6290_v21 = vld [vmem:[%s9492_s2 + $0x3e8] sm:$0xff]   ;;  %v6353_v30 = vld [vmem:[%s9492_s2 + $0x620] sm:$0xff]  }
 0x155   :  { %4211 = vmatmul.mubr.bf16.vlgmr.msra.gmra.mrb[12].mxu0 %v85_v42  ;;  %5797 = vmatprep.subr.bf16.mxu1 %v6340_v61  ;;  %v6286_v42 = vld [vmem:[%s9492_s2 + $0x3e0] sm:$0xff]   ;;  %v6356_v61 = vld [vmem:[%s9492_s2 + $0x668] sm:$0xff]  }
 0x156   :  { %5686 = vmatpush3.bf16.msra.mxu0 %v6271_v2  ;;  %4290 = vmatprep.mubr.bf16.mxu0 %v90_v48  ;;  %v6349_v2 = vld [vmem:[%s9492_s2 + $0x618] sm:$0xff]   ;;  %v6287_v48 = vld [vmem:[%s9492_s2 + $0x3a0] sm:$0xff]  }
 0x157   :  { %5687 = vmatprep.subr.bf16.mxu0 %v6274_v17  ;;  %v6352_v17 = vld [vmem:[%s9492_s2 + $0x660] sm:$0xff]  }
 0x158   :  { %5798 = vmatpush3.bf16.msra.mxu1 %v6341_v22  ;;  %v6357_v22 = vld [vmem:[%s9492_s2 + $0x628] sm:$0xff]  }
 0x159   :  { %5799 = vmatprep.subr.bf16.mxu1 %v6344_v54  ;;  %v6295_v54 = vld [vmem:[%s9492_s2 + $0x3b0] sm:$0xff]  }
 0x15a   :  { %5688 = vmatpush3.bf16.msra.mxu0 %v6275_v40  ;;  %v6291_v40 = vld [vmem:[%s9492_s2 + $0x3a8] sm:$0xff]  }
 0x15b   :  { %5689 = vmatprep.subr.bf16.mxu0 %v6278_v13  ;;  %v6294_v13 = vld [vmem:[%s9492_s2 + $0x3f0] sm:$0xff]  }
 0x15c   :  { %5800 = vmatpush3.bf16.msra.mxu1 %v6345_v60  ;;  %v6361_v60 = vld [vmem:[%s9492_s2 + $0x630] sm:$0xff]  }
 0x15d   :  { %5801 = vmatprep.subr.bf16.mxu1 %v6348_v35  ;;  %v6364_v35 = vld [vmem:[%s9492_s2 + $0x678] sm:$0xff]  }
 0x15e   :  { %5690 = vmatpush3.bf16.msra.mxu0 %v6279_v41  ;;  %v6360_v41 = vld [vmem:[%s9492_s2 + $0x670] sm:$0xff]  }
 0x15f   :  { %5691 = vmatprep.subr.bf16.mxu0 %v6282_v11  ;;  %v6298_v11 = vld [vmem:[%s9492_s2 + $0x3f8] sm:$0xff]  }
 0x160   :  { %5802 = vmatpush3.bf16.msra.mxu1 %v6349_v2  ;;  %v6302_v2 = vld [vmem:[%s9492_s2 + $0x4c0] sm:$0xff]  }
 0x161   :  { %5803 = vmatprep.subr.bf16.mxu1 %v6352_v17  ;;  %v45_v17 = vld [vmem:[%s9491_s1 + $0x98] sm:$0xff] }
 0x162   :  { %5692 = vmatpush3.bf16.msra.mxu0 %v6283_v50  ;;  %v6299_v50 = vld [vmem:[%s9492_s2 + $0x3b8] sm:$0xff]  }
 0x163   :  { %5693 = vmatprep.subr.bf16.mxu0 %v6286_v42  ;;  %v40_v42 = vld [vmem:[%s9491_s1 + $0x70] sm:$0xff] }
 0x164   :  { %5804 = vmatpush3.bf16.msra.mxu1 %v6353_v30  ;;  %v6368_v30 = vld [vmem:[%s9492_s2 + $0x740] sm:$0xff]  }
 0x165   :  { %5805 = vmatprep.subr.bf16.mxu1 %v6356_v61  ;;  %v55_v61 = vld [vmem:[%s9491_s1 + $0xe8] sm:$0xff] }
 0x166   :  { %5694 = vmatpush3.bf16.msra.mxu0 %v6287_v48  ;;  %v6365_v48 = vld [vmem:[%s9492_s2 + $0x638] sm:$0xff]  }
 0x167   :  { %5695 = vmatprep.subr.bf16.mxu0 %v6290_v21  ;;  %v50_v21 = vld [vmem:[%s9491_s1 + $0xc0] sm:$0xff] }
 0x168   :  { %5806 = vmatpush3.bf16.msra.mxu1 %v6357_v22  ;;  %v6306_v22 = vld [vmem:[%s9492_s2 + $0x4c8] sm:$0xff]  }
 0x169   :  { %5807 = vmatprep.subr.bf16.mxu1 %v6360_v41  ;;  %v99_v41 = vpack.c.bf16 %v50_v21, %v50_v21  ;;  %v6314_v21 = vld [vmem:[%s9492_s2 + $0x4d8] sm:$0xff]  }
 0x16a   :  { %5696 = vmatpush3.bf16.msra.mxu0 %v6291_v40  ;;  %v89_v40 = vpack.c.bf16 %v40_v42, %v40_v42  ;;  %v6310_v42 = vld [vmem:[%s9492_s2 + $0x4d0] sm:$0xff]  }
 0x16b   :  { %5697 = vmatprep.subr.bf16.mxu0 %v6294_v13  ;;  %v6303_v13 = vld [vmem:[%s9492_s2 + $0x480] sm:$0xff]  }
 0x16c   :  { %5808 = vmatpush3.bf16.msra.mxu1 %v6361_v60  ;;  %v104_v60 = vpack.c.bf16 %v55_v61, %v55_v61  ;;  %v6380_v61 = vld [vmem:[%s9492_s2 + $0x758] sm:$0xff]  }
 0x16d   :  { %5809 = vmatprep.subr.bf16.mxu1 %v6364_v35  ;;  %v6372_v35 = vld [vmem:[%s9492_s2 + $0x748] sm:$0xff]  }
 0x16e   :  { %5698 = vmatpush3.bf16.msra.mxu0 %v6295_v54  ;;  %v94_v54 = vpack.c.bf16 %v45_v17, %v45_v17  ;;  %v6376_v17 = vld [vmem:[%s9492_s2 + $0x750] sm:$0xff]  }
 0x16f   :  { %5699 = vmatprep.subr.bf16.mxu0 %v6298_v11  ;;  %v6369_v11 = vld [vmem:[%s9492_s2 + $0x700] sm:$0xff]  }
 0x170   :  { %5810 = vmatpush3.bf16.msra.mxu1 %v6365_v48  ;;  %v6311_v48 = vld [vmem:[%s9492_s2 + $0x490] sm:$0xff]  }
 0x171   :  { %5839 = vmatprep.subr.bf16.mxu1 %v6368_v30  ;;  %v6377_v30 = vld [vmem:[%s9492_s2 + $0x710] sm:$0xff]  }
 0x172   :  { %5700 = vmatpush3.bf16.msra.mxu0 %v6299_v50  ;;  %v6307_v50 = vld [vmem:[%s9492_s2 + $0x488] sm:$0xff]  }
 0x173   :  { %5729 = vmatprep.subr.bf16.mxu0 %v6302_v2  ;;  %4491 = vmatmul.mubr.bf16.vlgmr.msra.gmra.mrb[24].mxu1 %v99_v41  ;;  %v6373_v2 = vld [vmem:[%s9492_s2 + $0x708] sm:$0xff]   ;;  %v6319_v41 = vld [vmem:[%s9492_s2 + $0x4a0] sm:$0xff]  }
 0x174   :  { %5840 = vmatpush3.bf16.msra.mxu1 %v6369_v11  ;;  %4570 = vmatprep.mubr.bf16.mxu1 %v104_v60  ;;  %v6322_v11 = vld [vmem:[%s9492_s2 + $0x4e8] sm:$0xff]   ;;  %v6385_v60 = vld [vmem:[%s9492_s2 + $0x720] sm:$0xff]  }
 0x175   :  { %4291 = vmatmul.mubr.bf16.vlgmr.msra.gmra.mrb[16].mxu0 %v89_v40  ;;  %5841 = vmatprep.subr.bf16.mxu1 %v6372_v35  ;;  %v6315_v40 = vld [vmem:[%s9492_s2 + $0x498] sm:$0xff]   ;;  %v6388_v35 = vld [vmem:[%s9492_s2 + $0x768] sm:$0xff]  }
 0x176   :  { %5730 = vmatpush3.bf16.msra.mxu0 %v6303_v13  ;;  %4370 = vmatprep.mubr.bf16.mxu0 %v94_v54  ;;  %v6318_v13 = vld [vmem:[%s9492_s2 + $0x4e0] sm:$0xff]  }
 0x177   :  { %5731 = vmatprep.subr.bf16.mxu0 %v6306_v22  ;;  %v6381_v22 = vld [vmem:[%s9492_s2 + $0x718] sm:$0xff]   ;;  %v6384_v54 = vld [vmem:[%s9492_s2 + $0x760] sm:$0xff]  }
 0x178   :  { %5842 = vmatpush3.bf16.msra.mxu1 %v6373_v2  ;;  %v6389_v2 = vld [vmem:[%s9492_s2 + $0x728] sm:$0xff]  }
 0x179   :  { %5843 = vmatprep.subr.bf16.mxu1 %v6376_v17  ;;  %v6327_v17 = vld [vmem:[%s9492_s2 + $0x4b0] sm:$0xff]  }
 0x17a   :  { %5732 = vmatpush3.bf16.msra.mxu0 %v6307_v50  ;;  %v6323_v50 = vld [vmem:[%s9492_s2 + $0x4a8] sm:$0xff]  }
 0x17b   :  { %5733 = vmatprep.subr.bf16.mxu0 %v6310_v42  ;;  %v6326_v42 = vld [vmem:[%s9492_s2 + $0x4f0] sm:$0xff]  }
 0x17c   :  { %5844 = vmatpush3.bf16.msra.mxu1 %v6377_v30  ;;  %v6393_v30 = vld [vmem:[%s9492_s2 + $0x730] sm:$0xff]  }
 0x17d   :  { %5845 = vmatprep.subr.bf16.mxu1 %v6380_v61  ;;  %v6396_v61 = vld [vmem:[%s9492_s2 + $0x778] sm:$0xff]  }
 0x17e   :  { %5734 = vmatpush3.bf16.msra.mxu0 %v6311_v48  ;;  %v6392_v48 = vld [vmem:[%s9492_s2 + $0x770] sm:$0xff]  }
 0x17f   :  { %5735 = vmatprep.subr.bf16.mxu0 %v6314_v21  ;;  %v6330_v21 = vld [vmem:[%s9492_s2 + $0x4f8] sm:$0xff]  }
 0x180   :  { %5846 = vmatpush3.bf16.msra.mxu1 %v6381_v22  ;;  %v6334_v22 = vld [vmem:[%s9492_s2 + $0x5c0] sm:$0xff]  }
 0x181   :  { %5847 = vmatprep.subr.bf16.mxu1 %v6384_v54  ;;  %v49_v54 = vld [vmem:[%s9491_s1 + $0xb8] sm:$0xff] }
 0x182   :  { %5736 = vmatpush3.bf16.msra.mxu0 %v6315_v40  ;;  %v6331_v40 = vld [vmem:[%s9492_s2 + $0x4b8] sm:$0xff]  }
 0x183   :  { %5737 = vmatprep.subr.bf16.mxu0 %v6318_v13  ;;  %v44_v13 = vld [vmem:[%s9491_s1 + $0x90] sm:$0xff] }
 0x184   :  { %5848 = vmatpush3.bf16.msra.mxu1 %v6385_v60  ;;  %v6400_v60 = vld [vmem:[%s9492_s2 + $0x840] sm:$0xff]  }
 0x185   :  { %5849 = vmatprep.subr.bf16.mxu1 %v6388_v35  ;;  %v59_v35 = vld [vmem:[%s9491_s1 + $0x108] sm:$0xff] }
 0x186   :  { %5738 = vmatpush3.bf16.msra.mxu0 %v6319_v41  ;;  %v6397_v41 = vld [vmem:[%s9492_s2 + $0x738] sm:$0xff]  }
 0x187   :  { %5739 = vmatprep.subr.bf16.mxu0 %v6322_v11  ;;  %v54_v11 = vld [vmem:[%s9491_s1 + $0xe0] sm:$0xff] }
 0x188   :  { %5850 = vmatpush3.bf16.msra.mxu1 %v6389_v2  ;;  %v6338_v2 = vld [vmem:[%s9492_s2 + $0x5c8] sm:$0xff]  }
 0x189   :  { %5851 = vmatprep.subr.bf16.mxu1 %v6392_v48  ;;  %v103_v48 = vpack.c.bf16 %v54_v11, %v54_v11  ;;  %v6346_v11 = vld [vmem:[%s9492_s2 + $0x5d8] sm:$0xff]  }
 0x18a   :  { %5740 = vmatpush3.bf16.msra.mxu0 %v6323_v50  ;;  %v93_v50 = vpack.c.bf16 %v44_v13, %v44_v13  ;;  %v6342_v13 = vld [vmem:[%s9492_s2 + $0x5d0] sm:$0xff]  }
 0x18b   :  { %5741 = vmatprep.subr.bf16.mxu0 %v6326_v42  ;;  %v6335_v42 = vld [vmem:[%s9492_s2 + $0x580] sm:$0xff]  }
 0x18c   :  { %5852 = vmatpush3.bf16.msra.mxu1 %v6393_v30  ;;  %v108_v30 = vpack.c.bf16 %v59_v35, %v59_v35 }
 0x18d   :  { %5853 = vmatprep.subr.bf16.mxu1 %v6396_v61  ;;  %v6404_v61 = vld [vmem:[%s9492_s2 + $0x848] sm:$0xff]  }
 0x18e   :  { %5742 = vmatpush3.bf16.msra.mxu0 %v6327_v17  ;;  %v98_v17 = vpack.c.bf16 %v49_v54, %v49_v54  ;;  %v6408_v54 = vld [vmem:[%s9492_s2 + $0x850] sm:$0xff]  }
 0x18f   :  { %5743 = vmatprep.subr.bf16.mxu0 %v6330_v21  ;;  %v6401_v21 = vld [vmem:[%s9492_s2 + $0x800] sm:$0xff]  }
 0x190   :  { %5854 = vmatpush3.bf16.msra.mxu1 %v6397_v41  ;;  %v6343_v41 = vld [vmem:[%s9492_s2 + $0x590] sm:$0xff]  }
 0x191   :  { %5883 = vmatprep.subr.bf16.mxu1 %v6400_v60  ;;  %v6359_v60 = vld [vmem:[%s9492_s2 + $0x5b0] sm:$0xff]  }
 0x192   :  { %5744 = vmatpush3.bf16.msra.mxu0 %v6331_v40  ;;  %v6339_v40 = vld [vmem:[%s9492_s2 + $0x588] sm:$0xff]  }
 0x193   :  { %5773 = vmatprep.subr.bf16.mxu0 %v6334_v22  ;;  %4571 = vmatmul.mubr.bf16.vlgmr.msra.gmra.mrb[28].mxu1 %v103_v48  ;;  %v6405_v22 = vld [vmem:[%s9492_s2 + $0x808] sm:$0xff]   ;;  %v6351_v48 = vld [vmem:[%s9492_s2 + $0x5a0] sm:$0xff]  }
 0x194   :  { %5884 = vmatpush3.bf16.msra.mxu1 %v6401_v21  ;;  %4650 = vmatprep.mubr.bf16.mxu1 %v108_v30  ;;  %v6354_v21 = vld [vmem:[%s9492_s2 + $0x5e8] sm:$0xff]   ;;  %v6417_v30 = vld [vmem:[%s9492_s2 + $0x820] sm:$0xff]  }
 0x195   :  { %4371 = vmatmul.mubr.bf16.vlgmr.msra.gmra.mrb[20].mxu0 %v93_v50  ;;  %5885 = vmatprep.subr.bf16.mxu1 %v6404_v61  ;;  %v6347_v50 = vld [vmem:[%s9492_s2 + $0x598] sm:$0xff]   ;;  %v6420_v61 = vld [vmem:[%s9492_s2 + $0x868] sm:$0xff]  }
 0x196   :  { %5774 = vmatpush3.bf16.msra.mxu0 %v6335_v42  ;;  %4450 = vmatprep.mubr.bf16.mxu0 %v98_v17  ;;  %v6350_v42 = vld [vmem:[%s9492_s2 + $0x5e0] sm:$0xff]  }
 0x197   :  { %5775 = vmatprep.subr.bf16.mxu0 %v6338_v2  ;;  %v6413_v2 = vld [vmem:[%s9492_s2 + $0x818] sm:$0xff]   ;;  %v6416_v17 = vld [vmem:[%s9492_s2 + $0x860] sm:$0xff]  }
 0x198   :  { %5886 = vmatpush3.bf16.msra.mxu1 %v6405_v22  ;;  %v6560_v22 = vld [vmem:[%s9491_s1] sm:$0xff] }
 0x199   :  { %5887 = vmatprep.subr.bf16.mxu1 %v6408_v54  ;;  %v932_v54 = vsel %vm8604_vm10, %v6560_v22, 0.0  ;;  %v6366_v22 = vld [vmem:[%s9492_s2 + $0x6c0] sm:$0xff]   ;;  %vm9791_vm10 = vnez %v9624_v33 }
 0x19a   :  { %5776 = vmatpush3.bf16.msra.mxu0 %v6339_v40  ;;  %v6355_v40 = vld [vmem:[%s9492_s2 + $0x5a8] sm:$0xff]  }
 0x19b   :  { %5777 = vmatprep.subr.bf16.mxu0 %v6342_v13  ;;  %v6358_v13 = vld [vmem:[%s9492_s2 + $0x5f0] sm:$0xff]  }
 0x19c   :  { %5888 = vmatpush3.bf16.msra.mxu1 %v6409_v47 }
 0x19d   :  { %5889 = vmatprep.subr.bf16.mxu1 %v6412_v52  ;;  %v6424_v52 = vld [vmem:[%s9492_s2 + $0x870] sm:$0xff]  }
 0x19e   :  { %5778 = vmatpush3.bf16.msra.mxu0 %v6343_v41  ;;  %v6421_v41 = vld [vmem:[%s9492_s2 + $0x828] sm:$0xff]  }
 0x19f   :  { %5779 = vmatprep.subr.bf16.mxu0 %v6346_v11  ;;  %v6561_v11 = vld [vmem:[%s9491_s1 + $0x8] sm:$0xff] }
 0x1a0   :  { %5890 = vmatpush3.bf16.msra.mxu1 %v6413_v2  ;;  %v944_v47 = vsel %vm8611_vm8, %v6561_v11, 0.0  ;;  %v58_v11 = vld [vmem:[%s9491_s1 + $0x100] sm:$0xff]  ;;  %vm9793_vm8 = vnez %v9626_v6  ;;  %v57_v6 = vld [vmem:[%s9491_s1 + $0xf8] sm:$0xff] }
 0x1a1   :  { %5891 = vmatprep.subr.bf16.mxu1 %v6416_v17  ;;  %v6425_v17 = vld [vmem:[%s9492_s2 + $0x830] sm:$0xff]   ;;  %v9794_v33 = vsel %vm9793_vm8, %v7221_v29, 0.0  ;;  %v6461_v29 = vld [vmem:[%s9492_s2 + $0x938] sm:$0xff]  }
 0x1a2   :  { %5780 = vmatpush3.bf16.msra.mxu0 %v6347_v50 }
 0x1a3   :  { %5781 = vmatprep.subr.bf16.mxu0 %v6350_v42  ;;  %v6362_v42 = vld [vmem:[%s9492_s2 + $0x5f8] sm:$0xff]  }
 0x1a4   :  { %5892 = vmatpush3.bf16.msra.mxu1 %v6417_v30 }
 0x1a5   :  { %5893 = vmatprep.subr.bf16.mxu1 %v6420_v61  ;;  %v945_v61 = vadd.f32 %v944_v47, %v932_v54  ;;  %v6429_v54 = vld [vmem:[%s9492_s2 + $0x838] sm:$0xff]   ;;  %v9767_v47 = vsel %vm6857_vm15, %v6806_v59, 0.0  ;;  %v6367_v59 = vld [vmem:[%s9492_s2 + $0x680] sm:$0xff]   ;;  %vm9771_vm15 = vnez %v9601_v38 }
 0x1a6   :  { %5782 = vmatpush3.bf16.msra.mxu0 %v6351_v48  ;;  %v5591_v50 = vpop.f32.mrb[4].mxu1  ;;  %v9772_v31 = vsel %vm9771_vm15, %v6913_v27, 0.0  ;;  %v6378_v38 = vld [vmem:[%s9492_s2 + $0x6d8] sm:$0xff]   ;;  %v6441_v27 = vld [vmem:[%s9492_s2 + $0x910] sm:$0xff]   ;;  %vm9795_vm15 = vnez %v9628_v32  ;;  %v6402_v32 = vld [vmem:[%s9492_s2 + $0x7c8] sm:$0xff]  }
 0x1a7   :  { %5783 = vmatprep.subr.bf16.mxu0 %v6354_v21  ;;  %v5592_v2 = vpop.f32.mrb[5].mxu1  ;;  %v6428_v21 = vld [vmem:[%s9492_s2 + $0x878] sm:$0xff]  }
 0x1a8   :  { %v8667_v35 = vadd.f32 %v5592_v2, %v5591_v50  ;;  %5894 = vmatpush3.bf16.msra.mxu1 %v6421_v41  ;;  %v5594_v48 = vpop.f32.mrb[6].mxu1  ;;  %v53_v41 = vld [vmem:[%s9491_s1 + $0xd8] sm:$0xff]  ;;  %v63_v50 = vld [vmem:[%s9491_s1 + $0x128] sm:$0xff]  ;;  %v9768_v2 = vsel %vm6880_vm6, %v6843_v12, 0.0  ;;  %v9769_v12 = vsel %vm6904_vm12, %v6872_v18, 0.0  ;;  %v6374_v18 = vld [vmem:[%s9492_s2 + $0x6d0] sm:$0xff]   ;;  %vm9773_vm6 = vnez %v9603_v43 }
 0x1a9   :  { %5895 = vmatprep.subr.bf16.mxu1 %v6424_v52  ;;  %v5595_v30 = vpop.f32.mrb[7].mxu1  ;;  %v957_v52 = vadd.f32 %v9767_v47, %v945_v61  ;;  %v112_v61 = vpack.c.bf16 %v63_v50, %v63_v50  ;;  %v6444_v43 = vld [vmem:[%s9492_s2 + $0x958] sm:$0xff]   ;;  %vm9775_vm12 = vnez %v9605_v57  ;;  %v6448_v57 = vld [vmem:[%s9492_s2 + $0x960] sm:$0xff]  }
 0x1aa   :  { %5784 = vmatpush3.bf16.msra.mxu0 %v6355_v40  ;;  %v6363_v40 = vld [vmem:[%s9492_s2 + $0x5b8] sm:$0xff]   ;;  %v107_v30 = vpack.c.bf16 %v58_v11, %v58_v11  ;;  %v9774_v11 = vsel %vm9773_vm6, %v6952_v36, 0.0  ;;  %v9776_v36 = vsel %vm9775_vm12, %v6961_v37, 0.0  ;;  %vm9797_vm6 = vnez %v9631_v45 }
 0x1ab   :  { %5785 = vmatprep.subr.bf16.mxu0 %v6358_v13  ;;  %v48_v13 = vld [vmem:[%s9491_s1 + $0xb0] sm:$0xff]  ;;  %v969_v48 = vadd.f32 %v9768_v2, %v957_v52  ;;  %v6379_v2 = vld [vmem:[%s9492_s2 + $0x698] sm:$0xff]   ;;  %vm9799_vm12 = vnez %v9634_v24 }
 0x1ac   :  { %5896 = vmatpush3.bf16.msra.mxu1 %v6425_v17  ;;  %v102_v17 = vpack.c.bf16 %v53_v41, %v53_v41  ;;  %v6437_v41 = vld [vmem:[%s9492_s2 + $0x908] sm:$0xff]   ;;  %v6375_v52 = vld [vmem:[%s9492_s2 + $0x690] sm:$0xff]   ;;  %v6445_v37 = vld [vmem:[%s9492_s2 + $0x918] sm:$0xff]   ;;  %v9800_v45 = vsel %vm9799_vm12, %v7281_v3, 0.0 }
 0x1ad   :  { %5897 = vmatprep.subr.bf16.mxu1 %v6428_v21  ;;  %v6433_v21 = vld [vmem:[%s9492_s2 + $0x900] sm:$0xff]   ;;  %v981_v19 = vadd.f32 %v9769_v12, %v969_v48  ;;  %v9786_v12 = vsel %vm9785_vm2, %v7125_v4, 0.0  ;;  %v6453_v4 = vld [vmem:[%s9492_s2 + $0x928] sm:$0xff]   ;;  %v6406_v3 = vld [vmem:[%s9492_s2 + $0x7d0] sm:$0xff]  }
 0x1ae   :  { %5786 = vmatpush3.bf16.msra.mxu0 %v6359_v60  ;;  %v6432_v60 = vld [vmem:[%s9492_s2 + $0x940] sm:$0xff]  }
 0x1af   :  { %5787 = vmatprep.subr.bf16.mxu0 %v6362_v42  ;;  %v97_v42 = vpack.c.bf16 %v48_v13, %v48_v13  ;;  %v9770_v13 = vsel %vm6931_vm4, %v6895_v23, 0.0  ;;  %v6440_v23 = vld [vmem:[%s9492_s2 + $0x950] sm:$0xff]   ;;  %vm9777_vm4 = vnez %v9607_v63  ;;  %v6382_v48 = vld [vmem:[%s9492_s2 + $0x6e0] sm:$0xff]  }
 0x1b0   :  { %5898 = vmatpush3.bf16.msra.mxu1 %v6429_v54  ;;  %v9778_v50 = vsel %vm9777_vm4, %v7006_v51, 0.0  ;;  %v9780_v51 = vsel %vm9779_vm0, %v7015_v55, 0.0  ;;  %v6449_v55 = vld [vmem:[%s9492_s2 + $0x920] sm:$0xff]   ;;  %vm9801_vm4 = vnez %v9638_v5  ;;  %vm9803_vm0 = vnez %v9642_v62  ;;  %v9804_v5 = vld [vmem:[#allocation5_spill] sm:$0xff] }
 0x1b1   :  { %5927 = vmatprep.subr.bf16.mxu1 %v6432_v60 }
 0x1b2   :  { %5788 = vmatpush3.bf16.msra.mxu0 %v6363_v40  ;;  %v6436_v40 = vld [vmem:[%s9492_s2 + $0x948] sm:$0xff]  }
 0x1b3   :  { %5817 = vmatprep.subr.bf16.mxu0 %v6366_v22  ;;  %v993_v22 = vadd.f32 %v9770_v13, %v981_v19  ;;  %4651 = vmatmul.mubr.bf16.vlgmr.msra.gmra.mrb[32].mxu1 %v107_v30  ;;  %v6386_v30 = vld [vmem:[%s9492_s2 + $0x6e8] sm:$0xff]  }
 0x1b4   :  { %5928 = vmatpush3.bf16.msra.mxu1 %v6433_v21  ;;  %4730 = vmatprep.mubr.bf16.mxu1 %v112_v61  ;;  %v6387_v21 = vld [vmem:[%s9492_s2 + $0x6a8] sm:$0xff]   ;;  %v6390_v61 = vld [vmem:[%s9492_s2 + $0x6f0] sm:$0xff]  }
 0x1b5   :  { %4451 = vmatmul.mubr.bf16.vlgmr.msra.gmra.mrb[24].mxu0 %v97_v42  ;;  %v1005_v54 = vadd.f32 %v9772_v31, %v993_v22  ;;  %5929 = vmatprep.subr.bf16.mxu1 %v6436_v40  ;;  %v1623_v40 = vpop.permute.xlu0 %1622 }
 0x1b6   :  { %5818 = vmatpush3.bf16.msra.mxu0 %v6367_v59  ;;  %4530 = vmatprep.mubr.bf16.mxu0 %v102_v17  ;;  %v9782_v59 = vsel %vm9781_vm1, %v7069_v7, 0.0  ;;  %v6383_v17 = vld [vmem:[%s9492_s2 + $0x6a0] sm:$0xff]   ;;  %v9784_v7 = vsel %vm9783_vm13, %v7078_v8, 0.0  ;;  %v9788_v8 = vsel %vm9787_vm3, %v7134_v26, 0.0  ;;  %v6456_v26 = vld [vmem:[%s9492_s2 + $0x970] sm:$0xff]  }
 0x1b7   :  { %5819 = vmatprep.subr.bf16.mxu0 %v6370_v14  ;;  %v1017_v47 = vadd.f32 %v9774_v11, %v1005_v54 }
 0x1b8   :  { %5930 = vmatpush3.bf16.msra.mxu1 %v6437_v41 }
 0x1b9   :  { %v1029_v60 = vadd.f32 %v9776_v36, %v1017_v47  ;;  %5931 = vmatprep.subr.bf16.mxu1 %v6440_v23  ;;  %v6395_v36 = vld [vmem:[%s9492_s2 + $0x6b8] sm:$0xff]  }
 0x1ba   :  { %5820 = vmatpush3.bf16.msra.mxu0 %v6371_v25 }
 0x1bb   :  { %5821 = vmatprep.subr.bf16.mxu0 %v6374_v18  ;;  %v1041_v42 = vadd.f32 %v9778_v50, %v1029_v60  ;;  %v9790_v18 = vsel %vm9789_vm5, %v7175_v46, 0.0  ;;  %v6457_v46 = vld [vmem:[%s9492_s2 + $0x930] sm:$0xff]   ;;  %v6398_v50 = vld [vmem:[%s9492_s2 + $0x7c0] sm:$0xff]  }
 0x1bc   :  { %5932 = vmatpush3.bf16.msra.mxu1 %v6441_v27  ;;  %v52_v60 = vld [vmem:[%s9491_s1 + $0xd0] sm:$0xff] }
 0x1bd   :  { %v1053_v63 = vadd.f32 %v9780_v51, %v1041_v42  ;;  %5933 = vmatprep.subr.bf16.mxu1 %v6444_v43  ;;  %v62_v42 = vld [vmem:[%s9491_s1 + $0x120] sm:$0xff]  ;;  %v101_v51 = vpack.c.bf16 %v52_v60, %v52_v60 }
 0x1be   :  { %5822 = vmatpush3.bf16.msra.mxu0 %v6375_v52  ;;  %v9792_v52 = vsel %vm9791_vm10, %v7184_v56, 0.0 }
 0x1bf   :  { %5823 = vmatprep.subr.bf16.mxu0 %v6378_v38  ;;  %v1065_v14 = vadd.f32 %v9782_v59, %v1053_v63  ;;  %v9798_v63 = vsel %vm9797_vm6, %v7259_v1, 0.0 }
 0x1c0   :  { %5934 = vmatpush3.bf16.msra.mxu1 %v6445_v37  ;;  %v6464_v37 = vld [vmem:[%s9492_s2 + $0xa40] sm:$0xff]  }
 0x1c1   :  { %v1077_v15 = vadd.f32 %v9784_v7, %v1065_v14  ;;  %5935 = vmatprep.subr.bf16.mxu1 %v6448_v57  ;;  %v67_v57 = vld [vmem:[%s9491_s1 + $0x148] sm:$0xff]  ;;  %v106_v14 = vpack.c.bf16 %v57_v6, %v57_v6 }
 0x1c2   :  { %5824 = vmatpush3.bf16.msra.mxu0 %v6379_v2  ;;  %v9796_v2 = vsel %vm9795_vm15, %v7228_v0, 0.0  ;;  %v6399_v0 = vld [vmem:[%s9492_s2 + $0x780] sm:$0xff]   ;;  %v6468_v7 = vld [vmem:[%s9492_s2 + $0xa48] sm:$0xff]  }
 0x1c3   :  { %5825 = vmatprep.subr.bf16.mxu0 %v6382_v48  ;;  %v1089_v19 = vadd.f32 %v9786_v12, %v1077_v15  ;;  %v9802_v15 = vsel %vm9801_vm4, %v7301_v34, 0.0  ;;  %v6472_v12 = vld [vmem:[%s9492_s2 + $0xa50] sm:$0xff]   ;;  %v9805_v34 = vsel %vm9803_vm0, %v9804_v5, 0.0 }
 0x1c4   :  { %5936 = vmatpush3.bf16.msra.mxu1 %v6449_v55  ;;  %v116_v55 = vpack.c.bf16 %v67_v57, %v67_v57 }
 0x1c5   :  { %v1101_v28 = vadd.f32 %v9788_v8, %v1089_v19  ;;  %5937 = vmatprep.subr.bf16.mxu1 %v6452_v9  ;;  %v6403_v9 = vld [vmem:[%s9492_s2 + $0x788] sm:$0xff]   ;;  %v9808_v8 = vld [vmem:[#allocation6_spill] sm:$0xff] }
 0x1c6   :  { %5826 = vmatpush3.bf16.msra.mxu0 %v6383_v17  ;;  %v5635_v31 = vpop.f32.mrb[8].mxu1  ;;  %v111_v17 = vpack.c.bf16 %v62_v42, %v62_v42 }
 0x1c7   :  { %5827 = vmatprep.subr.bf16.mxu0 %v6386_v30  ;;  %v1113_v41 = vadd.f32 %v9790_v18, %v1101_v28  ;;  %v5636_v47 = vpop.f32.mrb[9].mxu1  ;;  %v6465_v30 = vld [vmem:[%s9492_s2 + $0xa00] sm:$0xff]  }
 0x1c8   :  { %v1614_v13 = vpop.f32.mrb[0].mxu0  ;;  %v8840_v27 = vadd.f32 %v5636_v47, %v5635_v31  ;;  %5938 = vmatpush3.bf16.msra.mxu1 %v6453_v4  ;;  %v5638_v10 = vpop.f32.mrb[10].mxu1 }
 0x1c9   :  { %v1625_v22 = vmul.f32 %v1623_v40, %v1614_v13  ;;  %v6095_v25 = vpop.f32.mrb[1].mxu0  ;;  %v1125_v38 = vadd.f32 %v9792_v52, %v1113_v41  ;;  %5939 = vmatprep.subr.bf16.mxu1 %v6456_v26  ;;  %v5639_v43 = vpop.f32.mrb[11].mxu1 }
 0x1ca   :  { %5828 = vmatpush3.bf16.msra.mxu0 %v6387_v21  ;;  %v1617_v23 = vpop.f32.mrb[2].mxu0  ;;  %v6469_v21 = vld [vmem:[%s9492_s2 + $0xa08] sm:$0xff]  }
 0x1cb   :  { %v8834_v54 = vadd.f32 %v8312_v16, %v1625_v22  ;;  %v6096_v11 = vpop.f32.mrb[3].mxu0  ;;  %5829 = vmatprep.subr.bf16.mxu0 %v6390_v61  ;;  %v6460_v16 = vld [vmem:[%s9492_s2 + $0x978] sm:$0xff]   ;;  %v1137_v56 = vadd.f32 %v9794_v33, %v1125_v38  ;;  %v9806_v61 = vld [vmem:[#allocation8_spill] sm:$0xff] }
 0x1cc   :  { %5940 = vmatpush3.bf16.msra.mxu1 %v6457_v46  ;;  %vm9807_vm1 = vnez %v9806_v61 }
 0x1cd   :  { %v1149_v48 = vadd.f32 %v9796_v2, %v1137_v56  ;;  %5941 = vmatprep.subr.bf16.mxu1 %v6460_v16  ;;  %v9809_v28 = vsel %vm9807_vm1, %v9808_v8, 0.0 }
 0x1ce   :  { %5830 = vmatpush3.bf16.msra.mxu0 %v6391_v39 }
 0x1cf   :  { %5831 = vmatprep.subr.bf16.mxu0 %v6394_v58  ;;  %v1161_v59 = vadd.f32 %v9798_v63, %v1149_v48 }
 0x1d0   :  { %5942 = vmatpush3.bf16.msra.mxu1 %v6461_v29 }
 0x1d1   :  { %v1173_v1 = vadd.f32 %v9800_v45, %v1161_v59  ;;  %5971 = vmatprep.subr.bf16.mxu1 %v6464_v37 }
 0x1d2   :  { %5832 = vmatpush3.bf16.msra.mxu0 %v6395_v36 }
 0x1d3   :  { %5861 = vmatprep.subr.bf16.mxu0 %v6398_v50  ;;  %v1185_v24 = vadd.f32 %v9802_v15, %v1173_v1  ;;  %4731 = vmatmul.mubr.bf16.vlgmr.msra.gmra.mrb[36].mxu1 %v111_v17 }
 0x1d4   :  { %5972 = vmatpush3.bf16.msra.mxu1 %v6465_v30  ;;  %4810 = vmatprep.mubr.bf16.mxu1 %v116_v55 }
 0x1d5   :  { %4531 = vmatmul.mubr.bf16.vlgmr.msra.gmra.mrb[28].mxu0 %v101_v51  ;;  %v1197_v19 = vadd.f32 %v9805_v34, %v1185_v24  ;;  %5973 = vmatprep.subr.bf16.mxu1 %v6468_v7 }
 0x1d6   :  { %5862 = vmatpush3.bf16.msra.mxu0 %v6399_v0  ;;  %4610 = vmatprep.mubr.bf16.mxu0 %v106_v14 }
 0x1d7   :  { %5863 = vmatprep.subr.bf16.mxu0 %v6402_v32  ;;  %v1209_v40 = vadd.f32 %v9809_v28, %v1197_v19 }
 0x1d8   :  { %11 = vsyncpa [#allocation3], 0  ;;  %v6407_v13 = vld [vmem:[%s9492_s2 + $0x790] sm:$0xff]   ;;  %v6410_v62 = vld [vmem:[%s9492_s2 + $0x7d8] sm:$0xff]   ;;  %5974 = vmatpush3.bf16.msra.mxu1 %v6469_v21  ;;  %vm9848_vm15 = vnez %v9692_v44  ;;  %s6594_s23 = smov [#allocation2]  }
 0x1d9   :  { %v9810_v39 = vld [vmem:[#allocation11_spill] sm:$0xff]  ;;  %v6473_v58 = vld [vmem:[%s9492_s2 + $0xa10] sm:$0xff]   ;;  %5975 = vmatprep.subr.bf16.mxu1 %v6472_v12  ;;  %v6476_v26 = vld [vmem:[%s9492_s2 + $0xa58] sm:$0xff]   ;;  %s5105_s0 = sshll.u32 %s6594_s23, 4  ;;  %s5106_s0 = int_to_ptr.vmem [resolvable:$true] %s5105_s0 }
 0x1da   :  { %5864 = vmatpush3.bf16.msra.mxu0 %v6403_v9  ;;  %vm9811_vm13 = vnez %v9810_v39  ;;  %v9812_v4 = vld [vmem:[#allocation7_spill] sm:$0xff]  ;;  %v9814_v18 = vld [vmem:[#allocation12_spill] sm:$0xff]  ;;  %v9816_v41 = vld [vmem:[#allocation9_spill] sm:$0xff]  ;;  %s6563_s24 = scalar_lea.vmem %s5106_s0, 128  ;;  %p6568_p1 = scmp.lt.s32.totalorder %s5106_s0, %s5106_s0 }
 0x1db   :  { %5865 = vmatprep.subr.bf16.mxu0 %v6406_v3  ;;  %v9813_v22 = vsel %vm9811_vm13, %v9812_v4, 0.0  ;;  %vm9815_vm2 = vnez %v9814_v18  ;;  %v6411_v11 = vld [vmem:[%s9492_s2 + $0x798] sm:$0xff]   ;;  %v6414_v47 = vld [vmem:[%s9492_s2 + $0x7e0] sm:$0xff]   ;;  %v9818_v52 = vld [vmem:[#allocation15_spill] sm:$0xff]  ;;  %p6564_p0 = scmp.ne.s32.totalorder %s5106_s0, %s6563_s24  ;;  %p6569_p2 = scmp.lt.s32.totalorder %s6563_s24, %s6563_s24 }
 0x1dc   :  { %v1221_v25 = vadd.f32 %v9813_v22, %v1209_v40  ;;  %v9817_v23 = vsel %vm9815_vm2, %v9816_v41, 0.0  ;;  %vm9819_vm3 = vnez %v9818_v52  ;;  %v9820_v38 = vld [vmem:[#allocation10_spill] sm:$0xff]  ;;  %5976 = vmatpush3.bf16.msra.mxu1 %v6473_v58  ;;  %v6477_v16 = vld [vmem:[%s9492_s2 + $0xa18] sm:$0xff]   ;;  %v9822_v33 = vld [vmem:[#allocation16_spill] sm:$0xff] }
 0x1dd   :  { %v9821_v46 = vsel %vm9819_vm3, %v9820_v38, 0.0  ;;  %5977 = vmatprep.subr.bf16.mxu1 %v6476_v26  ;;  %v6480_v43 = vld [vmem:[%s9492_s2 + $0xa60] sm:$0xff]   ;;  %vm9823_vm5 = vnez %v9822_v33  ;;  %v9824_v56 = vld [vmem:[#allocation13_spill] sm:$0xff]  ;;  %v6418_v6 = vld [vmem:[%s9492_s2 + $0x7e8] sm:$0xff]   ;;  %p6570_p3 = por %p6569_p2, %p6568_p1 }
 0x1de   :  { %v1233_v31 = vadd.f32 %v9817_v23, %v1221_v25  ;;  %5866 = vmatpush3.bf16.msra.mxu0 %v6407_v13  ;;  %v9825_v36 = vsel %vm9823_vm5, %v9824_v56, 0.0  ;;  %v6415_v50 = vld [vmem:[%s9492_s2 + $0x7a0] sm:$0xff]   ;;  %v6484_v57 = vld [vmem:[%s9492_s2 + $0xa68] sm:$0xff]   ;;  %v9830_v63 = vld [vmem:[#allocation17_spill] sm:$0xff] }
 0x1df   :  { %5867 = vmatprep.subr.bf16.mxu0 %v6410_v62  ;;  %v9827_v42 = vld [vmem:[#allocation14_spill] sm:$0xff]  ;;  %v9831_v59 = vsel %vm7487_vm9, %v9830_v63, 0.0  ;;  %v6419_v32 = vld [vmem:[%s9492_s2 + $0x7a8] sm:$0xff]   ;;  %v6422_v14 = vld [vmem:[%s9492_s2 + $0x7f0] sm:$0xff]   ;;  %p6571_p4 = pnand %p6570_p3, %p6564_p0 }
 0x1e0   :  { %v1245_v10 = vadd.f32 %v9821_v46, %v1233_v31  ;;  %v9828_v2 = vsel %vm7470_vm11, %v9827_v42, 0.0  ;;  %5978 = vmatpush3.bf16.msra.mxu1 %v6477_v16  ;;  %v6481_v37 = vld [vmem:[%s9492_s2 + $0xa20] sm:$0xff]   ;;  %v9832_v17 = vld [vmem:[#allocation23_spill] sm:$0xff]  ;;  %v6488_v15 = vld [vmem:[%s9492_s2 + $0xa70] sm:$0xff]  }
 0x1e1   :  { %5979 = vmatprep.subr.bf16.mxu1 %v6480_v43  ;;  %vm9833_vm11 = vnez %v9832_v17  ;;  %v9834_v30 = vld [vmem:[#allocation18_spill] sm:$0xff]  ;;  %v6485_v9 = vld [vmem:[%s9492_s2 + $0xa28] sm:$0xff]   ;;  %v9836_v24 = vld [vmem:[#allocation24_spill] sm:$0xff] }
 0x1e2   :  { %v1257_v60 = vadd.f32 %v9825_v36, %v1245_v10  ;;  %5868 = vmatpush3.bf16.msra.mxu0 %v6411_v11  ;;  %v9835_v45 = vsel %vm9833_vm11, %v9834_v30, 0.0  ;;  %vm9837_vm9 = vnez %v9836_v24  ;;  %v9838_v3 = vld [vmem:[#allocation21_spill] sm:$0xff]  ;;  %v6423_v19 = vld [vmem:[%s9492_s2 + $0x7b0] sm:$0xff]   ;;  %v9840_v13 = vld [vmem:[#allocation27_spill] sm:$0xff] }
 0x1e3   :  { %5869 = vmatprep.subr.bf16.mxu0 %v6414_v47  ;;  %v9839_v21 = vsel %vm9837_vm9, %v9838_v3, 0.0  ;;  %v6426_v28 = vld [vmem:[%s9492_s2 + $0x7f8] sm:$0xff]   ;;  %vm9841_vm10 = vnez %v9840_v13  ;;  %v9842_v62 = vld [vmem:[#allocation22_spill] sm:$0xff]  ;;  %v6489_v58 = vld [vmem:[%s9492_s2 + $0xa30] sm:$0xff]  }
 0x1e4   :  { %v1269_v48 = vadd.f32 %v9828_v2, %v1257_v60  ;;  %5980 = vmatpush3.bf16.msra.mxu1 %v6481_v37  ;;  %v9843_v39 = vsel %vm9841_vm10, %v9842_v62, 0.0  ;;  %v6492_v18 = vld [vmem:[%s9492_s2 + $0xa78] sm:$0xff]   ;;  %v9844_v23 = vld [vmem:[#allocation28_spill] sm:$0xff]  ;;  %v6430_v46 = vld [vmem:[%s9492_s2 + $0x8c0] sm:$0xff]  }
 0x1e5   :  { %5981 = vmatprep.subr.bf16.mxu1 %v6484_v57  ;;  %vm9845_vm8 = vnez %v9844_v23  ;;  %v9846_v31 = vld [vmem:[#allocation25_spill] sm:$0xff]  ;;  %v56_v38 = vld [vmem:[%s9491_s1 + $0xf0] sm:$0xff]  ;;  %v66_v56 = vld [vmem:[%s9491_s1 + $0x140] sm:$0xff] }
 0x1e6   :  { %v1281_v0 = vadd.f32 %v9831_v59, %v1269_v48  ;;  %5870 = vmatpush3.bf16.msra.mxu0 %v6415_v50  ;;  %v5679_v61 = vpop.f32.mrb[12].mxu1  ;;  %v9847_v11 = vsel %vm9845_vm8, %v9846_v31, 0.0  ;;  %v6427_v52 = vld [vmem:[%s9492_s2 + $0x7b8] sm:$0xff]   ;;  %v105_v36 = vpack.c.bf16 %v56_v38, %v56_v38  ;;  %v6496_v60 = vld [vmem:[%s9492_s2 + $0xb40] sm:$0xff]   ;;  %v71_v44 = vld [vmem:[%s9491_s1 + $0x168] sm:$0xff]  ;;  %v115_v57 = vpack.c.bf16 %v66_v56, %v66_v56 }
 0x1e7   :  { %5871 = vmatprep.subr.bf16.mxu0 %v6418_v6  ;;  %v5680_v40 = vpop.f32.mrb[13].mxu1  ;;  %v61_v10 = vld [vmem:[%s9491_s1 + $0x118] sm:$0xff]  ;;  %v9851_v50 = vld [vmem:[#allocation31_spill] sm:$0xff]  ;;  %v6431_v2 = vld [vmem:[%s9492_s2 + $0x880] sm:$0xff]  }
 0x1e8   :  { %v1293_v1 = vadd.f32 %v9835_v45, %v1281_v0  ;;  %v5569_v55 = vpop.f32.mrb[4].mxu0  ;;  %v9015_v25 = vadd.f32 %v5680_v40, %v5679_v61  ;;  %5982 = vmatpush3.bf16.msra.mxu1 %v6485_v9  ;;  %v5682_v26 = vpop.f32.mrb[14].mxu1  ;;  %v6493_v33 = vld [vmem:[%s9492_s2 + $0xa38] sm:$0xff]   ;;  %vm9852_vm6 = vnez %v9851_v50  ;;  %v110_v48 = vpack.c.bf16 %v61_v10, %v61_v10  ;;  %v6434_v37 = vld [vmem:[%s9492_s2 + $0x8c8] sm:$0xff]   ;;  %v9855_v51 = vld [vmem:[#allocation34_spill] sm:$0xff] }
 0x1e9   :  { %v5570_v7 = vpop.f32.mrb[5].mxu0  ;;  %5983 = vmatprep.subr.bf16.mxu1 %v6488_v15  ;;  %v5683_v41 = vpop.f32.mrb[15].mxu1  ;;  %v9853_v6 = vld [vmem:[#allocation29_spill] sm:$0xff]  ;;  %vm9856_vm12 = vnez %v9855_v51  ;;  %v9857_v63 = vld [vmem:[#allocation30_spill] sm:$0xff]  ;;  %v6500_v17 = vld [vmem:[%s9492_s2 + $0xb48] sm:$0xff]  }
 0x1ea   :  { %v1305_v12 = vadd.f32 %v9839_v21, %v1293_v1  ;;  %v5571_v5 = vadd.f32 %v5570_v7, %v5569_v55  ;;  %v5572_v34 = vpop.f32.mrb[6].mxu0  ;;  %5872 = vmatpush3.bf16.msra.mxu0 %v6419_v32  ;;  %v9854_v29 = vsel %vm9852_vm6, %v9853_v6, 0.0  ;;  %v9858_v59 = vsel %vm9856_vm12, %v9857_v63, 0.0  ;;  %v6497_v32 = vld [vmem:[%s9492_s2 + $0xb00] sm:$0xff]   ;;  %v9859_v30 = vld [vmem:[#allocation35_spill] sm:$0xff]  ;;  %v9861_v45 = vld [vmem:[#allocation32_spill] sm:$0xff] }
 0x1eb   :  { %v5573_v8 = vpop.f32.mrb[7].mxu0  ;;  %5873 = vmatprep.subr.bf16.mxu0 %v6422_v14  ;;  %v120_v14 = vpack.c.bf16 %v71_v44, %v71_v44  ;;  %vm9860_vm4 = vnez %v9859_v30  ;;  %v6435_v9 = vld [vmem:[%s9492_s2 + $0x888] sm:$0xff]   ;;  %v6438_v7 = vld [vmem:[%s9492_s2 + $0x8d0] sm:$0xff]   ;;  %v9863_v15 = vld [vmem:[#allocation38_spill] sm:$0xff] }
 0x1ec   :  { %v1317_v4 = vadd.f32 %v9843_v39, %v1305_v12  ;;  %v4053_v22 = vadd.f32 %v5571_v5, %v8834_v54  ;;  %5984 = vmatpush3.bf16.msra.mxu1 %v6489_v58  ;;  %v9862_v1 = vsel %vm9860_vm4, %v9861_v45, 0.0  ;;  %vm9864_vm0 = vnez %v9863_v15  ;;  %v9865_v24 = vld [vmem:[#allocation33_spill] sm:$0xff]  ;;  %v6501_v12 = vld [vmem:[%s9492_s2 + $0xb08] sm:$0xff]   ;;  %v6504_v5 = vld [vmem:[%s9492_s2 + $0xb50] sm:$0xff]  }
 0x1ed   :  { %5985 = vmatprep.subr.bf16.mxu1 %v6492_v18  ;;  %v9866_v3 = vsel %vm9864_vm0, %v9865_v24, 0.0  ;;  %v9867_v34 = vld [vmem:[#allocation39_spill] sm:$0xff]  ;;  %v6442_v40 = vld [vmem:[%s9492_s2 + $0x8d8] sm:$0xff]   ;;  %v9871_v13 = vld [vmem:[#allocation42_spill] sm:$0xff] }
 0x1ee   :  { %v1329_v47 = vadd.f32 %v9847_v11, %v1317_v4  ;;  %v9028_v54 = vadd.f32 %v8667_v35, %v4053_v22  ;;  %5874 = vmatpush3.bf16.msra.mxu0 %v6423_v19  ;;  %v9849_v35 = vld [vmem:[#allocation26_spill] sm:$0xff]  ;;  %vm9868_vm1 = vnez %v9867_v34  ;;  %v9869_v19 = vld [vmem:[#allocation36_spill] sm:$0xff]  ;;  %vm9872_vm13 = vnez %v9871_v13  ;;  %v9873_v62 = vld [vmem:[#allocation37_spill] sm:$0xff] }
 0x1ef   :  { %5875 = vmatprep.subr.bf16.mxu0 %v6426_v28  ;;  %v9850_v16 = vsel %vm9848_vm15, %v9849_v35, 0.0  ;;  %v9870_v61 = vsel %vm9868_vm1, %v9869_v19, 0.0  ;;  %v6439_v28 = vld [vmem:[%s9492_s2 + $0x890] sm:$0xff]   ;;  %v9874_v39 = vsel %vm9872_vm13, %v9873_v62, 0.0  ;;  %v6508_v58 = vld [vmem:[%s9492_s2 + $0xb58] sm:$0xff]   ;;  %v9875_v26 = vld [vmem:[#allocation43_spill] sm:$0xff] }
 0x1f0   :  { %v1341_v43 = vadd.f32 %v9850_v16, %v1329_v47  ;;  %5986 = vmatpush3.bf16.msra.mxu1 %v6493_v33  ;;  %v6505_v22 = vld [vmem:[%s9492_s2 + $0xb10] sm:$0xff]   ;;  %vm9876_vm2 = vnez %v9875_v26  ;;  %v6443_v31 = vld [vmem:[%s9492_s2 + $0x898] sm:$0xff]   ;;  %v6446_v11 = vld [vmem:[%s9492_s2 + $0x8e0] sm:$0xff]   ;;  %vm5097_vm15 = vcmask 261120  }
 0x1f1   :  { %6015 = vmatprep.subr.bf16.mxu1 %v6496_v60  ;;  %v9877_v18 = vld [vmem:[#allocation40_spill] sm:$0xff]  ;;  %v9879_v47 = vld [vmem:[#allocation46_spill] sm:$0xff]  ;;  %v6509_v10 = vld [vmem:[%s9492_s2 + $0xb18] sm:$0xff]  }
 0x1f2   :  { %v1353_v42 = vadd.f32 %v9854_v29, %v1341_v43  ;;  %5876 = vmatpush3.bf16.msra.mxu0 %v6427_v52  ;;  %v9878_v41 = vsel %vm9876_vm2, %v9877_v18, 0.0  ;;  %vm9880_vm3 = vnez %v9879_v47  ;;  %v9881_v52 = vld [vmem:[#allocation41_spill] sm:$0xff]  ;;  %v6512_v35 = vld [vmem:[%s9492_s2 + $0xb60] sm:$0xff]   ;;  %v9883_v16 = vld [vmem:[#allocation47_spill] sm:$0xff]  ;;  %v9900_v47 = vmov 0.0  }
 0x1f3   :  { %5905 = vmatprep.subr.bf16.mxu0 %v6430_v46  ;;  %4811 = vmatmul.mubr.bf16.vlgmr.msra.gmra.mrb[40].mxu1 %v115_v57  ;;  %v9882_v38 = vsel %vm9880_vm3, %v9881_v52, 0.0  ;;  %vm9884_vm5 = vnez %v9883_v16  ;;  %v9885_v43 = vld [vmem:[#allocation44_spill] sm:$0xff]  ;;  %v6450_v60 = vld [vmem:[%s9492_s2 + $0x8e8] sm:$0xff]   ;;  %v9887_v44 = vld [vmem:[#allocation50_spill] sm:$0xff] }
 0x1f4   :  { %v1365_v0 = vadd.f32 %v9858_v59, %v1353_v42  ;;  %6016 = vmatpush3.bf16.msra.mxu1 %v6497_v32  ;;  %4890 = vmatprep.mubr.bf16.mxu1 %v120_v14  ;;  %v9886_v33 = vsel %vm9884_vm5, %v9885_v43, 0.0  ;;  %vm9888_vm11 = vnez %v9887_v44  ;;  %v9889_v50 = vld [vmem:[#allocation45_spill] sm:$0xff]  ;;  %v6513_v42 = vld [vmem:[%s9492_s2 + $0xb20] sm:$0xff]   ;;  %v6451_v63 = vld [vmem:[%s9492_s2 + $0x8a8] sm:$0xff]  }
 0x1f5   :  { %4611 = vmatmul.mubr.bf16.vlgmr.msra.gmra.mrb[32].mxu0 %v105_v36  ;;  %6017 = vmatprep.subr.bf16.mxu1 %v6500_v17  ;;  %v6447_v36 = vld [vmem:[%s9492_s2 + $0x8a0] sm:$0xff]   ;;  %v9890_v6 = vsel %vm9888_vm11, %v9889_v50, 0.0  ;;  %v6454_v59 = vld [vmem:[%s9492_s2 + $0x8f0] sm:$0xff]   ;;  %v6517_v30 = vld [vmem:[%s9492_s2 + $0xb28] sm:$0xff]  }
 0x1f6   :  { %v1377_v55 = vadd.f32 %v9862_v1, %v1365_v0  ;;  %5906 = vmatpush3.bf16.msra.mxu0 %v6431_v2  ;;  %4690 = vmatprep.mubr.bf16.mxu0 %v110_v48  ;;  %v6516_v2 = vld [vmem:[%s9492_s2 + $0xb68] sm:$0xff]   ;;  %v9895_v0 = vld [vmem:[#allocation49_spill] sm:$0xff]  ;;  %v6520_v1 = vld [vmem:[%s9492_s2 + $0xb70] sm:$0xff]  }
 0x1f7   :  { %5907 = vmatprep.subr.bf16.mxu0 %v6434_v37  ;;  %v9891_v48 = vld [vmem:[#allocation51_spill] sm:$0xff]  ;;  %v9893_v37 = vld [vmem:[#allocation48_spill] sm:$0xff]  ;;  %v9896_v32 = vsel %vm7983_vm7, %v9895_v0, 0.0  ;;  %v6463_v18 = vld [vmem:[%s9492_s2 + $0x980] sm:$0xff]   ;;  %vm9901_vm7 = vmmov 0  }
 0x1f8   :  { %v1389_v21 = vadd.f32 %v9866_v3, %v1377_v55  ;;  %6018 = vmatpush3.bf16.msra.mxu1 %v6501_v12  ;;  %vm9892_vm9 = vnez %v9891_v48  ;;  %v6455_v3 = vld [vmem:[%s9492_s2 + $0x8b0] sm:$0xff]   ;;  %v6467_v52 = vld [vmem:[%s9492_s2 + $0x988] sm:$0xff]   ;;  %v6475_v43 = vld [vmem:[%s9492_s2 + $0x998] sm:$0xff]  }
 0x1f9   :  { %6019 = vmatprep.subr.bf16.mxu1 %v6504_v5  ;;  %v9894_v57 = vsel %vm9892_vm9, %v9893_v37, 0.0  ;;  %v6458_v5 = vld [vmem:[%s9492_s2 + $0x8f8] sm:$0xff]   ;;  %v6536_v16 = vld [vmem:[%s9492_s2 + $0xc10] sm:$0xff]   ;;  %v6542_v44 = vld [vmem:[%s9492_s2 + $0xc20] sm:$0xff]  }
 0x1fa   :  { %v1401_v8 = vadd.f32 %v9870_v61, %v1389_v21  ;;  %5908 = vmatpush3.bf16.msra.mxu0 %v6435_v9  ;;  %v9898_v9 = vld [vmem:[#allocation52_spill] sm:$0xff]  ;;  %v6483_v50 = vld [vmem:[%s9492_s2 + $0x9a8] sm:$0xff]   ;;  %v6491_v55 = vld [vmem:[%s9492_s2 + $0x9b8] sm:$0xff]  }
 0x1fb   :  { %5909 = vmatprep.subr.bf16.mxu0 %v6438_v7  ;;  %v9899_v7 = vsel %vm7996_vm14, %v9898_v9, 0.0  ;;  %v64_v9 = vld [vmem:[%s9491_s1 + $0x130] sm:$0xff] }
 0x1fc   :  { %v1413_v4 = vadd.f32 %v9874_v39, %v1401_v8  ;;  %6020 = vmatpush3.bf16.msra.mxu1 %v6505_v22  ;;  %v6521_v8 = vld [vmem:[%s9492_s2 + $0xb30] sm:$0xff]   ;;  %v65_v22 = vld [vmem:[%s9491_s1 + $0x138] sm:$0xff] }
 0x1fd   :  { %6021 = vmatprep.subr.bf16.mxu1 %v6508_v58  ;;  %v60_v39 = vld [vmem:[%s9491_s1 + $0x110] sm:$0xff]  ;;  %v70_v58 = vld [vmem:[%s9491_s1 + $0x160] sm:$0xff] }
 0x1fe   :  { %v1425_v23 = vadd.f32 %v9878_v41, %v1413_v4  ;;  %5910 = vmatpush3.bf16.msra.mxu0 %v6439_v28  ;;  %v6462_v4 = vld [vmem:[%s9492_s2 + $0x9c0] sm:$0xff]   ;;  %v109_v26 = vpack.c.bf16 %v60_v39, %v60_v39  ;;  %v114_v41 = vpack.c.bf16 %v65_v22, %v65_v22  ;;  %v6514_v39 = vld [vmem:[%s9492_s2 + $0xae8] sm:$0xff]   ;;  %v6518_v22 = vld [vmem:[%s9492_s2 + $0xaf0] sm:$0xff]  }
 0x1ff   :  { %5911 = vmatprep.subr.bf16.mxu0 %v6442_v40  ;;  %v6524_v40 = vld [vmem:[%s9492_s2 + $0xb78] sm:$0xff]  }
 0x200   :  { %v1437_v46 = vadd.f32 %v9882_v38, %v1425_v23  ;;  %6022 = vmatpush3.bf16.msra.mxu1 %v6509_v10  ;;  %v6466_v23 = vld [vmem:[%s9492_s2 + $0x9c8] sm:$0xff]   ;;  %v6470_v38 = vld [vmem:[%s9492_s2 + $0x9d0] sm:$0xff]  }
 0x201   :  { %6023 = vmatprep.subr.bf16.mxu1 %v6512_v35  ;;  %v6471_v10 = vld [vmem:[%s9492_s2 + $0x990] sm:$0xff]   ;;  %v6474_v35 = vld [vmem:[%s9492_s2 + $0x9d8] sm:$0xff]  }
 0x202   :  { %v1449_v56 = vadd.f32 %v9886_v33, %v1437_v46  ;;  %5912 = vmatpush3.bf16.msra.mxu0 %v6443_v31  ;;  %v119_v31 = vpack.c.bf16 %v70_v58, %v70_v58  ;;  %v6533_v46 = vld [vmem:[%s9492_s2 + $0xc08] sm:$0xff]   ;;  %v6478_v33 = vld [vmem:[%s9492_s2 + $0x9e0] sm:$0xff]  }
 0x203   :  { %5913 = vmatprep.subr.bf16.mxu0 %v6446_v11  ;;  %v6530_v11 = vld [vmem:[%s9492_s2 + $0xc00] sm:$0xff]  }
 0x204   :  { %v1461_v29 = vadd.f32 %v9890_v6, %v1449_v56  ;;  %6024 = vmatpush3.bf16.msra.mxu1 %v6513_v42  ;;  %v6539_v56 = vld [vmem:[%s9492_s2 + $0xc18] sm:$0xff]   ;;  %v6486_v6 = vld [vmem:[%s9492_s2 + $0x9f0] sm:$0xff]   ;;  %v6545_v42 = vld [vmem:[%s9492_s2 + $0xc28] sm:$0xff]  }
 0x205   :  { %6025 = vmatprep.subr.bf16.mxu1 %v6516_v2 }
 0x206   :  { %v1473_v51 = vadd.f32 %v9894_v57, %v1461_v29  ;;  %5914 = vmatpush3.bf16.msra.mxu0 %v6447_v36  ;;  %v5723_v21 = vpop.f32.mrb[16].mxu1  ;;  %v6479_v36 = vld [vmem:[%s9492_s2 + $0x9a0] sm:$0xff]   ;;  %v6487_v57 = vld [vmem:[%s9492_s2 + $0x9b0] sm:$0xff]  }
 0x207   :  { %5915 = vmatprep.subr.bf16.mxu0 %v6450_v60  ;;  %v5724_v34 = vpop.f32.mrb[17].mxu1  ;;  %v6482_v60 = vld [vmem:[%s9492_s2 + $0x9e8] sm:$0xff]  }
 0x208   :  { %v1485_v14 = vadd.f32 %v9896_v32, %v1473_v51  ;;  %v5613_v17 = vpop.f32.mrb[8].mxu0  ;;  %v9191_v61 = vadd.f32 %v5724_v34, %v5723_v21  ;;  %6026 = vmatpush3.bf16.msra.mxu1 %v6517_v30  ;;  %v5726_v28 = vpop.f32.mrb[18].mxu1 }
 0x209   :  { %v5614_v45 = vpop.f32.mrb[9].mxu0  ;;  %6027 = vmatprep.subr.bf16.mxu1 %v6520_v1  ;;  %v5727_v13 = vpop.f32.mrb[19].mxu1  ;;  %v6503_v28 = vld [vmem:[%s9492_s2 + $0xa90] sm:$0xff]  }
 0x20a   :  { %v9182_v20 = vadd.f32 %v9899_v7, %v1485_v14  ;;  %v5615_v15 = vadd.f32 %v5614_v45, %v5613_v17  ;;  %v5616_v24 = vpop.f32.mrb[10].mxu0  ;;  %5916 = vmatpush3.bf16.msra.mxu0 %v6451_v63  ;;  %v6548_v17 = vld [vmem:[%s9492_s2 + $0xc30] sm:$0xff]   ;;  %v6494_v7 = vld [vmem:[%s9492_s2 + $0xac0] sm:$0xff]   ;;  %v6507_v13 = vld [vmem:[%s9492_s2 + $0xa98] sm:$0xff]  }
 0x20b   :  { %v5617_v12 = vpop.f32.mrb[11].mxu0  ;;  %5917 = vmatprep.subr.bf16.mxu0 %v6454_v59  ;;  %v6490_v59 = vld [vmem:[%s9492_s2 + $0x9f8] sm:$0xff]   ;;  %v113_v24 = vpack.c.bf16 %v64_v9, %v64_v9 }
 0x20c   :  { %v4133_v19 = vadd.f32 %v5615_v15, %v9028_v54  ;;  %v6459_v54 = vld [vmem:[%s9492_s2 + $0x8b8] sm:$0xff]   ;;  %6028 = vmatpush3.bf16.msra.mxu1 %v6521_v8  ;;  %v6498_v12 = vld [vmem:[%s9492_s2 + $0xac8] sm:$0xff]   ;;  %v6502_v8 = vld [vmem:[%s9492_s2 + $0xad0] sm:$0xff]  }
 0x20d   :  { %6029 = vmatprep.subr.bf16.mxu1 %v6524_v40  ;;  %v69_v15 = vld [vmem:[%s9491_s1 + $0x158] sm:$0xff] }
 0x20e   :  { %v9200_v62 = vadd.f32 %v8840_v27, %v4133_v19  ;;  %5918 = vmatpush3.bf16.msra.mxu0 %v6455_v3  ;;  %v6525_v27 = vld [vmem:[%s9492_s2 + $0xb38] sm:$0xff]   ;;  %v6495_v3 = vld [vmem:[%s9492_s2 + $0xa80] sm:$0xff]   ;;  %v118_v21 = vpack.c.bf16 %v69_v15, %v69_v15  ;;  %v6499_v19 = vld [vmem:[%s9492_s2 + $0xa88] sm:$0xff]  }
 0x20f   :  { %5919 = vmatprep.subr.bf16.mxu0 %v6458_v5  ;;  %v9321_v5 = vld [vmem:[%s9491_s1 + $0x180] sm:$0xff]  ;;  %v6506_v40 = vld [vmem:[%s9492_s2 + $0xad8] sm:$0xff]  }
 0x210   :  { %6030 = vmatpush3.bf16.msra.mxu1 %v6525_v27  ;;  %v123_v34 = vpack.c.bf16 %v9321_v5, %v9321_v5  ;;  %v6546_v9 = vld [vmem:[%s9492_s2 + $0xbf8] sm:$0xff]  }
 0x211   :  { %6097 = vmatprep.subr.bf16.mxu1 %v9900_v47 }
 0x212   :  { %5920 = vmatpush3.bf16.msra.mxu0 %v6459_v54  ;;  %v6511_v54 = vld [vmem:[%s9492_s2 + $0xaa0] sm:$0xff]  }
 0x213   :  { %5949 = vmatprep.subr.bf16.mxu0 %v6462_v4  ;;  %4891 = vmatmul.mubr.bf16.vlgmr.msra.gmra.mrb[44].mxu1 %v119_v31  ;;  %v6515_v4 = vld [vmem:[%s9492_s2 + $0xaa8] sm:$0xff]  }
 0x214   :  { %6098 = vmatpush3.bf16.msra.mxu1 %v6530_v11  ;;  %6113 = vmatprep.mubr.msk.bf16.mxu1 %vm9901_vm7, %v9900_v47  ;;  %v6522_v11 = vld [vmem:[%s9492_s2 + $0xaf8] sm:$0xff]  }
 0x215   :  { %4691 = vmatmul.mubr.bf16.vlgmr.msra.gmra.mrb[36].mxu0 %v109_v26  ;;  %6099 = vmatprep.subr.bf16.mxu1 %v9900_v47 }
 0x216   :  { %5950 = vmatpush3.bf16.msra.mxu0 %v6463_v18  ;;  %4770 = vmatprep.mubr.bf16.mxu0 %v114_v41  ;;  %v6519_v41 = vld [vmem:[%s9492_s2 + $0xab0] sm:$0xff]  }
 0x217   :  { %5951 = vmatprep.subr.bf16.mxu0 %v6466_v23 }
 0x218   :  { %6100 = vmatpush3.bf16.msra.mxu1 %v6533_v46 }
 0x219   :  { %6101 = vmatprep.subr.bf16.mxu1 %v9900_v47 }
 0x21a   :  { %5952 = vmatpush3.bf16.msra.mxu0 %v6467_v52 }
 0x21b   :  { %5953 = vmatprep.subr.bf16.mxu0 %v6470_v38 }
 0x21c   :  { %6102 = vmatpush3.bf16.msra.mxu1 %v6536_v16 }
 0x21d   :  { %6103 = vmatprep.subr.bf16.mxu1 %v9900_v47 }
 0x21e   :  { %5954 = vmatpush3.bf16.msra.mxu0 %v6471_v10 }
 0x21f   :  { %5955 = vmatprep.subr.bf16.mxu0 %v6474_v35 }
 0x220   :  { %6104 = vmatpush3.bf16.msra.mxu1 %v6539_v56  ;;  %v6526_v56 = vld [vmem:[%s9492_s2 + $0xbc0] sm:$0xff]  }
 0x221   :  { %6105 = vmatprep.subr.bf16.mxu1 %v9900_v47 }
 0x222   :  { %5956 = vmatpush3.bf16.msra.mxu0 %v6475_v43  ;;  %v6523_v43 = vld [vmem:[%s9492_s2 + $0xab8] sm:$0xff]  }
 0x223   :  { %5957 = vmatprep.subr.bf16.mxu0 %v6478_v33  ;;  %v68_v33 = vld [vmem:[%s9491_s1 + $0x150] sm:$0xff] }
 0x224   :  { %6106 = vmatpush3.bf16.msra.mxu1 %v6542_v44 }
 0x225   :  { %6107 = vmatprep.subr.bf16.mxu1 %v9900_v47 }
 0x226   :  { %5958 = vmatpush3.bf16.msra.mxu0 %v6479_v36  ;;  %v5767_v51 = vpop.f32.mrb[20].mxu1  ;;  %v73_v36 = vld [vmem:[%s9491_s1 + $0x178] sm:$0xff] }
 0x227   :  { %5959 = vmatprep.subr.bf16.mxu0 %v6482_v60  ;;  %v5768_v0 = vpop.f32.mrb[21].mxu1  ;;  %v117_v60 = vpack.c.bf16 %v68_v33, %v68_v33  ;;  %v122_v44 = vpack.c.bf16 %v73_v36, %v73_v36 }
 0x228   :  { %v5657_v29 = vpop.f32.mrb[12].mxu0  ;;  %v9289_v14 = vadd.f32 %v5768_v0, %v5767_v51  ;;  %6108 = vmatpush3.bf16.msra.mxu1 %v6545_v42  ;;  %v5770_v30 = vpop.f32.mrb[22].mxu1  ;;  %v6532_v42 = vld [vmem:[%s9492_s2 + $0xb90] sm:$0xff]   ;;  %v6540_v51 = vld [vmem:[%s9492_s2 + $0xbe8] sm:$0xff]  }
 0x229   :  { %v5658_v2 = vpop.f32.mrb[13].mxu0  ;;  %6109 = vmatprep.subr.bf16.mxu1 %v9900_v47  ;;  %v5771_v45 = vpop.f32.mrb[23].mxu1 }
 0x22a   :  { %v5659_v48 = vadd.f32 %v5658_v2, %v5657_v29  ;;  %v5660_v37 = vpop.f32.mrb[14].mxu0  ;;  %5960 = vmatpush3.bf16.msra.mxu0 %v6483_v50  ;;  %v6528_v50 = vld [vmem:[%s9492_s2 + $0xbc8] sm:$0xff]   ;;  %v6531_v29 = vld [vmem:[%s9492_s2 + $0xbd0] sm:$0xff]   ;;  %v6534_v2 = vld [vmem:[%s9492_s2 + $0xbd8] sm:$0xff]  }
 0x22b   :  { %v5661_v63 = vpop.f32.mrb[15].mxu0  ;;  %5961 = vmatprep.subr.bf16.mxu0 %v6486_v6  ;;  %v6529_v6 = vld [vmem:[%s9492_s2 + $0xb88] sm:$0xff]   ;;  %v6537_v37 = vld [vmem:[%s9492_s2 + $0xbe0] sm:$0xff]   ;;  %v6544_v45 = vld [vmem:[%s9492_s2 + $0xbb0] sm:$0xff]  }
 0x22c   :  { %v4213_v32 = vadd.f32 %v5659_v48, %v9200_v62  ;;  %6110 = vmatpush3.bf16.msra.mxu1 %v6548_v17  ;;  %v6510_v62 = vld [vmem:[%s9492_s2 + $0xae0] sm:$0xff]   ;;  %v6535_v48 = vld [vmem:[%s9492_s2 + $0xb98] sm:$0xff]   ;;  %v6541_v63 = vld [vmem:[%s9492_s2 + $0xba8] sm:$0xff]  }
 0x22d   :  { %6111 = vmatprep.subr.bf16.mxu1 %v9900_v47 }
 0x22e   :  { %v4253_v1 = vadd.f32 %v9015_v25, %v4213_v32  ;;  %5962 = vmatpush3.bf16.msra.mxu0 %v6487_v57  ;;  %v6550_v25 = vld [vmem:[%s9492_s2 + $0xc38] sm:$0xff]   ;;  %v6538_v57 = vld [vmem:[%s9492_s2 + $0xba0] sm:$0xff]  }
 0x22f   :  { %5963 = vmatprep.subr.bf16.mxu0 %v6490_v59  ;;  %v6543_v59 = vld [vmem:[%s9492_s2 + $0xbf0] sm:$0xff]  }
 0x230   :  { %6112 = vmatpush3.bf16.msra.mxu1 %v6550_v25 }
 0x232   :  { %5964 = vmatpush3.bf16.msra.mxu0 %v6491_v55 }
 0x233   :  { %5993 = vmatprep.subr.bf16.mxu0 %v6494_v7  ;;  %6114 = vmatmul.mubr.bf16.vlgmr.msra.gmra.mrb[48].mxu1 %v123_v34  ;;  %v72_v34 = vld [vmem:[%s9491_s1 + $0x170] sm:$0xff] }
 0x235   :  { %4771 = vmatmul.mubr.bf16.vlgmr.msra.gmra.mrb[40].mxu0 %v113_v24 }
 0x236   :  { %5994 = vmatpush3.bf16.msra.mxu0 %v6495_v3  ;;  %4850 = vmatprep.mubr.bf16.mxu0 %v118_v21 }
 0x237   :  { %5995 = vmatprep.subr.bf16.mxu0 %v6498_v12  ;;  %v6547_v12 = vld [vmem:[%s9492_s2 + $0xbb8] sm:$0xff]  }
 0x23a   :  { %5996 = vmatpush3.bf16.msra.mxu0 %v6499_v19  ;;  %v121_v19 = vpack.c.bf16 %v72_v34, %v72_v34 }
 0x23b   :  { %5997 = vmatprep.subr.bf16.mxu0 %v6502_v8  ;;  %v6549_v8 = vld [vmem:[%s9494_s4] sm:$0xff]  }
 0x23e   :  { %5998 = vmatpush3.bf16.msra.mxu0 %v6503_v28  ;;  %v6552_v28 = vld [vmem:[%s9494_s4 + $0x10] sm:$0xff]  }
 0x23f   :  { %5999 = vmatprep.subr.bf16.mxu0 %v6506_v40  ;;  %v6553_v40 = vld [vmem:[%s9494_s4 + $0x18] sm:$0xff]  }
 0x242   :  { %6000 = vmatpush3.bf16.msra.mxu0 %v6507_v13  ;;  %v6554_v13 = vld [vmem:[%s9494_s4 + $0x20] sm:$0xff]  }
 0x243   :  { %6001 = vmatprep.subr.bf16.mxu0 %v6510_v62  ;;  %v6555_v62 = vld [vmem:[%s9494_s4 + $0x28] sm:$0xff]  }
 0x246   :  { %6002 = vmatpush3.bf16.msra.mxu0 %v6511_v54  ;;  %v5811_v23 = vpop.f32.mrb[24].mxu1  ;;  %v9902_v54 = vld [vmem:[#allocation53_spill] sm:$0xff] }
 0x247   :  { %6003 = vmatprep.subr.bf16.mxu0 %v6514_v39  ;;  %v5812_v52 = vpop.f32.mrb[25].mxu1  ;;  %vm1502_vm14 = vcmp.ge.s32.totalorder %v9902_v54, %v6771_v49  ;;  %vm1503_vm10 = vcmp.lt.s32.totalorder %v9902_v54, %v6782_v53 }
 0x248   :  { %v5701_v27 = vpop.f32.mrb[16].mxu0  ;;  %v9361_v46 = vadd.f32 %v5812_v52, %v5811_v23  ;;  %v5814_v10 = vpop.f32.mrb[26].mxu1  ;;  %vm9457_vm8 = vmand %vm1502_vm14, %vm1503_vm10 }
 0x249   :  { %v5702_v58 = vpop.f32.mrb[17].mxu0  ;;  %v5815_v35 = vpop.f32.mrb[27].mxu1  ;;  %v1507_v23 = vsel %vm9457_vm8, %v9321_v5, 0.0  ;;  %v6557_v10 = vld [vmem:[%s9494_s4 + $0x38] sm:$0xff]  }
 0x24a   :  { %v5703_v26 = vadd.f32 %v5702_v58, %v5701_v27  ;;  %v5704_v18 = vpop.f32.mrb[18].mxu0  ;;  %6004 = vmatpush3.bf16.msra.mxu0 %v6515_v4  ;;  %v1508_v35 = vadd.f32 %v1507_v23, %v9182_v20 }
 0x24b   :  { %v5705_v31 = vpop.f32.mrb[19].mxu0  ;;  %6005 = vmatprep.subr.bf16.mxu0 %v6518_v22 }
 0x24c   :  { %v4293_v38 = vadd.f32 %v5703_v26, %v4253_v1  ;;  %v6556_v26 = vld [vmem:[%s9494_s4 + $0x30] sm:$0xff]  }
 0x24e   :  { %v4333_v16 = vadd.f32 %v9191_v61, %v4293_v38  ;;  %6006 = vmatpush3.bf16.msra.mxu0 %v6519_v41  ;;  %v6527_v61 = vld [vmem:[%s9492_s2 + $0xb80] sm:$0xff]  }
 0x24f   :  { %6007 = vmatprep.subr.bf16.mxu0 %v6522_v11 }
 0x252   :  { %6008 = vmatpush3.bf16.msra.mxu0 %v6523_v43 }
 0x253   :  { %6037 = vmatprep.subr.bf16.mxu0 %v6526_v56 }
 0x255   :  { %4851 = vmatmul.mubr.bf16.vlgmr.msra.gmra.mrb[44].mxu0 %v117_v60 }
 0x256   :  { %6038 = vmatpush3.bf16.msra.mxu0 %v6527_v61  ;;  %4930 = vmatprep.mubr.bf16.mxu0 %v122_v44 }
 0x257   :  { %6039 = vmatprep.subr.bf16.mxu0 %v6528_v50 }
 0x25a   :  { %6040 = vmatpush3.bf16.msra.mxu0 %v6529_v6 }
 0x25b   :  { %6041 = vmatprep.subr.bf16.mxu0 %v6531_v29 }
 0x25e   :  { %6042 = vmatpush3.bf16.msra.mxu0 %v6532_v42 }
 0x25f   :  { %6043 = vmatprep.subr.bf16.mxu0 %v6534_v2 }
 0x262   :  { %6044 = vmatpush3.bf16.msra.mxu0 %v6535_v48 }
 0x263   :  { %6045 = vmatprep.subr.bf16.mxu0 %v6537_v37 }
 0x266   :  { %6046 = vmatpush3.bf16.msra.mxu0 %v6538_v57  ;;  %v5855_v1 = vpop.f32.mrb[28].mxu1 }
 0x267   :  { %6047 = vmatprep.subr.bf16.mxu0 %v6540_v51  ;;  %v5856_v7 = vpop.f32.mrb[29].mxu1 }
 0x268   :  { %v5745_v0 = vpop.f32.mrb[20].mxu0  ;;  %v9418_v25 = vadd.f32 %v5856_v7, %v5855_v1  ;;  %v5858_v24 = vpop.f32.mrb[30].mxu1 }
 0x269   :  { %v5746_v32 = vpop.f32.mrb[21].mxu0  ;;  %v5859_v3 = vpop.f32.mrb[31].mxu1 }
 0x26a   :  { %v5747_v17 = vadd.f32 %v5746_v32, %v5745_v0  ;;  %v5748_v30 = vpop.f32.mrb[22].mxu0  ;;  %6048 = vmatpush3.bf16.msra.mxu0 %v6541_v63 }
 0x26b   :  { %v5749_v55 = vpop.f32.mrb[23].mxu0  ;;  %6049 = vmatprep.subr.bf16.mxu0 %v6543_v59 }
 0x26c   :  { %v4373_v15 = vadd.f32 %v5747_v17, %v4333_v16  ;;  %v4978_v16 = vpack.c.bf16 %v1508_v35, %v1508_v35 }
 0x26e   :  { %v4413_v21 = vadd.f32 %v9289_v14, %v4373_v15  ;;  %6050 = vmatpush3.bf16.msra.mxu0 %v6544_v45  ;;  %v6551_v14 = vld [vmem:[%s9494_s4 + $0x8] sm:$0xff]  }
 0x26f   :  { %6051 = vmatprep.subr.bf16.mxu0 %v6546_v9 }
 0x272   :  { %6052 = vmatpush3.bf16.msra.mxu0 %v6547_v12 }
 0x273   :  { %6117 = vmatprep.subr.bf16.mxu0 %v9900_v47 }
 0x275   :  { %4931 = vmatmul.mubr.bf16.vlgmr.msra.gmra.mrb[48].mxu0 %v121_v19 }
 0x276   :  { %6118 = vmatpush3.bf16.msra.mxu0 %v6549_v8  ;;  %6133 = vmatprep.mubr.msk.bf16.mxu0 %vm9901_vm7, %v9900_v47 }
 0x277   :  { %6119 = vmatprep.subr.bf16.mxu0 %v9900_v47 }
 0x27a   :  { %6120 = vmatpush3.bf16.msra.mxu0 %v6551_v14 }
 0x27b   :  { %6121 = vmatprep.subr.bf16.mxu0 %v9900_v47 }
 0x27e   :  { %6122 = vmatpush3.bf16.msra.mxu0 %v6552_v28 }
 0x27f   :  { %6123 = vmatprep.subr.bf16.mxu0 %v9900_v47 }
 0x282   :  { %6124 = vmatpush3.bf16.msra.mxu0 %v6553_v40 }
 0x283   :  { %6125 = vmatprep.subr.bf16.mxu0 %v9900_v47 }
 0x286   :  { %6126 = vmatpush3.bf16.msra.mxu0 %v6554_v13  ;;  %v5899_v18 = vpop.f32.mrb[32].mxu1 }
 0x287   :  { %6127 = vmatprep.subr.bf16.mxu0 %v9900_v47  ;;  %v5900_v53 = vpop.f32.mrb[33].mxu1 }
 0x288   :  { %v5789_v39 = vpop.f32.mrb[24].mxu0  ;;  %v5901_v31 = vadd.f32 %v5900_v53, %v5899_v18  ;;  %v5902_v11 = vpop.f32.mrb[34].mxu1 }
 0x289   :  { %v5790_v4 = vpop.f32.mrb[25].mxu0  ;;  %v5903_v52 = vpop.f32.mrb[35].mxu1 }
 0x28a   :  { %v5791_v27 = vadd.f32 %v5790_v4, %v5789_v39  ;;  %v5792_v58 = vpop.f32.mrb[26].mxu0  ;;  %6128 = vmatpush3.bf16.msra.mxu0 %v6555_v62 }
 0x28b   :  { %v5793_v49 = vpop.f32.mrb[27].mxu0  ;;  %6129 = vmatprep.subr.bf16.mxu0 %v9900_v47 }
 0x28c   :  { %v4453_v41 = vadd.f32 %v5791_v27, %v4413_v21 }
 0x28e   :  { %v4493_v38 = vadd.f32 %v9361_v46, %v4453_v41  ;;  %6130 = vmatpush3.bf16.msra.mxu0 %v6556_v26 }
 0x28f   :  { %6131 = vmatprep.subr.bf16.mxu0 %v9900_v47 }
 0x292   :  { %6132 = vmatpush3.bf16.msra.mxu0 %v6557_v10  ;;  %v5085_v10 = vpop.permute.xlu1 %5084 }
 0x295   :  { %6134 = vmatmul.mubr.bf16.vlgmr.msra.gmra.mrb[52].mxu0 %v4978_v16 }
 0x2a6   :  { %v5943_v36 = vpop.f32.mrb[36].mxu1 }
 0x2a7   :  { %v5944_v61 = vpop.f32.mrb[37].mxu1 }
 0x2a8   :  { %v5833_v43 = vpop.f32.mrb[28].mxu0  ;;  %v5945_v44 = vadd.f32 %v5944_v61, %v5943_v36  ;;  %v5946_v50 = vpop.f32.mrb[38].mxu1 }
 0x2a9   :  { %v5834_v33 = vpop.f32.mrb[29].mxu0  ;;  %v5947_v6 = vpop.f32.mrb[39].mxu1 }
 0x2aa   :  { %v5835_v5 = vadd.f32 %v5834_v33, %v5833_v43  ;;  %v5836_v56 = vpop.f32.mrb[30].mxu0 }
 0x2ab   :  { %v5837_v60 = vpop.f32.mrb[31].mxu0 }
 0x2ac   :  { %v4533_v46 = vadd.f32 %v5835_v5, %v4493_v38  ;;  %v5521_v5 = vld [vmem:[%s9495_s5] ss:$0 sm:$0xff] }
 0x2ae   :  { %v4573_v29 = vadd.f32 %v9418_v25, %v4533_v46 }
 0x2c6   :  { %v5987_v48 = vpop.f32.mrb[40].mxu1 }
 0x2c7   :  { %v5988_v57 = vpop.f32.mrb[41].mxu1 }
 0x2c8   :  { %v5877_v42 = vpop.f32.mrb[32].mxu0  ;;  %v5989_v63 = vadd.f32 %v5988_v57, %v5987_v48  ;;  %v5990_v59 = vpop.f32.mrb[42].mxu1 }
 0x2c9   :  { %v5878_v47 = vpop.f32.mrb[33].mxu0  ;;  %v5991_v0 = vpop.f32.mrb[43].mxu1 }
 0x2ca   :  { %v5879_v2 = vadd.f32 %v5878_v47, %v5877_v42  ;;  %v5880_v20 = vpop.f32.mrb[34].mxu0 }
 0x2cb   :  { %v5881_v37 = vpop.f32.mrb[35].mxu0 }
 0x2cc   :  { %v4613_v51 = vadd.f32 %v5879_v2, %v4573_v29 }
 0x2ce   :  { %v4653_v32 = vadd.f32 %v5901_v31, %v4613_v51 }
 0x2e6   :  { %v6031_v55 = vpop.f32.mrb[44].mxu1 }
 0x2e7   :  { %v6032_v7 = vpop.f32.mrb[45].mxu1 }
 0x2e8   :  { %v5921_v17 = vpop.f32.mrb[36].mxu0  ;;  %v6033_v25 = vadd.f32 %v6032_v7, %v6031_v55  ;;  %v6034_v24 = vpop.f32.mrb[46].mxu1 }
 0x2e9   :  { %v5922_v30 = vpop.f32.mrb[37].mxu0  ;;  %v6035_v3 = vpop.f32.mrb[47].mxu1 }
 0x2ea   :  { %v5923_v45 = vadd.f32 %v5922_v30, %v5921_v17  ;;  %v5924_v1 = vpop.f32.mrb[38].mxu0 }
 0x2eb   :  { %v5925_v9 = vpop.f32.mrb[39].mxu0 }
 0x2ec   :  { %v4693_v15 = vadd.f32 %v5923_v45, %v4653_v32 }
 0x2ee   :  { %v4733_v21 = vadd.f32 %v5945_v44, %v4693_v15 }
 0x306   :  { %v4972_v14 = vpop.f32.mrb[48].mxu1 }
 0x307   :  { %v6115_v40 = vpop.f32.mrb[49].mxu1 }
 0x308   :  { %v5965_v12 = vpop.f32.mrb[40].mxu0  ;;  %v4975_v62 = vpop.f32.mrb[50].mxu1 }
 0x309   :  { %v5966_v34 = vpop.f32.mrb[41].mxu0  ;;  %v6116_v54 = vpop.f32.mrb[51].mxu1 }
 0x30a   :  { %v5967_v19 = vadd.f32 %v5966_v34, %v5965_v12  ;;  %v5968_v8 = vpop.f32.mrb[42].mxu0 }
 0x30b   :  { %v5969_v28 = vpop.f32.mrb[43].mxu0 }
 0x30c   :  { %v4773_v13 = vadd.f32 %v5967_v19, %v4733_v21 }
 0x30e   :  { %v4813_v39 = vadd.f32 %v5989_v63, %v4773_v13 }
 0x328   :  { %v6009_v4 = vpop.f32.mrb[44].mxu0 }
 0x329   :  { %v6010_v22 = vpop.f32.mrb[45].mxu0 }
 0x32a   :  { %v6011_v27 = vadd.f32 %v6010_v22, %v6009_v4  ;;  %v6012_v58 = vpop.f32.mrb[46].mxu0 }
 0x32b   :  { %v6013_v26 = vpop.f32.mrb[47].mxu0 }
 0x32c   :  { %v4853_v18 = vadd.f32 %v6011_v27, %v4813_v39 }
 0x32e   :  { %v4893_v49 = vadd.f32 %v6033_v25, %v4853_v18 }
 0x348   :  { %v6053_v53 = vpop.f32.mrb[48].mxu0 }
 0x349   :  { %v6054_v41 = vpop.f32.mrb[49].mxu0 }
 0x34a   :  { %v6055_v23 = vadd.f32 %v6054_v41, %v6053_v53  ;;  %v6056_v31 = vpop.f32.mrb[50].mxu0 }
 0x34b   :  { %v6057_v11 = vpop.f32.mrb[51].mxu0 }
 0x34c   :  { %v4933_v52 = vadd.f32 %v6055_v23, %v4893_v49 }
 0x34e   :  { %v4973_v38 = vadd.f32 %v4972_v14, %v4933_v52 }
 0x368   :  { %v5077_v35 = vpop.f32.mrb[52].mxu0 }
 0x369   :  { %v5087_v16 = vmul.f32 %v5085_v10, %v5077_v35  ;;  %v6135_v43 = vpop.f32.mrb[53].mxu0 }
 0x36a   :  { %v5080_v33 = vpop.f32.mrb[54].mxu0 }
 0x36b   :  { %v5088_v56 = vadd.f32 %v5087_v16, %v4973_v38  ;;  %v6136_v36 = vpop.f32.mrb[55].mxu0 }
 0x36d   :  { %v5096_v60 = vadd.f32 %v5521_v5, %v5088_v56 }
 0x36f   :  { %5098 = vst.msk [vmem:[#allocation2] sm:$0xff] %vm5097_vm15, %v5096_v60 }
 0x370   :  { %6574 = shalt.err (!%p6571_p4)
}
 0x371   :  { %s6575_s3 = scalar_lea.hbm %s9496_s6, 128 }
 0x372   :  { %p6576_p5 = scmp.ne.s32.totalorder %s9496_s6, %s6575_s3  ;;  %p6579_p6 = scmp.lt.u32.totalorder %s6575_s3, %s9496_s6 }
 0x374   :  { %p6581_p7 = pnand %p6579_p6, %p6576_p5 }
 0x376   :  { %6584 = shalt.err (!%p6581_p7)
}
 0x377   :  { %5108 = dma.vmem_to_hbm [thread:$0]  %s5106_s0, 128, %s9496_s6, [#allocation3]  }
 0x378   :  { %6585 = dma.done.wait [#allocation3], 128  }
 0x379   :  { %6586 = vsyncadd [#allocation3], 4294967168 }
 0x37a   :  { %5112 = vsyncpa [#allocation3], 1 }

</bundles_post_ra>
